<compile_context>
chip_gen: v5e
topology: v5e:2x2
jax: 0.10.0
libtpu: 0.0.40
codegen_flags: <defaults>
</compile_context>

<pallas_src>
import functools

import jax
import jax.numpy as jnp
from jax.experimental import pallas as pl
from jax.experimental.pallas import tpu as pltpu


# Tap order for 3x3 "same" convs; must match the per-tap weight stacking below.
OFFS3 = tuple((dy, dx) for dy in (-1, 0, 1) for dx in (-1, 0, 1))


# ---------------------------------------------------------------------------
# Fused kernel
# ---------------------------------------------------------------------------
def _fused_kernel(W, L, xup_ref, xf_ref, wt_ref, wds_ref,
                  w1_ref, w2_ref, w3_ref, w4_ref, b_ref, m_ref, o_ref):
    """Whole forward pass on one (C, L = N*H*W) channels-in-sublanes slab."""
    f32 = jnp.float32

    def conv3x3(x, w_taps_ref, bias, residual=None):
        # "same" 3x3 conv + folded-BN bias (+ residual) + ReLU.
        # Per-tap accumulation: roll along the flat pixel axis (lane rotate on
        # the XLU), zero out-of-image lanes with the precomputed mask, one
        # small MXU matmul per tap into an f32 accumulator.  Rolled data and
        # the accumulator are the only live vregs - no patch matrix.
        cout = w_taps_ref.shape[1]
        acc = jnp.zeros((cout, L), f32)
        for t, (dy, dx) in enumerate(OFFS3):
            d = dy * W + dx
            if d == 0:
                xs = x                                   # center tap: mask == 1
            else:
                # roll(x, -d): lane p reads pixel p+d; mask kills lanes whose
                # source pixel lies outside its own image (this also covers the
                # circular wrap at the ends and across batch boundaries).
                xs = pltpu.roll(x, (-d) % L, 1) * m_ref[t]
            acc = acc + jnp.dot(w_taps_ref[t], xs, preferred_element_type=f32)
        acc = acc + bias
        if residual is not None:
            acc = acc + residual
        return jnp.maximum(acc, 0.0)

    xup = xup_ref[...]        # (Cc, L) zero-upsampled coarse on the fine grid
    xf = xf_ref[...]          # (F,  L) fine features

    # ---- block1: ConvTranspose2d(k=3, s=2, p=1, op=1) + BN + ReLU
    #      == "same" 3x3 conv over the zero-upsampled fine grid.
    x1 = conv3x3(xup, wt_ref, b_ref[0])

    # ---- torch.cat((x1, xFine), 1): channel concat == sublane concat.
    xcat = jnp.concatenate([x1, xf], axis=0)             # (P+F, L)

    # ---- block2 / BasicBlock 1 (1x1 conv + BN downsample shortcut)
    res = jnp.dot(wds_ref[...], xcat, preferred_element_type=f32) + b_ref[1]
    out = conv3x3(xcat, w1_ref, b_ref[2])
    out = conv3x3(out, w2_ref, b_ref[3], residual=res)

    # ---- block2 / BasicBlock 2 (identity shortcut)
    res2 = out
    mid = conv3x3(out, w3_ref, b_ref[4])
    out = conv3x3(mid, w4_ref, b_ref[5], residual=res2)

    o_ref[...] = out.astype(o_ref.dtype)


# ---------------------------------------------------------------------------
# Wrapper-side weight / mask preparation (pure JAX, tiny, runs once per call)
# ---------------------------------------------------------------------------
def _fold_conv3_taps(w_hwio, scale):
    """(3,3,Cin,Cout),(Cout,) -> (9, Cout, Cin) per-tap GEMM weights (tap order
    = OFFS3), with the inference-BatchNorm scale folded in."""
    taps = []
    for dy, dx in OFFS3:
        w = w_hwio[dy + 1, dx + 1]                  # (Cin, Cout)
        taps.append(w.T * scale[:, None])           # (Cout, Cin)
    return jnp.stack(taps, axis=0).astype(jnp.float32)


def _build_masks(Himg, Wimg, n_rep, offsets):
    """Per-tap validity masks over the flat (batch*pixel) lane axis: 1.0 where
    the tap's source pixel lies inside the same image."""
    hw = Himg * Wimg
    idx = jnp.arange(n_rep * hw)
    h = (idx % hw) // Wimg
    w = idx % Wimg
    ms = []
    for dy, dx in offsets:
        ok = ((h + dy >= 0) & (h + dy < Himg) &
              (w + dx >= 0) & (w + dx < Wimg))
        ms.append(ok.astype(jnp.float32)[None, :])
    return jnp.stack(ms, axis=0)                    # (T, 1, n_rep*hw)


# ---------------------------------------------------------------------------
# Forward pass: one fused pallas_call
# ---------------------------------------------------------------------------
def feature_aggregator_forward(xFine, xCoarse, p):
    """xFine: (N, F, H, W), xCoarse: (N, Cc, H/2, W/2), NCHW -> (N, P, H, W)."""
    N, F, H, W = xFine.shape
    _, Cc, Hc, Wc = xCoarse.shape
    P = p['w_t'].shape[-1]
    assert (H, W) == (2 * Hc, 2 * Wc)
    L = N * H * W

    # GEMM-ified per-tap weights with BatchNorm (inference) scale folded in.
    wt = _fold_conv3_taps(p['w_t'], p['s_t'])                  # (9, P, Cc)
    w_ds = (p['w_ds'][0, 0].T * p['s_ds'][:, None]).astype(jnp.float32)  # (P, F+P)
    w1 = _fold_conv3_taps(p['w_b1c1'], p['s_b1c1'])            # (9, P, F+P)
    w2 = _fold_conv3_taps(p['w_b1c2'], p['s_b1c2'])            # (9, P, P)
    w3 = _fold_conv3_taps(p['w_b2c1'], p['s_b2c1'])
    w4 = _fold_conv3_taps(p['w_b2c2'], p['s_b2c2'])
    biases = jnp.stack([p['b_t'], p['b_ds'], p['b_b1c1'], p['b_b1c2'],
                        p['b_b2c1'], p['b_b2c2']], axis=0)[:, :, None]   # (6,P,1)
    masks = _build_masks(H, W, N, OFFS3)                       # (9, 1, L)

    # Activations: channels in sublanes, (batch * pixels) in lanes.
    xf = jnp.transpose(xFine, (1, 0, 2, 3)).reshape(F, L).astype(jnp.float32)

    # Zero-upsample xCoarse onto the fine grid in the wrapper: a single lax.pad
    # with interior padding on the tiny coarse tensor (layout plumbing, no MXU
    # work).  Inside the kernel the transposed conv is then just another
    # "same" 3x3 conv - no scatter matrices, no phase shuffles.
    xc_t = jnp.transpose(xCoarse, (1, 0, 2, 3)).astype(jnp.float32)  # (Cc,N,Hc,Wc)
    xup = jax.lax.pad(xc_t, jnp.array(0.0, jnp.float32),
                      ((0, 0, 0), (0, 0, 0), (0, 1, 1), (0, 1, 1)))  # (Cc,N,H,W)
    xup = xup.reshape(Cc, L)

    kernel = functools.partial(_fused_kernel, W, L)

    def full(shape):   # whole-array (grid-invariant) operand spec
        return pl.BlockSpec(shape, lambda i: (0,) * len(shape))

    out = pl.pallas_call(
        kernel,
        out_shape=jax.ShapeDtypeStruct((P, L), jnp.float32),
        grid=(1,),
        in_specs=[
            full(xup.shape), full(xf.shape),
            full(wt.shape), full(w_ds.shape),
            full(w1.shape), full(w2.shape), full(w3.shape), full(w4.shape),
            full(biases.shape), full(masks.shape),
        ],
        out_specs=full((P, L)),
        compiler_params=pltpu.CompilerParams(
            dimension_semantics=("arbitrary",)),
    )(xup, xf, wt, w_ds, w1, w2, w3, w4, biases, masks)

    # (P, N*H*W) -> (N, P, H, W)
    return jnp.transpose(out.reshape(P, N, H, W), (1, 0, 2, 3))


# ---------------------------------------------------------------------------
# Parameters (deterministic synthetic init; BN folded to scale/shift)
# ---------------------------------------------------------------------------
def init_params(key, fine_planes, coarse_planes, planes):
    keys = jax.random.split(key, 12)

    def conv_w(k, kh, kw, cin, cout):
        return 0.1 * jax.random.normal(k, (kh, kw, cin, cout), jnp.float32)

    def bn(k, c):
        k1, k2, k3, k4 = jax.random.split(k, 4)
        gamma = jax.random.uniform(k1, (c,), minval=0.5, maxval=1.5)
        beta = 0.1 * jax.random.normal(k2, (c,))
        mean = 0.1 * jax.random.normal(k3, (c,))
        var = jax.random.uniform(k4, (c,), minval=0.5, maxval=1.5)
        scale = gamma / jnp.sqrt(var + 1e-5)
        shift = beta - mean * scale
        return scale.astype(jnp.float32), shift.astype(jnp.float32)

    p = {}
    # block1: ConvTranspose2d weight expressed directly as its equivalent HWIO
    # forward-conv weight (spatially flipped, channels transposed).
    p['w_t'] = conv_w(keys[0], 3, 3, coarse_planes, planes)
    p['s_t'], p['b_t'] = bn(keys[1], planes)

    cin2 = fine_planes + planes
    # block2 / BasicBlock 1
    p['w_b1c1'] = conv_w(keys[2], 3, 3, cin2, planes)
    p['s_b1c1'], p['b_b1c1'] = bn(keys[3], planes)
    p['w_b1c2'] = conv_w(keys[4], 3, 3, planes, planes)
    p['s_b1c2'], p['b_b1c2'] = bn(keys[5], planes)
    p['w_ds'] = conv_w(keys[6], 1, 1, cin2, planes)          # downsample shortcut
    p['s_ds'], p['b_ds'] = bn(keys[7], planes)
    # block2 / BasicBlock 2
    p['w_b2c1'] = conv_w(keys[8], 3, 3, planes, planes)
    p['s_b2c1'], p['b_b2c1'] = bn(keys[9], planes)
    p['w_b2c2'] = conv_w(keys[10], 3, 3, planes, planes)
    p['s_b2c2'], p['b_b2c2'] = bn(keys[11], planes)
    return p


# ---------------------------------------------------------------------------
# Pure-JAX reference (lax conv, NHWC) for verification
# ---------------------------------------------------------------------------
def _ref_conv(x_pad, w, scale, bias, relu, residual=None):
    y = jax.lax.conv_general_dilated(
        x_pad, w, window_strides=(1, 1), padding='VALID',
        dimension_numbers=('NHWC', 'HWIO', 'NHWC'))
    y = y * scale + bias
    if residual is not None:
        y = y + residual
    if relu:
        y = jnp.maximum(y, 0.0)
    return y


def reference_forward(xFine, xCoarse, p):
    N, Hc, Wc, Cc = xCoarse.shape
    pad1 = lambda t: jnp.pad(t, ((0, 0), (1, 1), (1, 1), (0, 0)))
    up = jnp.zeros((N, 2 * Hc - 1, 2 * Wc - 1, Cc), xCoarse.dtype)
    up = up.at[:, ::2, ::2, :].set(xCoarse)
    up = jnp.pad(up, ((0, 0), (1, 2), (1, 2), (0, 0)))
    x1 = _ref_conv(up, p['w_t'], p['s_t'], p['b_t'], relu=True)
    x = jnp.concatenate([x1, xFine], axis=-1)
    residual = _ref_conv(x, p['w_ds'], p['s_ds'], p['b_ds'], relu=False)
    out = _ref_conv(pad1(x), p['w_b1c1'], p['s_b1c1'], p['b_b1c1'], relu=True)
    out = _ref_conv(pad1(out), p['w_b1c2'], p['s_b1c2'], p['b_b1c2'],
                    relu=True, residual=residual)
    res2 = out
    t = _ref_conv(pad1(out), p['w_b2c1'], p['s_b2c1'], p['b_b2c1'], relu=True)
    out = _ref_conv(pad1(t), p['w_b2c2'], p['s_b2c2'], p['b_b2c2'],
                    relu=True, residual=res2)
    return out


if __name__ == "__main__":
    key = jax.random.PRNGKey(0)
    k_fine, k_coarse, k_params = jax.random.split(key, 3)

    FinePlanes, CoarsePlanes, planes = 8, 8, 8
    N, Hc, Wc = 2, 8, 8                          # coarse 8x8 -> fine 16x16
    H, W = 2 * Hc, 2 * Wc

    xCoarse = jax.random.normal(k_coarse, (N, CoarsePlanes, Hc, Wc), jnp.float32)
    xFine = jax.random.normal(k_fine, (N, FinePlanes, H, W), jnp.float32)
    params = init_params(k_params, FinePlanes, CoarsePlanes, planes)

    fwd = jax.jit(feature_aggregator_forward)
    out = jax.block_until_ready(fwd(xFine, xCoarse, params))

    # Reference runs in NHWC; transpose for comparison.
    ref_nhwc = reference_forward(jnp.transpose(xFine, (0, 2, 3, 1)),
                                 jnp.transpose(xCoarse, (0, 2, 3, 1)), params)
    ref = jnp.transpose(ref_nhwc, (0, 3, 1, 2))

    assert out.shape == (N, planes, H, W), out.shape
    max_err = float(jnp.max(jnp.abs(out - ref)))
    assert jnp.allclose(out, ref, atol=1e-3, rtol=1e-3), max_err

    print("KERNEL_OK")
</pallas_src>

<mosaic_0001>
module attributes {stable_mosaic.version = 11 : i64} {
  func.func @_fused_kernel(%arg0: i32, %arg1: memref<8x512xf32, #tpu.memory_space<vmem>>, %arg2: memref<8x512xf32, #tpu.memory_space<vmem>>, %arg3: memref<9x8x8xf32, #tpu.memory_space<vmem>>, %arg4: memref<8x16xf32, #tpu.memory_space<vmem>>, %arg5: memref<9x8x16xf32, #tpu.memory_space<vmem>>, %arg6: memref<9x8x8xf32, #tpu.memory_space<vmem>>, %arg7: memref<9x8x8xf32, #tpu.memory_space<vmem>>, %arg8: memref<9x8x8xf32, #tpu.memory_space<vmem>>, %arg9: memref<6x8x1xf32, #tpu.memory_space<vmem>>, %arg10: memref<9x1x512xf32, #tpu.memory_space<vmem>>, %arg11: memref<8x512xf32, #tpu.memory_space<vmem>>) attributes {dimension_semantics = [#tpu.dimension_semantics<arbitrary>], iteration_bounds = array<i64: 1>, scalar_prefetch = 0 : i64, scratch_operands = 0 : i64, tpu.core_type = #tpu.core_type<tc>, window_params = [{pipeline_mode = #tpu.pipeline_mode<synchronous>, transform_indices = @transform_0, window_bounds = array<i64: 8, 512>}, {pipeline_mode = #tpu.pipeline_mode<synchronous>, transform_indices = @transform_1, window_bounds = array<i64: 8, 512>}, {pipeline_mode = #tpu.pipeline_mode<synchronous>, transform_indices = @transform_2, window_bounds = array<i64: 9, 8, 8>}, {pipeline_mode = #tpu.pipeline_mode<synchronous>, transform_indices = @transform_3, window_bounds = array<i64: 8, 16>}, {pipeline_mode = #tpu.pipeline_mode<synchronous>, transform_indices = @transform_4, window_bounds = array<i64: 9, 8, 16>}, {pipeline_mode = #tpu.pipeline_mode<synchronous>, transform_indices = @transform_5, window_bounds = array<i64: 9, 8, 8>}, {pipeline_mode = #tpu.pipeline_mode<synchronous>, transform_indices = @transform_6, window_bounds = array<i64: 9, 8, 8>}, {pipeline_mode = #tpu.pipeline_mode<synchronous>, transform_indices = @transform_7, window_bounds = array<i64: 9, 8, 8>}, {pipeline_mode = #tpu.pipeline_mode<synchronous>, transform_indices = @transform_8, window_bounds = array<i64: 6, 8, 1>}, {pipeline_mode = #tpu.pipeline_mode<synchronous>, transform_indices = @transform_9, window_bounds = array<i64: 9, 1, 512>}, {pipeline_mode = #tpu.pipeline_mode<synchronous>, transform_indices = @transform_10, window_bounds = array<i64: 8, 512>}]} {
    %c0 = arith.constant 0 : index
    %c0_0 = arith.constant 0 : index
    %0 = vector.load %arg1[%c0, %c0_0] : memref<8x512xf32, #tpu.memory_space<vmem>>, vector<8x512xf32>
    %c0_1 = arith.constant 0 : index
    %c0_2 = arith.constant 0 : index
    %1 = vector.load %arg2[%c0_1, %c0_2] : memref<8x512xf32, #tpu.memory_space<vmem>>, vector<8x512xf32>
    %c0_3 = arith.constant 0 : index
    %c0_4 = arith.constant 0 : index
    %c0_5 = arith.constant 0 : index
    %2 = vector.load %arg9[%c0_3, %c0_4, %c0_5] : memref<6x8x1xf32, #tpu.memory_space<vmem>>, vector<1x8x1xf32>
    %3 = vector.shape_cast %2 : vector<1x8x1xf32> to vector<8x1xf32>
    %cst = arith.constant 0.000000e+00 : f32
    %4 = vector.broadcast %cst : f32 to vector<8x512xf32>
    %c17_i32 = arith.constant 17 : i32
    %5 = tpu.dynamic_rotate %0 by %c17_i32 dim 1 : vector<8x512xf32>, i32 -> vector<8x512xf32>
    %c0_6 = arith.constant 0 : index
    %c0_7 = arith.constant 0 : index
    %c0_8 = arith.constant 0 : index
    %6 = vector.load %arg10[%c0_6, %c0_7, %c0_8] : memref<9x1x512xf32, #tpu.memory_space<vmem>>, vector<1x1x512xf32>
    %7 = vector.shape_cast %6 : vector<1x1x512xf32> to vector<1x512xf32>
    %8 = vector.broadcast %7 : vector<1x512xf32> to vector<8x512xf32>
    %9 = arith.mulf %5, %8 : vector<8x512xf32>
    %c0_9 = arith.constant 0 : index
    %c0_10 = arith.constant 0 : index
    %c0_11 = arith.constant 0 : index
    %10 = vector.load %arg3[%c0_9, %c0_10, %c0_11] : memref<9x8x8xf32, #tpu.memory_space<vmem>>, vector<1x8x8xf32>
    %11 = vector.shape_cast %10 : vector<1x8x8xf32> to vector<8x8xf32>
    %cst_12 = arith.constant dense<0.000000e+00> : vector<8x512xf32>
    %12 = tpu.matmul %11, %9, %cst_12 {dimension_numbers = #tpu.dot_dimension_numbers<[1], [0], [0], [1], [0, 0, 1, 1], [], []>} : vector<8x8xf32>, vector<8x512xf32>, vector<8x512xf32> -> vector<8x512xf32>
    %13 = arith.addf %4, %12 : vector<8x512xf32>
    %c16_i32 = arith.constant 16 : i32
    %14 = tpu.dynamic_rotate %0 by %c16_i32 dim 1 : vector<8x512xf32>, i32 -> vector<8x512xf32>
    %c1 = arith.constant 1 : index
    %c0_13 = arith.constant 0 : index
    %c0_14 = arith.constant 0 : index
    %15 = vector.load %arg10[%c1, %c0_13, %c0_14] : memref<9x1x512xf32, #tpu.memory_space<vmem>>, vector<1x1x512xf32>
    %16 = vector.shape_cast %15 : vector<1x1x512xf32> to vector<1x512xf32>
    %17 = vector.broadcast %16 : vector<1x512xf32> to vector<8x512xf32>
    %18 = arith.mulf %14, %17 : vector<8x512xf32>
    %c1_15 = arith.constant 1 : index
    %c0_16 = arith.constant 0 : index
    %c0_17 = arith.constant 0 : index
    %19 = vector.load %arg3[%c1_15, %c0_16, %c0_17] : memref<9x8x8xf32, #tpu.memory_space<vmem>>, vector<1x8x8xf32>
    %20 = vector.shape_cast %19 : vector<1x8x8xf32> to vector<8x8xf32>
    %cst_18 = arith.constant dense<0.000000e+00> : vector<8x512xf32>
    %21 = tpu.matmul %20, %18, %cst_18 {dimension_numbers = #tpu.dot_dimension_numbers<[1], [0], [0], [1], [0, 0, 1, 1], [], []>} : vector<8x8xf32>, vector<8x512xf32>, vector<8x512xf32> -> vector<8x512xf32>
    %22 = arith.addf %13, %21 : vector<8x512xf32>
    %c15_i32 = arith.constant 15 : i32
    %23 = tpu.dynamic_rotate %0 by %c15_i32 dim 1 : vector<8x512xf32>, i32 -> vector<8x512xf32>
    %c2 = arith.constant 2 : index
    %c0_19 = arith.constant 0 : index
    %c0_20 = arith.constant 0 : index
    %24 = vector.load %arg10[%c2, %c0_19, %c0_20] : memref<9x1x512xf32, #tpu.memory_space<vmem>>, vector<1x1x512xf32>
    %25 = vector.shape_cast %24 : vector<1x1x512xf32> to vector<1x512xf32>
    %26 = vector.broadcast %25 : vector<1x512xf32> to vector<8x512xf32>
    %27 = arith.mulf %23, %26 : vector<8x512xf32>
    %c2_21 = arith.constant 2 : index
    %c0_22 = arith.constant 0 : index
    %c0_23 = arith.constant 0 : index
    %28 = vector.load %arg3[%c2_21, %c0_22, %c0_23] : memref<9x8x8xf32, #tpu.memory_space<vmem>>, vector<1x8x8xf32>
    %29 = vector.shape_cast %28 : vector<1x8x8xf32> to vector<8x8xf32>
    %cst_24 = arith.constant dense<0.000000e+00> : vector<8x512xf32>
    %30 = tpu.matmul %29, %27, %cst_24 {dimension_numbers = #tpu.dot_dimension_numbers<[1], [0], [0], [1], [0, 0, 1, 1], [], []>} : vector<8x8xf32>, vector<8x512xf32>, vector<8x512xf32> -> vector<8x512xf32>
    %31 = arith.addf %22, %30 : vector<8x512xf32>
    %c1_i32 = arith.constant 1 : i32
    %32 = tpu.dynamic_rotate %0 by %c1_i32 dim 1 : vector<8x512xf32>, i32 -> vector<8x512xf32>
    %c3 = arith.constant 3 : index
    %c0_25 = arith.constant 0 : index
    %c0_26 = arith.constant 0 : index
    %33 = vector.load %arg10[%c3, %c0_25, %c0_26] : memref<9x1x512xf32, #tpu.memory_space<vmem>>, vector<1x1x512xf32>
    %34 = vector.shape_cast %33 : vector<1x1x512xf32> to vector<1x512xf32>
    %35 = vector.broadcast %34 : vector<1x512xf32> to vector<8x512xf32>
    %36 = arith.mulf %32, %35 : vector<8x512xf32>
    %c3_27 = arith.constant 3 : index
    %c0_28 = arith.constant 0 : index
    %c0_29 = arith.constant 0 : index
    %37 = vector.load %arg3[%c3_27, %c0_28, %c0_29] : memref<9x8x8xf32, #tpu.memory_space<vmem>>, vector<1x8x8xf32>
    %38 = vector.shape_cast %37 : vector<1x8x8xf32> to vector<8x8xf32>
    %cst_30 = arith.constant dense<0.000000e+00> : vector<8x512xf32>
    %39 = tpu.matmul %38, %36, %cst_30 {dimension_numbers = #tpu.dot_dimension_numbers<[1], [0], [0], [1], [0, 0, 1, 1], [], []>} : vector<8x8xf32>, vector<8x512xf32>, vector<8x512xf32> -> vector<8x512xf32>
    %40 = arith.addf %31, %39 : vector<8x512xf32>
    %c4 = arith.constant 4 : index
    %c0_31 = arith.constant 0 : index
    %c0_32 = arith.constant 0 : index
    %41 = vector.load %arg3[%c4, %c0_31, %c0_32] : memref<9x8x8xf32, #tpu.memory_space<vmem>>, vector<1x8x8xf32>
    %42 = vector.shape_cast %41 : vector<1x8x8xf32> to vector<8x8xf32>
    %cst_33 = arith.constant dense<0.000000e+00> : vector<8x512xf32>
    %43 = tpu.matmul %42, %0, %cst_33 {dimension_numbers = #tpu.dot_dimension_numbers<[1], [0], [0], [1], [0, 0, 1, 1], [], []>} : vector<8x8xf32>, vector<8x512xf32>, vector<8x512xf32> -> vector<8x512xf32>
    %44 = arith.addf %40, %43 : vector<8x512xf32>
    %c511_i32 = arith.constant 511 : i32
    %45 = tpu.dynamic_rotate %0 by %c511_i32 dim 1 : vector<8x512xf32>, i32 -> vector<8x512xf32>
    %c5 = arith.constant 5 : index
    %c0_34 = arith.constant 0 : index
    %c0_35 = arith.constant 0 : index
    %46 = vector.load %arg10[%c5, %c0_34, %c0_35] : memref<9x1x512xf32, #tpu.memory_space<vmem>>, vector<1x1x512xf32>
    %47 = vector.shape_cast %46 : vector<1x1x512xf32> to vector<1x512xf32>
    %48 = vector.broadcast %47 : vector<1x512xf32> to vector<8x512xf32>
    %49 = arith.mulf %45, %48 : vector<8x512xf32>
    %c5_36 = arith.constant 5 : index
    %c0_37 = arith.constant 0 : index
    %c0_38 = arith.constant 0 : index
    %50 = vector.load %arg3[%c5_36, %c0_37, %c0_38] : memref<9x8x8xf32, #tpu.memory_space<vmem>>, vector<1x8x8xf32>
    %51 = vector.shape_cast %50 : vector<1x8x8xf32> to vector<8x8xf32>
    %cst_39 = arith.constant dense<0.000000e+00> : vector<8x512xf32>
    %52 = tpu.matmul %51, %49, %cst_39 {dimension_numbers = #tpu.dot_dimension_numbers<[1], [0], [0], [1], [0, 0, 1, 1], [], []>} : vector<8x8xf32>, vector<8x512xf32>, vector<8x512xf32> -> vector<8x512xf32>
    %53 = arith.addf %44, %52 : vector<8x512xf32>
    %c497_i32 = arith.constant 497 : i32
    %54 = tpu.dynamic_rotate %0 by %c497_i32 dim 1 : vector<8x512xf32>, i32 -> vector<8x512xf32>
    %c6 = arith.constant 6 : index
    %c0_40 = arith.constant 0 : index
    %c0_41 = arith.constant 0 : index
    %55 = vector.load %arg10[%c6, %c0_40, %c0_41] : memref<9x1x512xf32, #tpu.memory_space<vmem>>, vector<1x1x512xf32>
    %56 = vector.shape_cast %55 : vector<1x1x512xf32> to vector<1x512xf32>
    %57 = vector.broadcast %56 : vector<1x512xf32> to vector<8x512xf32>
    %58 = arith.mulf %54, %57 : vector<8x512xf32>
    %c6_42 = arith.constant 6 : index
    %c0_43 = arith.constant 0 : index
    %c0_44 = arith.constant 0 : index
    %59 = vector.load %arg3[%c6_42, %c0_43, %c0_44] : memref<9x8x8xf32, #tpu.memory_space<vmem>>, vector<1x8x8xf32>
    %60 = vector.shape_cast %59 : vector<1x8x8xf32> to vector<8x8xf32>
    %cst_45 = arith.constant dense<0.000000e+00> : vector<8x512xf32>
    %61 = tpu.matmul %60, %58, %cst_45 {dimension_numbers = #tpu.dot_dimension_numbers<[1], [0], [0], [1], [0, 0, 1, 1], [], []>} : vector<8x8xf32>, vector<8x512xf32>, vector<8x512xf32> -> vector<8x512xf32>
    %62 = arith.addf %53, %61 : vector<8x512xf32>
    %c496_i32 = arith.constant 496 : i32
    %63 = tpu.dynamic_rotate %0 by %c496_i32 dim 1 : vector<8x512xf32>, i32 -> vector<8x512xf32>
    %c7 = arith.constant 7 : index
    %c0_46 = arith.constant 0 : index
    %c0_47 = arith.constant 0 : index
    %64 = vector.load %arg10[%c7, %c0_46, %c0_47] : memref<9x1x512xf32, #tpu.memory_space<vmem>>, vector<1x1x512xf32>
    %65 = vector.shape_cast %64 : vector<1x1x512xf32> to vector<1x512xf32>
    %66 = vector.broadcast %65 : vector<1x512xf32> to vector<8x512xf32>
    %67 = arith.mulf %63, %66 : vector<8x512xf32>
    %c7_48 = arith.constant 7 : index
    %c0_49 = arith.constant 0 : index
    %c0_50 = arith.constant 0 : index
    %68 = vector.load %arg3[%c7_48, %c0_49, %c0_50] : memref<9x8x8xf32, #tpu.memory_space<vmem>>, vector<1x8x8xf32>
    %69 = vector.shape_cast %68 : vector<1x8x8xf32> to vector<8x8xf32>
    %cst_51 = arith.constant dense<0.000000e+00> : vector<8x512xf32>
    %70 = tpu.matmul %69, %67, %cst_51 {dimension_numbers = #tpu.dot_dimension_numbers<[1], [0], [0], [1], [0, 0, 1, 1], [], []>} : vector<8x8xf32>, vector<8x512xf32>, vector<8x512xf32> -> vector<8x512xf32>
    %71 = arith.addf %62, %70 : vector<8x512xf32>
    %c495_i32 = arith.constant 495 : i32
    %72 = tpu.dynamic_rotate %0 by %c495_i32 dim 1 : vector<8x512xf32>, i32 -> vector<8x512xf32>
    %c8 = arith.constant 8 : index
    %c0_52 = arith.constant 0 : index
    %c0_53 = arith.constant 0 : index
    %73 = vector.load %arg10[%c8, %c0_52, %c0_53] : memref<9x1x512xf32, #tpu.memory_space<vmem>>, vector<1x1x512xf32>
    %74 = vector.shape_cast %73 : vector<1x1x512xf32> to vector<1x512xf32>
    %75 = vector.broadcast %74 : vector<1x512xf32> to vector<8x512xf32>
    %76 = arith.mulf %72, %75 : vector<8x512xf32>
    %c8_54 = arith.constant 8 : index
    %c0_55 = arith.constant 0 : index
    %c0_56 = arith.constant 0 : index
    %77 = vector.load %arg3[%c8_54, %c0_55, %c0_56] : memref<9x8x8xf32, #tpu.memory_space<vmem>>, vector<1x8x8xf32>
    %78 = vector.shape_cast %77 : vector<1x8x8xf32> to vector<8x8xf32>
    %cst_57 = arith.constant dense<0.000000e+00> : vector<8x512xf32>
    %79 = tpu.matmul %78, %76, %cst_57 {dimension_numbers = #tpu.dot_dimension_numbers<[1], [0], [0], [1], [0, 0, 1, 1], [], []>} : vector<8x8xf32>, vector<8x512xf32>, vector<8x512xf32> -> vector<8x512xf32>
    %80 = arith.addf %71, %79 : vector<8x512xf32>
    %81 = vector.broadcast %3 : vector<8x1xf32> to vector<8x512xf32>
    %82 = arith.addf %80, %81 : vector<8x512xf32>
    %cst_58 = arith.constant 0.000000e+00 : f32
    %83 = vector.broadcast %cst_58 : f32 to vector<8x512xf32>
    %84 = arith.maximumf %82, %83 : vector<8x512xf32>
    %85 = tpu.concatenate %84, %1 in 0 : vector<8x512xf32>, vector<8x512xf32> -> vector<16x512xf32>
    %c0_59 = arith.constant 0 : index
    %c0_60 = arith.constant 0 : index
    %86 = vector.load %arg4[%c0_59, %c0_60] : memref<8x16xf32, #tpu.memory_space<vmem>>, vector<8x16xf32>
    %cst_61 = arith.constant dense<0.000000e+00> : vector<8x512xf32>
    %87 = tpu.matmul %86, %85, %cst_61 {dimension_numbers = #tpu.dot_dimension_numbers<[1], [0], [0], [1], [0, 0, 1, 1], [], []>} : vector<8x16xf32>, vector<16x512xf32>, vector<8x512xf32> -> vector<8x512xf32>
    %c1_62 = arith.constant 1 : index
    %c0_63 = arith.constant 0 : index
    %c0_64 = arith.constant 0 : index
    %88 = vector.load %arg9[%c1_62, %c0_63, %c0_64] : memref<6x8x1xf32, #tpu.memory_space<vmem>>, vector<1x8x1xf32>
    %89 = vector.shape_cast %88 : vector<1x8x1xf32> to vector<8x1xf32>
    %90 = vector.broadcast %89 : vector<8x1xf32> to vector<8x512xf32>
    %91 = arith.addf %87, %90 : vector<8x512xf32>
    %c2_65 = arith.constant 2 : index
    %c0_66 = arith.constant 0 : index
    %c0_67 = arith.constant 0 : index
    %92 = vector.load %arg9[%c2_65, %c0_66, %c0_67] : memref<6x8x1xf32, #tpu.memory_space<vmem>>, vector<1x8x1xf32>
    %93 = vector.shape_cast %92 : vector<1x8x1xf32> to vector<8x1xf32>
    %cst_68 = arith.constant 0.000000e+00 : f32
    %94 = vector.broadcast %cst_68 : f32 to vector<8x512xf32>
    %c17_i32_69 = arith.constant 17 : i32
    %95 = tpu.dynamic_rotate %85 by %c17_i32_69 dim 1 : vector<16x512xf32>, i32 -> vector<16x512xf32>
    %c0_70 = arith.constant 0 : index
    %c0_71 = arith.constant 0 : index
    %c0_72 = arith.constant 0 : index
    %96 = vector.load %arg10[%c0_70, %c0_71, %c0_72] : memref<9x1x512xf32, #tpu.memory_space<vmem>>, vector<1x1x512xf32>
    %97 = vector.shape_cast %96 : vector<1x1x512xf32> to vector<1x512xf32>
    %98 = vector.broadcast %97 : vector<1x512xf32> to vector<16x512xf32>
    %99 = arith.mulf %95, %98 : vector<16x512xf32>
    %c0_73 = arith.constant 0 : index
    %c0_74 = arith.constant 0 : index
    %c0_75 = arith.constant 0 : index
    %100 = vector.load %arg5[%c0_73, %c0_74, %c0_75] : memref<9x8x16xf32, #tpu.memory_space<vmem>>, vector<1x8x16xf32>
    %101 = vector.shape_cast %100 : vector<1x8x16xf32> to vector<8x16xf32>
    %cst_76 = arith.constant dense<0.000000e+00> : vector<8x512xf32>
    %102 = tpu.matmul %101, %99, %cst_76 {dimension_numbers = #tpu.dot_dimension_numbers<[1], [0], [0], [1], [0, 0, 1, 1], [], []>} : vector<8x16xf32>, vector<16x512xf32>, vector<8x512xf32> -> vector<8x512xf32>
    %103 = arith.addf %94, %102 : vector<8x512xf32>
    %c16_i32_77 = arith.constant 16 : i32
    %104 = tpu.dynamic_rotate %85 by %c16_i32_77 dim 1 : vector<16x512xf32>, i32 -> vector<16x512xf32>
    %c1_78 = arith.constant 1 : index
    %c0_79 = arith.constant 0 : index
    %c0_80 = arith.constant 0 : index
    %105 = vector.load %arg10[%c1_78, %c0_79, %c0_80] : memref<9x1x512xf32, #tpu.memory_space<vmem>>, vector<1x1x512xf32>
    %106 = vector.shape_cast %105 : vector<1x1x512xf32> to vector<1x512xf32>
    %107 = vector.broadcast %106 : vector<1x512xf32> to vector<16x512xf32>
    %108 = arith.mulf %104, %107 : vector<16x512xf32>
    %c1_81 = arith.constant 1 : index
    %c0_82 = arith.constant 0 : index
    %c0_83 = arith.constant 0 : index
    %109 = vector.load %arg5[%c1_81, %c0_82, %c0_83] : memref<9x8x16xf32, #tpu.memory_space<vmem>>, vector<1x8x16xf32>
    %110 = vector.shape_cast %109 : vector<1x8x16xf32> to vector<8x16xf32>
    %cst_84 = arith.constant dense<0.000000e+00> : vector<8x512xf32>
    %111 = tpu.matmul %110, %108, %cst_84 {dimension_numbers = #tpu.dot_dimension_numbers<[1], [0], [0], [1], [0, 0, 1, 1], [], []>} : vector<8x16xf32>, vector<16x512xf32>, vector<8x512xf32> -> vector<8x512xf32>
    %112 = arith.addf %103, %111 : vector<8x512xf32>
    %c15_i32_85 = arith.constant 15 : i32
    %113 = tpu.dynamic_rotate %85 by %c15_i32_85 dim 1 : vector<16x512xf32>, i32 -> vector<16x512xf32>
    %c2_86 = arith.constant 2 : index
    %c0_87 = arith.constant 0 : index
    %c0_88 = arith.constant 0 : index
    %114 = vector.load %arg10[%c2_86, %c0_87, %c0_88] : memref<9x1x512xf32, #tpu.memory_space<vmem>>, vector<1x1x512xf32>
    %115 = vector.shape_cast %114 : vector<1x1x512xf32> to vector<1x512xf32>
    %116 = vector.broadcast %115 : vector<1x512xf32> to vector<16x512xf32>
    %117 = arith.mulf %113, %116 : vector<16x512xf32>
    %c2_89 = arith.constant 2 : index
    %c0_90 = arith.constant 0 : index
    %c0_91 = arith.constant 0 : index
    %118 = vector.load %arg5[%c2_89, %c0_90, %c0_91] : memref<9x8x16xf32, #tpu.memory_space<vmem>>, vector<1x8x16xf32>
    %119 = vector.shape_cast %118 : vector<1x8x16xf32> to vector<8x16xf32>
    %cst_92 = arith.constant dense<0.000000e+00> : vector<8x512xf32>
    %120 = tpu.matmul %119, %117, %cst_92 {dimension_numbers = #tpu.dot_dimension_numbers<[1], [0], [0], [1], [0, 0, 1, 1], [], []>} : vector<8x16xf32>, vector<16x512xf32>, vector<8x512xf32> -> vector<8x512xf32>
    %121 = arith.addf %112, %120 : vector<8x512xf32>
    %c1_i32_93 = arith.constant 1 : i32
    %122 = tpu.dynamic_rotate %85 by %c1_i32_93 dim 1 : vector<16x512xf32>, i32 -> vector<16x512xf32>
    %c3_94 = arith.constant 3 : index
    %c0_95 = arith.constant 0 : index
    %c0_96 = arith.constant 0 : index
    %123 = vector.load %arg10[%c3_94, %c0_95, %c0_96] : memref<9x1x512xf32, #tpu.memory_space<vmem>>, vector<1x1x512xf32>
    %124 = vector.shape_cast %123 : vector<1x1x512xf32> to vector<1x512xf32>
    %125 = vector.broadcast %124 : vector<1x512xf32> to vector<16x512xf32>
    %126 = arith.mulf %122, %125 : vector<16x512xf32>
    %c3_97 = arith.constant 3 : index
    %c0_98 = arith.constant 0 : index
    %c0_99 = arith.constant 0 : index
    %127 = vector.load %arg5[%c3_97, %c0_98, %c0_99] : memref<9x8x16xf32, #tpu.memory_space<vmem>>, vector<1x8x16xf32>
    %128 = vector.shape_cast %127 : vector<1x8x16xf32> to vector<8x16xf32>
    %cst_100 = arith.constant dense<0.000000e+00> : vector<8x512xf32>
    %129 = tpu.matmul %128, %126, %cst_100 {dimension_numbers = #tpu.dot_dimension_numbers<[1], [0], [0], [1], [0, 0, 1, 1], [], []>} : vector<8x16xf32>, vector<16x512xf32>, vector<8x512xf32> -> vector<8x512xf32>
    %130 = arith.addf %121, %129 : vector<8x512xf32>
    %c4_101 = arith.constant 4 : index
    %c0_102 = arith.constant 0 : index
    %c0_103 = arith.constant 0 : index
    %131 = vector.load %arg5[%c4_101, %c0_102, %c0_103] : memref<9x8x16xf32, #tpu.memory_space<vmem>>, vector<1x8x16xf32>
    %132 = vector.shape_cast %131 : vector<1x8x16xf32> to vector<8x16xf32>
    %cst_104 = arith.constant dense<0.000000e+00> : vector<8x512xf32>
    %133 = tpu.matmul %132, %85, %cst_104 {dimension_numbers = #tpu.dot_dimension_numbers<[1], [0], [0], [1], [0, 0, 1, 1], [], []>} : vector<8x16xf32>, vector<16x512xf32>, vector<8x512xf32> -> vector<8x512xf32>
    %134 = arith.addf %130, %133 : vector<8x512xf32>
    %c511_i32_105 = arith.constant 511 : i32
    %135 = tpu.dynamic_rotate %85 by %c511_i32_105 dim 1 : vector<16x512xf32>, i32 -> vector<16x512xf32>
    %c5_106 = arith.constant 5 : index
    %c0_107 = arith.constant 0 : index
    %c0_108 = arith.constant 0 : index
    %136 = vector.load %arg10[%c5_106, %c0_107, %c0_108] : memref<9x1x512xf32, #tpu.memory_space<vmem>>, vector<1x1x512xf32>
    %137 = vector.shape_cast %136 : vector<1x1x512xf32> to vector<1x512xf32>
    %138 = vector.broadcast %137 : vector<1x512xf32> to vector<16x512xf32>
    %139 = arith.mulf %135, %138 : vector<16x512xf32>
    %c5_109 = arith.constant 5 : index
    %c0_110 = arith.constant 0 : index
    %c0_111 = arith.constant 0 : index
    %140 = vector.load %arg5[%c5_109, %c0_110, %c0_111] : memref<9x8x16xf32, #tpu.memory_space<vmem>>, vector<1x8x16xf32>
    %141 = vector.shape_cast %140 : vector<1x8x16xf32> to vector<8x16xf32>
    %cst_112 = arith.constant dense<0.000000e+00> : vector<8x512xf32>
    %142 = tpu.matmul %141, %139, %cst_112 {dimension_numbers = #tpu.dot_dimension_numbers<[1], [0], [0], [1], [0, 0, 1, 1], [], []>} : vector<8x16xf32>, vector<16x512xf32>, vector<8x512xf32> -> vector<8x512xf32>
    %143 = arith.addf %134, %142 : vector<8x512xf32>
    %c497_i32_113 = arith.constant 497 : i32
    %144 = tpu.dynamic_rotate %85 by %c497_i32_113 dim 1 : vector<16x512xf32>, i32 -> vector<16x512xf32>
    %c6_114 = arith.constant 6 : index
    %c0_115 = arith.constant 0 : index
    %c0_116 = arith.constant 0 : index
    %145 = vector.load %arg10[%c6_114, %c0_115, %c0_116] : memref<9x1x512xf32, #tpu.memory_space<vmem>>, vector<1x1x512xf32>
    %146 = vector.shape_cast %145 : vector<1x1x512xf32> to vector<1x512xf32>
    %147 = vector.broadcast %146 : vector<1x512xf32> to vector<16x512xf32>
    %148 = arith.mulf %144, %147 : vector<16x512xf32>
    %c6_117 = arith.constant 6 : index
    %c0_118 = arith.constant 0 : index
    %c0_119 = arith.constant 0 : index
    %149 = vector.load %arg5[%c6_117, %c0_118, %c0_119] : memref<9x8x16xf32, #tpu.memory_space<vmem>>, vector<1x8x16xf32>
    %150 = vector.shape_cast %149 : vector<1x8x16xf32> to vector<8x16xf32>
    %cst_120 = arith.constant dense<0.000000e+00> : vector<8x512xf32>
    %151 = tpu.matmul %150, %148, %cst_120 {dimension_numbers = #tpu.dot_dimension_numbers<[1], [0], [0], [1], [0, 0, 1, 1], [], []>} : vector<8x16xf32>, vector<16x512xf32>, vector<8x512xf32> -> vector<8x512xf32>
    %152 = arith.addf %143, %151 : vector<8x512xf32>
    %c496_i32_121 = arith.constant 496 : i32
    %153 = tpu.dynamic_rotate %85 by %c496_i32_121 dim 1 : vector<16x512xf32>, i32 -> vector<16x512xf32>
    %c7_122 = arith.constant 7 : index
    %c0_123 = arith.constant 0 : index
    %c0_124 = arith.constant 0 : index
    %154 = vector.load %arg10[%c7_122, %c0_123, %c0_124] : memref<9x1x512xf32, #tpu.memory_space<vmem>>, vector<1x1x512xf32>
    %155 = vector.shape_cast %154 : vector<1x1x512xf32> to vector<1x512xf32>
    %156 = vector.broadcast %155 : vector<1x512xf32> to vector<16x512xf32>
    %157 = arith.mulf %153, %156 : vector<16x512xf32>
    %c7_125 = arith.constant 7 : index
    %c0_126 = arith.constant 0 : index
    %c0_127 = arith.constant 0 : index
    %158 = vector.load %arg5[%c7_125, %c0_126, %c0_127] : memref<9x8x16xf32, #tpu.memory_space<vmem>>, vector<1x8x16xf32>
    %159 = vector.shape_cast %158 : vector<1x8x16xf32> to vector<8x16xf32>
    %cst_128 = arith.constant dense<0.000000e+00> : vector<8x512xf32>
    %160 = tpu.matmul %159, %157, %cst_128 {dimension_numbers = #tpu.dot_dimension_numbers<[1], [0], [0], [1], [0, 0, 1, 1], [], []>} : vector<8x16xf32>, vector<16x512xf32>, vector<8x512xf32> -> vector<8x512xf32>
    %161 = arith.addf %152, %160 : vector<8x512xf32>
    %c495_i32_129 = arith.constant 495 : i32
    %162 = tpu.dynamic_rotate %85 by %c495_i32_129 dim 1 : vector<16x512xf32>, i32 -> vector<16x512xf32>
    %c8_130 = arith.constant 8 : index
    %c0_131 = arith.constant 0 : index
    %c0_132 = arith.constant 0 : index
    %163 = vector.load %arg10[%c8_130, %c0_131, %c0_132] : memref<9x1x512xf32, #tpu.memory_space<vmem>>, vector<1x1x512xf32>
    %164 = vector.shape_cast %163 : vector<1x1x512xf32> to vector<1x512xf32>
    %165 = vector.broadcast %164 : vector<1x512xf32> to vector<16x512xf32>
    %166 = arith.mulf %162, %165 : vector<16x512xf32>
    %c8_133 = arith.constant 8 : index
    %c0_134 = arith.constant 0 : index
    %c0_135 = arith.constant 0 : index
    %167 = vector.load %arg5[%c8_133, %c0_134, %c0_135] : memref<9x8x16xf32, #tpu.memory_space<vmem>>, vector<1x8x16xf32>
    %168 = vector.shape_cast %167 : vector<1x8x16xf32> to vector<8x16xf32>
    %cst_136 = arith.constant dense<0.000000e+00> : vector<8x512xf32>
    %169 = tpu.matmul %168, %166, %cst_136 {dimension_numbers = #tpu.dot_dimension_numbers<[1], [0], [0], [1], [0, 0, 1, 1], [], []>} : vector<8x16xf32>, vector<16x512xf32>, vector<8x512xf32> -> vector<8x512xf32>
    %170 = arith.addf %161, %169 : vector<8x512xf32>
    %171 = vector.broadcast %93 : vector<8x1xf32> to vector<8x512xf32>
    %172 = arith.addf %170, %171 : vector<8x512xf32>
    %cst_137 = arith.constant 0.000000e+00 : f32
    %173 = vector.broadcast %cst_137 : f32 to vector<8x512xf32>
    %174 = arith.maximumf %172, %173 : vector<8x512xf32>
    %c3_138 = arith.constant 3 : index
    %c0_139 = arith.constant 0 : index
    %c0_140 = arith.constant 0 : index
    %175 = vector.load %arg9[%c3_138, %c0_139, %c0_140] : memref<6x8x1xf32, #tpu.memory_space<vmem>>, vector<1x8x1xf32>
    %176 = vector.shape_cast %175 : vector<1x8x1xf32> to vector<8x1xf32>
    %cst_141 = arith.constant 0.000000e+00 : f32
    %177 = vector.broadcast %cst_141 : f32 to vector<8x512xf32>
    %c17_i32_142 = arith.constant 17 : i32
    %178 = tpu.dynamic_rotate %174 by %c17_i32_142 dim 1 : vector<8x512xf32>, i32 -> vector<8x512xf32>
    %c0_143 = arith.constant 0 : index
    %c0_144 = arith.constant 0 : index
    %c0_145 = arith.constant 0 : index
    %179 = vector.load %arg10[%c0_143, %c0_144, %c0_145] : memref<9x1x512xf32, #tpu.memory_space<vmem>>, vector<1x1x512xf32>
    %180 = vector.shape_cast %179 : vector<1x1x512xf32> to vector<1x512xf32>
    %181 = vector.broadcast %180 : vector<1x512xf32> to vector<8x512xf32>
    %182 = arith.mulf %178, %181 : vector<8x512xf32>
    %c0_146 = arith.constant 0 : index
    %c0_147 = arith.constant 0 : index
    %c0_148 = arith.constant 0 : index
    %183 = vector.load %arg6[%c0_146, %c0_147, %c0_148] : memref<9x8x8xf32, #tpu.memory_space<vmem>>, vector<1x8x8xf32>
    %184 = vector.shape_cast %183 : vector<1x8x8xf32> to vector<8x8xf32>
    %cst_149 = arith.constant dense<0.000000e+00> : vector<8x512xf32>
    %185 = tpu.matmul %184, %182, %cst_149 {dimension_numbers = #tpu.dot_dimension_numbers<[1], [0], [0], [1], [0, 0, 1, 1], [], []>} : vector<8x8xf32>, vector<8x512xf32>, vector<8x512xf32> -> vector<8x512xf32>
    %186 = arith.addf %177, %185 : vector<8x512xf32>
    %c16_i32_150 = arith.constant 16 : i32
    %187 = tpu.dynamic_rotate %174 by %c16_i32_150 dim 1 : vector<8x512xf32>, i32 -> vector<8x512xf32>
    %c1_151 = arith.constant 1 : index
    %c0_152 = arith.constant 0 : index
    %c0_153 = arith.constant 0 : index
    %188 = vector.load %arg10[%c1_151, %c0_152, %c0_153] : memref<9x1x512xf32, #tpu.memory_space<vmem>>, vector<1x1x512xf32>
    %189 = vector.shape_cast %188 : vector<1x1x512xf32> to vector<1x512xf32>
    %190 = vector.broadcast %189 : vector<1x512xf32> to vector<8x512xf32>
    %191 = arith.mulf %187, %190 : vector<8x512xf32>
    %c1_154 = arith.constant 1 : index
    %c0_155 = arith.constant 0 : index
    %c0_156 = arith.constant 0 : index
    %192 = vector.load %arg6[%c1_154, %c0_155, %c0_156] : memref<9x8x8xf32, #tpu.memory_space<vmem>>, vector<1x8x8xf32>
    %193 = vector.shape_cast %192 : vector<1x8x8xf32> to vector<8x8xf32>
    %cst_157 = arith.constant dense<0.000000e+00> : vector<8x512xf32>
    %194 = tpu.matmul %193, %191, %cst_157 {dimension_numbers = #tpu.dot_dimension_numbers<[1], [0], [0], [1], [0, 0, 1, 1], [], []>} : vector<8x8xf32>, vector<8x512xf32>, vector<8x512xf32> -> vector<8x512xf32>
    %195 = arith.addf %186, %194 : vector<8x512xf32>
    %c15_i32_158 = arith.constant 15 : i32
    %196 = tpu.dynamic_rotate %174 by %c15_i32_158 dim 1 : vector<8x512xf32>, i32 -> vector<8x512xf32>
    %c2_159 = arith.constant 2 : index
    %c0_160 = arith.constant 0 : index
    %c0_161 = arith.constant 0 : index
    %197 = vector.load %arg10[%c2_159, %c0_160, %c0_161] : memref<9x1x512xf32, #tpu.memory_space<vmem>>, vector<1x1x512xf32>
    %198 = vector.shape_cast %197 : vector<1x1x512xf32> to vector<1x512xf32>
    %199 = vector.broadcast %198 : vector<1x512xf32> to vector<8x512xf32>
    %200 = arith.mulf %196, %199 : vector<8x512xf32>
    %c2_162 = arith.constant 2 : index
    %c0_163 = arith.constant 0 : index
    %c0_164 = arith.constant 0 : index
    %201 = vector.load %arg6[%c2_162, %c0_163, %c0_164] : memref<9x8x8xf32, #tpu.memory_space<vmem>>, vector<1x8x8xf32>
    %202 = vector.shape_cast %201 : vector<1x8x8xf32> to vector<8x8xf32>
    %cst_165 = arith.constant dense<0.000000e+00> : vector<8x512xf32>
    %203 = tpu.matmul %202, %200, %cst_165 {dimension_numbers = #tpu.dot_dimension_numbers<[1], [0], [0], [1], [0, 0, 1, 1], [], []>} : vector<8x8xf32>, vector<8x512xf32>, vector<8x512xf32> -> vector<8x512xf32>
    %204 = arith.addf %195, %203 : vector<8x512xf32>
    %c1_i32_166 = arith.constant 1 : i32
    %205 = tpu.dynamic_rotate %174 by %c1_i32_166 dim 1 : vector<8x512xf32>, i32 -> vector<8x512xf32>
    %c3_167 = arith.constant 3 : index
    %c0_168 = arith.constant 0 : index
    %c0_169 = arith.constant 0 : index
    %206 = vector.load %arg10[%c3_167, %c0_168, %c0_169] : memref<9x1x512xf32, #tpu.memory_space<vmem>>, vector<1x1x512xf32>
    %207 = vector.shape_cast %206 : vector<1x1x512xf32> to vector<1x512xf32>
    %208 = vector.broadcast %207 : vector<1x512xf32> to vector<8x512xf32>
    %209 = arith.mulf %205, %208 : vector<8x512xf32>
    %c3_170 = arith.constant 3 : index
    %c0_171 = arith.constant 0 : index
    %c0_172 = arith.constant 0 : index
    %210 = vector.load %arg6[%c3_170, %c0_171, %c0_172] : memref<9x8x8xf32, #tpu.memory_space<vmem>>, vector<1x8x8xf32>
    %211 = vector.shape_cast %210 : vector<1x8x8xf32> to vector<8x8xf32>
    %cst_173 = arith.constant dense<0.000000e+00> : vector<8x512xf32>
    %212 = tpu.matmul %211, %209, %cst_173 {dimension_numbers = #tpu.dot_dimension_numbers<[1], [0], [0], [1], [0, 0, 1, 1], [], []>} : vector<8x8xf32>, vector<8x512xf32>, vector<8x512xf32> -> vector<8x512xf32>
    %213 = arith.addf %204, %212 : vector<8x512xf32>
    %c4_174 = arith.constant 4 : index
    %c0_175 = arith.constant 0 : index
    %c0_176 = arith.constant 0 : index
    %214 = vector.load %arg6[%c4_174, %c0_175, %c0_176] : memref<9x8x8xf32, #tpu.memory_space<vmem>>, vector<1x8x8xf32>
    %215 = vector.shape_cast %214 : vector<1x8x8xf32> to vector<8x8xf32>
    %cst_177 = arith.constant dense<0.000000e+00> : vector<8x512xf32>
    %216 = tpu.matmul %215, %174, %cst_177 {dimension_numbers = #tpu.dot_dimension_numbers<[1], [0], [0], [1], [0, 0, 1, 1], [], []>} : vector<8x8xf32>, vector<8x512xf32>, vector<8x512xf32> -> vector<8x512xf32>
    %217 = arith.addf %213, %216 : vector<8x512xf32>
    %c511_i32_178 = arith.constant 511 : i32
    %218 = tpu.dynamic_rotate %174 by %c511_i32_178 dim 1 : vector<8x512xf32>, i32 -> vector<8x512xf32>
    %c5_179 = arith.constant 5 : index
    %c0_180 = arith.constant 0 : index
    %c0_181 = arith.constant 0 : index
    %219 = vector.load %arg10[%c5_179, %c0_180, %c0_181] : memref<9x1x512xf32, #tpu.memory_space<vmem>>, vector<1x1x512xf32>
    %220 = vector.shape_cast %219 : vector<1x1x512xf32> to vector<1x512xf32>
    %221 = vector.broadcast %220 : vector<1x512xf32> to vector<8x512xf32>
    %222 = arith.mulf %218, %221 : vector<8x512xf32>
    %c5_182 = arith.constant 5 : index
    %c0_183 = arith.constant 0 : index
    %c0_184 = arith.constant 0 : index
    %223 = vector.load %arg6[%c5_182, %c0_183, %c0_184] : memref<9x8x8xf32, #tpu.memory_space<vmem>>, vector<1x8x8xf32>
    %224 = vector.shape_cast %223 : vector<1x8x8xf32> to vector<8x8xf32>
    %cst_185 = arith.constant dense<0.000000e+00> : vector<8x512xf32>
    %225 = tpu.matmul %224, %222, %cst_185 {dimension_numbers = #tpu.dot_dimension_numbers<[1], [0], [0], [1], [0, 0, 1, 1], [], []>} : vector<8x8xf32>, vector<8x512xf32>, vector<8x512xf32> -> vector<8x512xf32>
    %226 = arith.addf %217, %225 : vector<8x512xf32>
    %c497_i32_186 = arith.constant 497 : i32
    %227 = tpu.dynamic_rotate %174 by %c497_i32_186 dim 1 : vector<8x512xf32>, i32 -> vector<8x512xf32>
    %c6_187 = arith.constant 6 : index
    %c0_188 = arith.constant 0 : index
    %c0_189 = arith.constant 0 : index
    %228 = vector.load %arg10[%c6_187, %c0_188, %c0_189] : memref<9x1x512xf32, #tpu.memory_space<vmem>>, vector<1x1x512xf32>
    %229 = vector.shape_cast %228 : vector<1x1x512xf32> to vector<1x512xf32>
    %230 = vector.broadcast %229 : vector<1x512xf32> to vector<8x512xf32>
    %231 = arith.mulf %227, %230 : vector<8x512xf32>
    %c6_190 = arith.constant 6 : index
    %c0_191 = arith.constant 0 : index
    %c0_192 = arith.constant 0 : index
    %232 = vector.load %arg6[%c6_190, %c0_191, %c0_192] : memref<9x8x8xf32, #tpu.memory_space<vmem>>, vector<1x8x8xf32>
    %233 = vector.shape_cast %232 : vector<1x8x8xf32> to vector<8x8xf32>
    %cst_193 = arith.constant dense<0.000000e+00> : vector<8x512xf32>
    %234 = tpu.matmul %233, %231, %cst_193 {dimension_numbers = #tpu.dot_dimension_numbers<[1], [0], [0], [1], [0, 0, 1, 1], [], []>} : vector<8x8xf32>, vector<8x512xf32>, vector<8x512xf32> -> vector<8x512xf32>
    %235 = arith.addf %226, %234 : vector<8x512xf32>
    %c496_i32_194 = arith.constant 496 : i32
    %236 = tpu.dynamic_rotate %174 by %c496_i32_194 dim 1 : vector<8x512xf32>, i32 -> vector<8x512xf32>
    %c7_195 = arith.constant 7 : index
    %c0_196 = arith.constant 0 : index
    %c0_197 = arith.constant 0 : index
    %237 = vector.load %arg10[%c7_195, %c0_196, %c0_197] : memref<9x1x512xf32, #tpu.memory_space<vmem>>, vector<1x1x512xf32>
    %238 = vector.shape_cast %237 : vector<1x1x512xf32> to vector<1x512xf32>
    %239 = vector.broadcast %238 : vector<1x512xf32> to vector<8x512xf32>
    %240 = arith.mulf %236, %239 : vector<8x512xf32>
    %c7_198 = arith.constant 7 : index
    %c0_199 = arith.constant 0 : index
    %c0_200 = arith.constant 0 : index
    %241 = vector.load %arg6[%c7_198, %c0_199, %c0_200] : memref<9x8x8xf32, #tpu.memory_space<vmem>>, vector<1x8x8xf32>
    %242 = vector.shape_cast %241 : vector<1x8x8xf32> to vector<8x8xf32>
    %cst_201 = arith.constant dense<0.000000e+00> : vector<8x512xf32>
    %243 = tpu.matmul %242, %240, %cst_201 {dimension_numbers = #tpu.dot_dimension_numbers<[1], [0], [0], [1], [0, 0, 1, 1], [], []>} : vector<8x8xf32>, vector<8x512xf32>, vector<8x512xf32> -> vector<8x512xf32>
    %244 = arith.addf %235, %243 : vector<8x512xf32>
    %c495_i32_202 = arith.constant 495 : i32
    %245 = tpu.dynamic_rotate %174 by %c495_i32_202 dim 1 : vector<8x512xf32>, i32 -> vector<8x512xf32>
    %c8_203 = arith.constant 8 : index
    %c0_204 = arith.constant 0 : index
    %c0_205 = arith.constant 0 : index
    %246 = vector.load %arg10[%c8_203, %c0_204, %c0_205] : memref<9x1x512xf32, #tpu.memory_space<vmem>>, vector<1x1x512xf32>
    %247 = vector.shape_cast %246 : vector<1x1x512xf32> to vector<1x512xf32>
    %248 = vector.broadcast %247 : vector<1x512xf32> to vector<8x512xf32>
    %249 = arith.mulf %245, %248 : vector<8x512xf32>
    %c8_206 = arith.constant 8 : index
    %c0_207 = arith.constant 0 : index
    %c0_208 = arith.constant 0 : index
    %250 = vector.load %arg6[%c8_206, %c0_207, %c0_208] : memref<9x8x8xf32, #tpu.memory_space<vmem>>, vector<1x8x8xf32>
    %251 = vector.shape_cast %250 : vector<1x8x8xf32> to vector<8x8xf32>
    %cst_209 = arith.constant dense<0.000000e+00> : vector<8x512xf32>
    %252 = tpu.matmul %251, %249, %cst_209 {dimension_numbers = #tpu.dot_dimension_numbers<[1], [0], [0], [1], [0, 0, 1, 1], [], []>} : vector<8x8xf32>, vector<8x512xf32>, vector<8x512xf32> -> vector<8x512xf32>
    %253 = arith.addf %244, %252 : vector<8x512xf32>
    %254 = vector.broadcast %176 : vector<8x1xf32> to vector<8x512xf32>
    %255 = arith.addf %253, %254 : vector<8x512xf32>
    %256 = arith.addf %255, %91 : vector<8x512xf32>
    %cst_210 = arith.constant 0.000000e+00 : f32
    %257 = vector.broadcast %cst_210 : f32 to vector<8x512xf32>
    %258 = arith.maximumf %256, %257 : vector<8x512xf32>
    %c4_211 = arith.constant 4 : index
    %c0_212 = arith.constant 0 : index
    %c0_213 = arith.constant 0 : index
    %259 = vector.load %arg9[%c4_211, %c0_212, %c0_213] : memref<6x8x1xf32, #tpu.memory_space<vmem>>, vector<1x8x1xf32>
    %260 = vector.shape_cast %259 : vector<1x8x1xf32> to vector<8x1xf32>
    %cst_214 = arith.constant 0.000000e+00 : f32
    %261 = vector.broadcast %cst_214 : f32 to vector<8x512xf32>
    %c17_i32_215 = arith.constant 17 : i32
    %262 = tpu.dynamic_rotate %258 by %c17_i32_215 dim 1 : vector<8x512xf32>, i32 -> vector<8x512xf32>
    %c0_216 = arith.constant 0 : index
    %c0_217 = arith.constant 0 : index
    %c0_218 = arith.constant 0 : index
    %263 = vector.load %arg10[%c0_216, %c0_217, %c0_218] : memref<9x1x512xf32, #tpu.memory_space<vmem>>, vector<1x1x512xf32>
    %264 = vector.shape_cast %263 : vector<1x1x512xf32> to vector<1x512xf32>
    %265 = vector.broadcast %264 : vector<1x512xf32> to vector<8x512xf32>
    %266 = arith.mulf %262, %265 : vector<8x512xf32>
    %c0_219 = arith.constant 0 : index
    %c0_220 = arith.constant 0 : index
    %c0_221 = arith.constant 0 : index
    %267 = vector.load %arg7[%c0_219, %c0_220, %c0_221] : memref<9x8x8xf32, #tpu.memory_space<vmem>>, vector<1x8x8xf32>
    %268 = vector.shape_cast %267 : vector<1x8x8xf32> to vector<8x8xf32>
    %cst_222 = arith.constant dense<0.000000e+00> : vector<8x512xf32>
    %269 = tpu.matmul %268, %266, %cst_222 {dimension_numbers = #tpu.dot_dimension_numbers<[1], [0], [0], [1], [0, 0, 1, 1], [], []>} : vector<8x8xf32>, vector<8x512xf32>, vector<8x512xf32> -> vector<8x512xf32>
    %270 = arith.addf %261, %269 : vector<8x512xf32>
    %c16_i32_223 = arith.constant 16 : i32
    %271 = tpu.dynamic_rotate %258 by %c16_i32_223 dim 1 : vector<8x512xf32>, i32 -> vector<8x512xf32>
    %c1_224 = arith.constant 1 : index
    %c0_225 = arith.constant 0 : index
    %c0_226 = arith.constant 0 : index
    %272 = vector.load %arg10[%c1_224, %c0_225, %c0_226] : memref<9x1x512xf32, #tpu.memory_space<vmem>>, vector<1x1x512xf32>
    %273 = vector.shape_cast %272 : vector<1x1x512xf32> to vector<1x512xf32>
    %274 = vector.broadcast %273 : vector<1x512xf32> to vector<8x512xf32>
    %275 = arith.mulf %271, %274 : vector<8x512xf32>
    %c1_227 = arith.constant 1 : index
    %c0_228 = arith.constant 0 : index
    %c0_229 = arith.constant 0 : index
    %276 = vector.load %arg7[%c1_227, %c0_228, %c0_229] : memref<9x8x8xf32, #tpu.memory_space<vmem>>, vector<1x8x8xf32>
    %277 = vector.shape_cast %276 : vector<1x8x8xf32> to vector<8x8xf32>
    %cst_230 = arith.constant dense<0.000000e+00> : vector<8x512xf32>
    %278 = tpu.matmul %277, %275, %cst_230 {dimension_numbers = #tpu.dot_dimension_numbers<[1], [0], [0], [1], [0, 0, 1, 1], [], []>} : vector<8x8xf32>, vector<8x512xf32>, vector<8x512xf32> -> vector<8x512xf32>
    %279 = arith.addf %270, %278 : vector<8x512xf32>
    %c15_i32_231 = arith.constant 15 : i32
    %280 = tpu.dynamic_rotate %258 by %c15_i32_231 dim 1 : vector<8x512xf32>, i32 -> vector<8x512xf32>
    %c2_232 = arith.constant 2 : index
    %c0_233 = arith.constant 0 : index
    %c0_234 = arith.constant 0 : index
    %281 = vector.load %arg10[%c2_232, %c0_233, %c0_234] : memref<9x1x512xf32, #tpu.memory_space<vmem>>, vector<1x1x512xf32>
    %282 = vector.shape_cast %281 : vector<1x1x512xf32> to vector<1x512xf32>
    %283 = vector.broadcast %282 : vector<1x512xf32> to vector<8x512xf32>
    %284 = arith.mulf %280, %283 : vector<8x512xf32>
    %c2_235 = arith.constant 2 : index
    %c0_236 = arith.constant 0 : index
    %c0_237 = arith.constant 0 : index
    %285 = vector.load %arg7[%c2_235, %c0_236, %c0_237] : memref<9x8x8xf32, #tpu.memory_space<vmem>>, vector<1x8x8xf32>
    %286 = vector.shape_cast %285 : vector<1x8x8xf32> to vector<8x8xf32>
    %cst_238 = arith.constant dense<0.000000e+00> : vector<8x512xf32>
    %287 = tpu.matmul %286, %284, %cst_238 {dimension_numbers = #tpu.dot_dimension_numbers<[1], [0], [0], [1], [0, 0, 1, 1], [], []>} : vector<8x8xf32>, vector<8x512xf32>, vector<8x512xf32> -> vector<8x512xf32>
    %288 = arith.addf %279, %287 : vector<8x512xf32>
    %c1_i32_239 = arith.constant 1 : i32
    %289 = tpu.dynamic_rotate %258 by %c1_i32_239 dim 1 : vector<8x512xf32>, i32 -> vector<8x512xf32>
    %c3_240 = arith.constant 3 : index
    %c0_241 = arith.constant 0 : index
    %c0_242 = arith.constant 0 : index
    %290 = vector.load %arg10[%c3_240, %c0_241, %c0_242] : memref<9x1x512xf32, #tpu.memory_space<vmem>>, vector<1x1x512xf32>
    %291 = vector.shape_cast %290 : vector<1x1x512xf32> to vector<1x512xf32>
    %292 = vector.broadcast %291 : vector<1x512xf32> to vector<8x512xf32>
    %293 = arith.mulf %289, %292 : vector<8x512xf32>
    %c3_243 = arith.constant 3 : index
    %c0_244 = arith.constant 0 : index
    %c0_245 = arith.constant 0 : index
    %294 = vector.load %arg7[%c3_243, %c0_244, %c0_245] : memref<9x8x8xf32, #tpu.memory_space<vmem>>, vector<1x8x8xf32>
    %295 = vector.shape_cast %294 : vector<1x8x8xf32> to vector<8x8xf32>
    %cst_246 = arith.constant dense<0.000000e+00> : vector<8x512xf32>
    %296 = tpu.matmul %295, %293, %cst_246 {dimension_numbers = #tpu.dot_dimension_numbers<[1], [0], [0], [1], [0, 0, 1, 1], [], []>} : vector<8x8xf32>, vector<8x512xf32>, vector<8x512xf32> -> vector<8x512xf32>
    %297 = arith.addf %288, %296 : vector<8x512xf32>
    %c4_247 = arith.constant 4 : index
    %c0_248 = arith.constant 0 : index
    %c0_249 = arith.constant 0 : index
    %298 = vector.load %arg7[%c4_247, %c0_248, %c0_249] : memref<9x8x8xf32, #tpu.memory_space<vmem>>, vector<1x8x8xf32>
    %299 = vector.shape_cast %298 : vector<1x8x8xf32> to vector<8x8xf32>
    %cst_250 = arith.constant dense<0.000000e+00> : vector<8x512xf32>
    %300 = tpu.matmul %299, %258, %cst_250 {dimension_numbers = #tpu.dot_dimension_numbers<[1], [0], [0], [1], [0, 0, 1, 1], [], []>} : vector<8x8xf32>, vector<8x512xf32>, vector<8x512xf32> -> vector<8x512xf32>
    %301 = arith.addf %297, %300 : vector<8x512xf32>
    %c511_i32_251 = arith.constant 511 : i32
    %302 = tpu.dynamic_rotate %258 by %c511_i32_251 dim 1 : vector<8x512xf32>, i32 -> vector<8x512xf32>
    %c5_252 = arith.constant 5 : index
    %c0_253 = arith.constant 0 : index
    %c0_254 = arith.constant 0 : index
    %303 = vector.load %arg10[%c5_252, %c0_253, %c0_254] : memref<9x1x512xf32, #tpu.memory_space<vmem>>, vector<1x1x512xf32>
    %304 = vector.shape_cast %303 : vector<1x1x512xf32> to vector<1x512xf32>
    %305 = vector.broadcast %304 : vector<1x512xf32> to vector<8x512xf32>
    %306 = arith.mulf %302, %305 : vector<8x512xf32>
    %c5_255 = arith.constant 5 : index
    %c0_256 = arith.constant 0 : index
    %c0_257 = arith.constant 0 : index
    %307 = vector.load %arg7[%c5_255, %c0_256, %c0_257] : memref<9x8x8xf32, #tpu.memory_space<vmem>>, vector<1x8x8xf32>
    %308 = vector.shape_cast %307 : vector<1x8x8xf32> to vector<8x8xf32>
    %cst_258 = arith.constant dense<0.000000e+00> : vector<8x512xf32>
    %309 = tpu.matmul %308, %306, %cst_258 {dimension_numbers = #tpu.dot_dimension_numbers<[1], [0], [0], [1], [0, 0, 1, 1], [], []>} : vector<8x8xf32>, vector<8x512xf32>, vector<8x512xf32> -> vector<8x512xf32>
    %310 = arith.addf %301, %309 : vector<8x512xf32>
    %c497_i32_259 = arith.constant 497 : i32
    %311 = tpu.dynamic_rotate %258 by %c497_i32_259 dim 1 : vector<8x512xf32>, i32 -> vector<8x512xf32>
    %c6_260 = arith.constant 6 : index
    %c0_261 = arith.constant 0 : index
    %c0_262 = arith.constant 0 : index
    %312 = vector.load %arg10[%c6_260, %c0_261, %c0_262] : memref<9x1x512xf32, #tpu.memory_space<vmem>>, vector<1x1x512xf32>
    %313 = vector.shape_cast %312 : vector<1x1x512xf32> to vector<1x512xf32>
    %314 = vector.broadcast %313 : vector<1x512xf32> to vector<8x512xf32>
    %315 = arith.mulf %311, %314 : vector<8x512xf32>
    %c6_263 = arith.constant 6 : index
    %c0_264 = arith.constant 0 : index
    %c0_265 = arith.constant 0 : index
    %316 = vector.load %arg7[%c6_263, %c0_264, %c0_265] : memref<9x8x8xf32, #tpu.memory_space<vmem>>, vector<1x8x8xf32>
    %317 = vector.shape_cast %316 : vector<1x8x8xf32> to vector<8x8xf32>
    %cst_266 = arith.constant dense<0.000000e+00> : vector<8x512xf32>
    %318 = tpu.matmul %317, %315, %cst_266 {dimension_numbers = #tpu.dot_dimension_numbers<[1], [0], [0], [1], [0, 0, 1, 1], [], []>} : vector<8x8xf32>, vector<8x512xf32>, vector<8x512xf32> -> vector<8x512xf32>
    %319 = arith.addf %310, %318 : vector<8x512xf32>
    %c496_i32_267 = arith.constant 496 : i32
    %320 = tpu.dynamic_rotate %258 by %c496_i32_267 dim 1 : vector<8x512xf32>, i32 -> vector<8x512xf32>
    %c7_268 = arith.constant 7 : index
    %c0_269 = arith.constant 0 : index
    %c0_270 = arith.constant 0 : index
    %321 = vector.load %arg10[%c7_268, %c0_269, %c0_270] : memref<9x1x512xf32, #tpu.memory_space<vmem>>, vector<1x1x512xf32>
    %322 = vector.shape_cast %321 : vector<1x1x512xf32> to vector<1x512xf32>
    %323 = vector.broadcast %322 : vector<1x512xf32> to vector<8x512xf32>
    %324 = arith.mulf %320, %323 : vector<8x512xf32>
    %c7_271 = arith.constant 7 : index
    %c0_272 = arith.constant 0 : index
    %c0_273 = arith.constant 0 : index
    %325 = vector.load %arg7[%c7_271, %c0_272, %c0_273] : memref<9x8x8xf32, #tpu.memory_space<vmem>>, vector<1x8x8xf32>
    %326 = vector.shape_cast %325 : vector<1x8x8xf32> to vector<8x8xf32>
    %cst_274 = arith.constant dense<0.000000e+00> : vector<8x512xf32>
    %327 = tpu.matmul %326, %324, %cst_274 {dimension_numbers = #tpu.dot_dimension_numbers<[1], [0], [0], [1], [0, 0, 1, 1], [], []>} : vector<8x8xf32>, vector<8x512xf32>, vector<8x512xf32> -> vector<8x512xf32>
    %328 = arith.addf %319, %327 : vector<8x512xf32>
    %c495_i32_275 = arith.constant 495 : i32
    %329 = tpu.dynamic_rotate %258 by %c495_i32_275 dim 1 : vector<8x512xf32>, i32 -> vector<8x512xf32>
    %c8_276 = arith.constant 8 : index
    %c0_277 = arith.constant 0 : index
    %c0_278 = arith.constant 0 : index
    %330 = vector.load %arg10[%c8_276, %c0_277, %c0_278] : memref<9x1x512xf32, #tpu.memory_space<vmem>>, vector<1x1x512xf32>
    %331 = vector.shape_cast %330 : vector<1x1x512xf32> to vector<1x512xf32>
    %332 = vector.broadcast %331 : vector<1x512xf32> to vector<8x512xf32>
    %333 = arith.mulf %329, %332 : vector<8x512xf32>
    %c8_279 = arith.constant 8 : index
    %c0_280 = arith.constant 0 : index
    %c0_281 = arith.constant 0 : index
    %334 = vector.load %arg7[%c8_279, %c0_280, %c0_281] : memref<9x8x8xf32, #tpu.memory_space<vmem>>, vector<1x8x8xf32>
    %335 = vector.shape_cast %334 : vector<1x8x8xf32> to vector<8x8xf32>
    %cst_282 = arith.constant dense<0.000000e+00> : vector<8x512xf32>
    %336 = tpu.matmul %335, %333, %cst_282 {dimension_numbers = #tpu.dot_dimension_numbers<[1], [0], [0], [1], [0, 0, 1, 1], [], []>} : vector<8x8xf32>, vector<8x512xf32>, vector<8x512xf32> -> vector<8x512xf32>
    %337 = arith.addf %328, %336 : vector<8x512xf32>
    %338 = vector.broadcast %260 : vector<8x1xf32> to vector<8x512xf32>
    %339 = arith.addf %337, %338 : vector<8x512xf32>
    %cst_283 = arith.constant 0.000000e+00 : f32
    %340 = vector.broadcast %cst_283 : f32 to vector<8x512xf32>
    %341 = arith.maximumf %339, %340 : vector<8x512xf32>
    %c5_284 = arith.constant 5 : index
    %c0_285 = arith.constant 0 : index
    %c0_286 = arith.constant 0 : index
    %342 = vector.load %arg9[%c5_284, %c0_285, %c0_286] : memref<6x8x1xf32, #tpu.memory_space<vmem>>, vector<1x8x1xf32>
    %343 = vector.shape_cast %342 : vector<1x8x1xf32> to vector<8x1xf32>
    %cst_287 = arith.constant 0.000000e+00 : f32
    %344 = vector.broadcast %cst_287 : f32 to vector<8x512xf32>
    %c17_i32_288 = arith.constant 17 : i32
    %345 = tpu.dynamic_rotate %341 by %c17_i32_288 dim 1 : vector<8x512xf32>, i32 -> vector<8x512xf32>
    %c0_289 = arith.constant 0 : index
    %c0_290 = arith.constant 0 : index
    %c0_291 = arith.constant 0 : index
    %346 = vector.load %arg10[%c0_289, %c0_290, %c0_291] : memref<9x1x512xf32, #tpu.memory_space<vmem>>, vector<1x1x512xf32>
    %347 = vector.shape_cast %346 : vector<1x1x512xf32> to vector<1x512xf32>
    %348 = vector.broadcast %347 : vector<1x512xf32> to vector<8x512xf32>
    %349 = arith.mulf %345, %348 : vector<8x512xf32>
    %c0_292 = arith.constant 0 : index
    %c0_293 = arith.constant 0 : index
    %c0_294 = arith.constant 0 : index
    %350 = vector.load %arg8[%c0_292, %c0_293, %c0_294] : memref<9x8x8xf32, #tpu.memory_space<vmem>>, vector<1x8x8xf32>
    %351 = vector.shape_cast %350 : vector<1x8x8xf32> to vector<8x8xf32>
    %cst_295 = arith.constant dense<0.000000e+00> : vector<8x512xf32>
    %352 = tpu.matmul %351, %349, %cst_295 {dimension_numbers = #tpu.dot_dimension_numbers<[1], [0], [0], [1], [0, 0, 1, 1], [], []>} : vector<8x8xf32>, vector<8x512xf32>, vector<8x512xf32> -> vector<8x512xf32>
    %353 = arith.addf %344, %352 : vector<8x512xf32>
    %c16_i32_296 = arith.constant 16 : i32
    %354 = tpu.dynamic_rotate %341 by %c16_i32_296 dim 1 : vector<8x512xf32>, i32 -> vector<8x512xf32>
    %c1_297 = arith.constant 1 : index
    %c0_298 = arith.constant 0 : index
    %c0_299 = arith.constant 0 : index
    %355 = vector.load %arg10[%c1_297, %c0_298, %c0_299] : memref<9x1x512xf32, #tpu.memory_space<vmem>>, vector<1x1x512xf32>
    %356 = vector.shape_cast %355 : vector<1x1x512xf32> to vector<1x512xf32>
    %357 = vector.broadcast %356 : vector<1x512xf32> to vector<8x512xf32>
    %358 = arith.mulf %354, %357 : vector<8x512xf32>
    %c1_300 = arith.constant 1 : index
    %c0_301 = arith.constant 0 : index
    %c0_302 = arith.constant 0 : index
    %359 = vector.load %arg8[%c1_300, %c0_301, %c0_302] : memref<9x8x8xf32, #tpu.memory_space<vmem>>, vector<1x8x8xf32>
    %360 = vector.shape_cast %359 : vector<1x8x8xf32> to vector<8x8xf32>
    %cst_303 = arith.constant dense<0.000000e+00> : vector<8x512xf32>
    %361 = tpu.matmul %360, %358, %cst_303 {dimension_numbers = #tpu.dot_dimension_numbers<[1], [0], [0], [1], [0, 0, 1, 1], [], []>} : vector<8x8xf32>, vector<8x512xf32>, vector<8x512xf32> -> vector<8x512xf32>
    %362 = arith.addf %353, %361 : vector<8x512xf32>
    %c15_i32_304 = arith.constant 15 : i32
    %363 = tpu.dynamic_rotate %341 by %c15_i32_304 dim 1 : vector<8x512xf32>, i32 -> vector<8x512xf32>
    %c2_305 = arith.constant 2 : index
    %c0_306 = arith.constant 0 : index
    %c0_307 = arith.constant 0 : index
    %364 = vector.load %arg10[%c2_305, %c0_306, %c0_307] : memref<9x1x512xf32, #tpu.memory_space<vmem>>, vector<1x1x512xf32>
    %365 = vector.shape_cast %364 : vector<1x1x512xf32> to vector<1x512xf32>
    %366 = vector.broadcast %365 : vector<1x512xf32> to vector<8x512xf32>
    %367 = arith.mulf %363, %366 : vector<8x512xf32>
    %c2_308 = arith.constant 2 : index
    %c0_309 = arith.constant 0 : index
    %c0_310 = arith.constant 0 : index
    %368 = vector.load %arg8[%c2_308, %c0_309, %c0_310] : memref<9x8x8xf32, #tpu.memory_space<vmem>>, vector<1x8x8xf32>
    %369 = vector.shape_cast %368 : vector<1x8x8xf32> to vector<8x8xf32>
    %cst_311 = arith.constant dense<0.000000e+00> : vector<8x512xf32>
    %370 = tpu.matmul %369, %367, %cst_311 {dimension_numbers = #tpu.dot_dimension_numbers<[1], [0], [0], [1], [0, 0, 1, 1], [], []>} : vector<8x8xf32>, vector<8x512xf32>, vector<8x512xf32> -> vector<8x512xf32>
    %371 = arith.addf %362, %370 : vector<8x512xf32>
    %c1_i32_312 = arith.constant 1 : i32
    %372 = tpu.dynamic_rotate %341 by %c1_i32_312 dim 1 : vector<8x512xf32>, i32 -> vector<8x512xf32>
    %c3_313 = arith.constant 3 : index
    %c0_314 = arith.constant 0 : index
    %c0_315 = arith.constant 0 : index
    %373 = vector.load %arg10[%c3_313, %c0_314, %c0_315] : memref<9x1x512xf32, #tpu.memory_space<vmem>>, vector<1x1x512xf32>
    %374 = vector.shape_cast %373 : vector<1x1x512xf32> to vector<1x512xf32>
    %375 = vector.broadcast %374 : vector<1x512xf32> to vector<8x512xf32>
    %376 = arith.mulf %372, %375 : vector<8x512xf32>
    %c3_316 = arith.constant 3 : index
    %c0_317 = arith.constant 0 : index
    %c0_318 = arith.constant 0 : index
    %377 = vector.load %arg8[%c3_316, %c0_317, %c0_318] : memref<9x8x8xf32, #tpu.memory_space<vmem>>, vector<1x8x8xf32>
    %378 = vector.shape_cast %377 : vector<1x8x8xf32> to vector<8x8xf32>
    %cst_319 = arith.constant dense<0.000000e+00> : vector<8x512xf32>
    %379 = tpu.matmul %378, %376, %cst_319 {dimension_numbers = #tpu.dot_dimension_numbers<[1], [0], [0], [1], [0, 0, 1, 1], [], []>} : vector<8x8xf32>, vector<8x512xf32>, vector<8x512xf32> -> vector<8x512xf32>
    %380 = arith.addf %371, %379 : vector<8x512xf32>
    %c4_320 = arith.constant 4 : index
    %c0_321 = arith.constant 0 : index
    %c0_322 = arith.constant 0 : index
    %381 = vector.load %arg8[%c4_320, %c0_321, %c0_322] : memref<9x8x8xf32, #tpu.memory_space<vmem>>, vector<1x8x8xf32>
    %382 = vector.shape_cast %381 : vector<1x8x8xf32> to vector<8x8xf32>
    %cst_323 = arith.constant dense<0.000000e+00> : vector<8x512xf32>
    %383 = tpu.matmul %382, %341, %cst_323 {dimension_numbers = #tpu.dot_dimension_numbers<[1], [0], [0], [1], [0, 0, 1, 1], [], []>} : vector<8x8xf32>, vector<8x512xf32>, vector<8x512xf32> -> vector<8x512xf32>
    %384 = arith.addf %380, %383 : vector<8x512xf32>
    %c511_i32_324 = arith.constant 511 : i32
    %385 = tpu.dynamic_rotate %341 by %c511_i32_324 dim 1 : vector<8x512xf32>, i32 -> vector<8x512xf32>
    %c5_325 = arith.constant 5 : index
    %c0_326 = arith.constant 0 : index
    %c0_327 = arith.constant 0 : index
    %386 = vector.load %arg10[%c5_325, %c0_326, %c0_327] : memref<9x1x512xf32, #tpu.memory_space<vmem>>, vector<1x1x512xf32>
    %387 = vector.shape_cast %386 : vector<1x1x512xf32> to vector<1x512xf32>
    %388 = vector.broadcast %387 : vector<1x512xf32> to vector<8x512xf32>
    %389 = arith.mulf %385, %388 : vector<8x512xf32>
    %c5_328 = arith.constant 5 : index
    %c0_329 = arith.constant 0 : index
    %c0_330 = arith.constant 0 : index
    %390 = vector.load %arg8[%c5_328, %c0_329, %c0_330] : memref<9x8x8xf32, #tpu.memory_space<vmem>>, vector<1x8x8xf32>
    %391 = vector.shape_cast %390 : vector<1x8x8xf32> to vector<8x8xf32>
    %cst_331 = arith.constant dense<0.000000e+00> : vector<8x512xf32>
    %392 = tpu.matmul %391, %389, %cst_331 {dimension_numbers = #tpu.dot_dimension_numbers<[1], [0], [0], [1], [0, 0, 1, 1], [], []>} : vector<8x8xf32>, vector<8x512xf32>, vector<8x512xf32> -> vector<8x512xf32>
    %393 = arith.addf %384, %392 : vector<8x512xf32>
    %c497_i32_332 = arith.constant 497 : i32
    %394 = tpu.dynamic_rotate %341 by %c497_i32_332 dim 1 : vector<8x512xf32>, i32 -> vector<8x512xf32>
    %c6_333 = arith.constant 6 : index
    %c0_334 = arith.constant 0 : index
    %c0_335 = arith.constant 0 : index
    %395 = vector.load %arg10[%c6_333, %c0_334, %c0_335] : memref<9x1x512xf32, #tpu.memory_space<vmem>>, vector<1x1x512xf32>
    %396 = vector.shape_cast %395 : vector<1x1x512xf32> to vector<1x512xf32>
    %397 = vector.broadcast %396 : vector<1x512xf32> to vector<8x512xf32>
    %398 = arith.mulf %394, %397 : vector<8x512xf32>
    %c6_336 = arith.constant 6 : index
    %c0_337 = arith.constant 0 : index
    %c0_338 = arith.constant 0 : index
    %399 = vector.load %arg8[%c6_336, %c0_337, %c0_338] : memref<9x8x8xf32, #tpu.memory_space<vmem>>, vector<1x8x8xf32>
    %400 = vector.shape_cast %399 : vector<1x8x8xf32> to vector<8x8xf32>
    %cst_339 = arith.constant dense<0.000000e+00> : vector<8x512xf32>
    %401 = tpu.matmul %400, %398, %cst_339 {dimension_numbers = #tpu.dot_dimension_numbers<[1], [0], [0], [1], [0, 0, 1, 1], [], []>} : vector<8x8xf32>, vector<8x512xf32>, vector<8x512xf32> -> vector<8x512xf32>
    %402 = arith.addf %393, %401 : vector<8x512xf32>
    %c496_i32_340 = arith.constant 496 : i32
    %403 = tpu.dynamic_rotate %341 by %c496_i32_340 dim 1 : vector<8x512xf32>, i32 -> vector<8x512xf32>
    %c7_341 = arith.constant 7 : index
    %c0_342 = arith.constant 0 : index
    %c0_343 = arith.constant 0 : index
    %404 = vector.load %arg10[%c7_341, %c0_342, %c0_343] : memref<9x1x512xf32, #tpu.memory_space<vmem>>, vector<1x1x512xf32>
    %405 = vector.shape_cast %404 : vector<1x1x512xf32> to vector<1x512xf32>
    %406 = vector.broadcast %405 : vector<1x512xf32> to vector<8x512xf32>
    %407 = arith.mulf %403, %406 : vector<8x512xf32>
    %c7_344 = arith.constant 7 : index
    %c0_345 = arith.constant 0 : index
    %c0_346 = arith.constant 0 : index
    %408 = vector.load %arg8[%c7_344, %c0_345, %c0_346] : memref<9x8x8xf32, #tpu.memory_space<vmem>>, vector<1x8x8xf32>
    %409 = vector.shape_cast %408 : vector<1x8x8xf32> to vector<8x8xf32>
    %cst_347 = arith.constant dense<0.000000e+00> : vector<8x512xf32>
    %410 = tpu.matmul %409, %407, %cst_347 {dimension_numbers = #tpu.dot_dimension_numbers<[1], [0], [0], [1], [0, 0, 1, 1], [], []>} : vector<8x8xf32>, vector<8x512xf32>, vector<8x512xf32> -> vector<8x512xf32>
    %411 = arith.addf %402, %410 : vector<8x512xf32>
    %c495_i32_348 = arith.constant 495 : i32
    %412 = tpu.dynamic_rotate %341 by %c495_i32_348 dim 1 : vector<8x512xf32>, i32 -> vector<8x512xf32>
    %c8_349 = arith.constant 8 : index
    %c0_350 = arith.constant 0 : index
    %c0_351 = arith.constant 0 : index
    %413 = vector.load %arg10[%c8_349, %c0_350, %c0_351] : memref<9x1x512xf32, #tpu.memory_space<vmem>>, vector<1x1x512xf32>
    %414 = vector.shape_cast %413 : vector<1x1x512xf32> to vector<1x512xf32>
    %415 = vector.broadcast %414 : vector<1x512xf32> to vector<8x512xf32>
    %416 = arith.mulf %412, %415 : vector<8x512xf32>
    %c8_352 = arith.constant 8 : index
    %c0_353 = arith.constant 0 : index
    %c0_354 = arith.constant 0 : index
    %417 = vector.load %arg8[%c8_352, %c0_353, %c0_354] : memref<9x8x8xf32, #tpu.memory_space<vmem>>, vector<1x8x8xf32>
    %418 = vector.shape_cast %417 : vector<1x8x8xf32> to vector<8x8xf32>
    %cst_355 = arith.constant dense<0.000000e+00> : vector<8x512xf32>
    %419 = tpu.matmul %418, %416, %cst_355 {dimension_numbers = #tpu.dot_dimension_numbers<[1], [0], [0], [1], [0, 0, 1, 1], [], []>} : vector<8x8xf32>, vector<8x512xf32>, vector<8x512xf32> -> vector<8x512xf32>
    %420 = arith.addf %411, %419 : vector<8x512xf32>
    %421 = vector.broadcast %343 : vector<8x1xf32> to vector<8x512xf32>
    %422 = arith.addf %420, %421 : vector<8x512xf32>
    %423 = arith.addf %422, %258 : vector<8x512xf32>
    %cst_356 = arith.constant 0.000000e+00 : f32
    %424 = vector.broadcast %cst_356 : f32 to vector<8x512xf32>
    %425 = arith.maximumf %423, %424 : vector<8x512xf32>
    %c0_357 = arith.constant 0 : index
    %c0_358 = arith.constant 0 : index
    %426 = vector.load %arg11[%c0_357, %c0_358] : memref<8x512xf32, #tpu.memory_space<vmem>>, vector<8x512xf32>
    tpu.vector_store %arg11[%c0_357, %c0_358], %425 {strides = array<i32>} : memref<8x512xf32, #tpu.memory_space<vmem>>, vector<8x512xf32>,
    return
  }
  func.func @transform_0(%arg0: i32) -> (i32, i32) {
    %c0_i32 = arith.constant 0 : i32
    %c0_i32_0 = arith.constant 0 : i32
    %c0_i32_1 = arith.constant 0 : i32
    return %c0_i32, %c0_i32_0 : i32, i32
  }
  func.func @transform_1(%arg0: i32) -> (i32, i32) {
    %c0_i32 = arith.constant 0 : i32
    %c0_i32_0 = arith.constant 0 : i32
    %c0_i32_1 = arith.constant 0 : i32
    return %c0_i32, %c0_i32_0 : i32, i32
  }
  func.func @transform_2(%arg0: i32) -> (i32, i32, i32) {
    %c0_i32 = arith.constant 0 : i32
    %c0_i32_0 = arith.constant 0 : i32
    %c0_i32_1 = arith.constant 0 : i32
    %c0_i32_2 = arith.constant 0 : i32
    return %c0_i32, %c0_i32_0, %c0_i32_1 : i32, i32, i32
  }
  func.func @transform_3(%arg0: i32) -> (i32, i32) {
    %c0_i32 = arith.constant 0 : i32
    %c0_i32_0 = arith.constant 0 : i32
    %c0_i32_1 = arith.constant 0 : i32
    return %c0_i32, %c0_i32_0 : i32, i32
  }
  func.func @transform_4(%arg0: i32) -> (i32, i32, i32) {
    %c0_i32 = arith.constant 0 : i32
    %c0_i32_0 = arith.constant 0 : i32
    %c0_i32_1 = arith.constant 0 : i32
    %c0_i32_2 = arith.constant 0 : i32
    return %c0_i32, %c0_i32_0, %c0_i32_1 : i32, i32, i32
  }
  func.func @transform_5(%arg0: i32) -> (i32, i32, i32) {
    %c0_i32 = arith.constant 0 : i32
    %c0_i32_0 = arith.constant 0 : i32
    %c0_i32_1 = arith.constant 0 : i32
    %c0_i32_2 = arith.constant 0 : i32
    return %c0_i32, %c0_i32_0, %c0_i32_1 : i32, i32, i32
  }
  func.func @transform_6(%arg0: i32) -> (i32, i32, i32) {
    %c0_i32 = arith.constant 0 : i32
    %c0_i32_0 = arith.constant 0 : i32
    %c0_i32_1 = arith.constant 0 : i32
    %c0_i32_2 = arith.constant 0 : i32
    return %c0_i32, %c0_i32_0, %c0_i32_1 : i32, i32, i32
  }
  func.func @transform_7(%arg0: i32) -> (i32, i32, i32) {
    %c0_i32 = arith.constant 0 : i32
    %c0_i32_0 = arith.constant 0 : i32
    %c0_i32_1 = arith.constant 0 : i32
    %c0_i32_2 = arith.constant 0 : i32
    return %c0_i32, %c0_i32_0, %c0_i32_1 : i32, i32, i32
  }
  func.func @transform_8(%arg0: i32) -> (i32, i32, i32) {
    %c0_i32 = arith.constant 0 : i32
    %c0_i32_0 = arith.constant 0 : i32
    %c0_i32_1 = arith.constant 0 : i32
    %c0_i32_2 = arith.constant 0 : i32
    return %c0_i32, %c0_i32_0, %c0_i32_1 : i32, i32, i32
  }
  func.func @transform_9(%arg0: i32) -> (i32, i32, i32) {
    %c0_i32 = arith.constant 0 : i32
    %c0_i32_0 = arith.constant 0 : i32
    %c0_i32_1 = arith.constant 0 : i32
    %c0_i32_2 = arith.constant 0 : i32
    return %c0_i32, %c0_i32_0, %c0_i32_1 : i32, i32, i32
  }
  func.func @transform_10(%arg0: i32) -> (i32, i32) {
    %c0_i32 = arith.constant 0 : i32
    %c0_i32_0 = arith.constant 0 : i32
    %c0_i32_1 = arith.constant 0 : i32
    return %c0_i32, %c0_i32_0 : i32, i32
  }
}

</mosaic_0001>

<bundles_post_ra>
// kernel: feature_aggregator_forward.1
= control target key start
LH: loop header
LB: loop body
LE: loop exit
PB: predicated region body
PF: predicated region fallthrough
CT: control target
= control target key end

     0   :  { %s5299_s17 = smov 16   ;;  %s5300_s18 = smov 17   ;;  %v52_v7 = vlaneseq  ;;  %vm104_vm2 = vcmask 64512   ;;  %vm1083_vm9 = vcmask 130048   ;;  %s7109_s0 = inlined_call_operand.vmem [shape: f32[8,512], index: 0, kind: input, shape index: {}]   ;;  %s7110_s9 = inlined_call_operand.vmem [shape: f32[9,1,512], index: 9, kind: input, shape index: {}]   ;;  %s7111_s2 = inlined_call_operand.vmem [shape: f32[9,8,8], index: 2, kind: input, shape index: {}]   ;;  %s7112_s8 = inlined_call_operand.vmem [shape: f32[6,8,1], index: 8, kind: input, shape index: {}]   ;;  %s7113_s1 = inlined_call_operand.vmem [shape: f32[8,512], index: 1, kind: input, shape index: {}]   ;;  %s7114_s3 = inlined_call_operand.vmem [shape: f32[8,16], index: 3, kind: input, shape index: {}]   ;;  %s7115_s4 = inlined_call_operand.vmem [shape: f32[9,8,16], index: 4, kind: input, shape index: {}]   ;;  %s7116_s5 = inlined_call_operand.vmem [shape: f32[9,8,8], index: 5, kind: input, shape index: {}]   ;;  %s7117_s6 = inlined_call_operand.vmem [shape: f32[9,8,8], index: 6, kind: input, shape index: {}]   ;;  %s7118_s7 = inlined_call_operand.vmem [shape: f32[9,8,8], index: 7, kind: input, shape index: {}]   ;;  %s7119_s10 = inlined_call_operand.vmem [shape: f32[8,512], index: 10, kind: output, shape index: {}]  }
   0x1   :  { %v5366_v0 = vld [vmem:[%s7109_s0 + $0x18] sm:$0xff]  ;;  %v5371_v1 = vld [vmem:[%s7109_s0 + $0x8] sm:$0xff]  ;;  %v5382_v2 = vld [vmem:[%s7109_s0 + $0x10] sm:$0xff]  ;;  %s5301_s23 = smov 15   ;;  %s5303_s24 = smov 127  }
   0x2   :  { %80 = vrot.lane.b32.xlu1 %v5366_v0, %s5299_s17  ;;  %76 = vrot.lane.b32.xlu0 %v5371_v1, %s5299_s17  ;;  %v5387_v3 = vld [vmem:[%s7109_s0] sm:$0xff]  ;;  %s5302_s0 = smov 1   ;;  %s5304_s25 = smov 113   ;;  %v5449_v10 = vand.u32 127, %v52_v7  ;;  %v5061_v30 = vld [vmem:[%s7110_s9 + $0x8] sm:$0xf] }
   0x3   :  { %46 = vrot.lane.b32.xlu2 %v5371_v1, %s5300_s18  ;;  %s5305_s26 = smov 112   ;;  %s5306_s27 = smov 111   ;;  %v5051_v11 = vld [vmem:[%s7110_s9 + $0x4] sm:$0xf]  ;;  %v59_v12 = vld [vmem:[%s7110_s9] sm:$0xf] }
   0x4   :  { %vm82_vm0 = vcmp.lt.s32.totalorder %v5449_v10, 16  ;;  %vm54_vm1 = vcmp.lt.s32.totalorder %v5449_v10, 17  ;;  %v5461_v14 = vperm.slane %v5051_v11, 0  ;;  %v5463_v15 = vperm.slane %v5051_v11, 1  ;;  %v5052_v31 = vld [vmem:[%s7111_s2 + $0x8] sm:$0xff]  ;;  %v73_v48 = vld [vmem:[%s7111_s2] sm:$0xff] }
   0x5   :  { %v5465_v16 = vperm.slane %v5051_v11, 2  ;;  %v5467_v17 = vperm.slane %v5051_v11, 3  ;;  %v5469_v18 = vperm.slane %v59_v12, 2  ;;  %vm279_vm3 = vcmp.lt.s32.totalorder %v5449_v10, 15  ;;  %v5062_v61 = vld [vmem:[%s7111_s2 + $0x10] sm:$0xff] }
   0x6   :  { %7185 = vst [vmem:[#allocation2_spill] sm:$0xff] %v5461_v14  ;;  %v5493_v33 = vperm.slane %v5061_v30, 1  ;;  %v5497_v34 = vperm.slane %v59_v12, 0  ;;  %v5499_v35 = vperm.slane %v59_v12, 1  ;;  %v5501_v36 = vperm.slane %v59_v12, 3  ;;  %v5068_v12 = vld [vmem:[%s7111_s2 + $0x18] sm:$0xff] }
   0x7   :  { %7186 = vst [vmem:[#allocation3_spill] sm:$0xff] %v5463_v15  ;;  %v5526_v49 = vperm.slane %v5061_v30, 2  ;;  %v5528_v50 = vperm.slane %v5061_v30, 0  ;;  %v5530_v51 = vperm.slane %v5061_v30, 3  ;;  %v5067_v62 = vld [vmem:[%s7110_s9 + $0xc] sm:$0xf] }
   0x8   :  { %7187 = vst [vmem:[#allocation4_spill] sm:$0xff] %v5493_v33  ;;  %vm396_vm4 = vcmp.lt.s32.totalorder %v5449_v10, 1  ;;  %v5556_v63 = vperm.slane %v5067_v62, 2  ;;  %vm602_vm5 = vcmp.lt.s32.totalorder %v5449_v10, 127  ;;  %vm719_vm6 = vcmp.lt.s32.totalorder %v5449_v10, 113 }
   0x9   :  { %7188 = vst [vmem:[#allocation5_spill] sm:$0xff] %v5499_v35  ;;  %vm836_vm7 = vcmp.lt.s32.totalorder %v5449_v10, 112  ;;  %vm953_vm8 = vcmp.lt.s32.totalorder %v5449_v10, 111 }
   0xa   :  { %78 = vrot.lane.b32.xlu0 %v5382_v2, %s5299_s17  ;;  %74 = vrot.lane.b32.xlu1 %v5387_v3, %s5299_s17 }
   0xb   :  { %48 = vrot.lane.b32.xlu2 %v5382_v2, %s5300_s18 }
  0x12   :  { %50 = vrot.lane.b32.xlu0 %v5366_v0, %s5300_s18  ;;  %44 = vrot.lane.b32.xlu1 %v5387_v3, %s5300_s18 }
  0x13   :  { %273 = vrot.lane.b32.xlu2 %v5371_v1, %s5301_s23 }
  0x1a   :  { %275 = vrot.lane.b32.xlu0 %v5382_v2, %s5301_s23  ;;  %277 = vrot.lane.b32.xlu1 %v5366_v0, %s5301_s23 }
  0x1b   :  { %271 = vrot.lane.b32.xlu2 %v5387_v3, %s5301_s23 }
  0x22   :  { %390 = vrot.lane.b32.xlu0 %v5371_v1, %s5302_s0  ;;  %392 = vrot.lane.b32.xlu1 %v5382_v2, %s5302_s0 }
  0x23   :  { %394 = vrot.lane.b32.xlu2 %v5366_v0, %s5302_s0 }
  0x2a   :  { %388 = vrot.lane.b32.xlu0 %v5387_v3, %s5302_s0  ;;  %594 = vrot.lane.b32.xlu1 %v5387_v3, %s5303_s24 }
  0x2b   :  { %598 = vrot.lane.b32.xlu2 %v5382_v2, %s5303_s24 }
  0x32   :  { %600 = vrot.lane.b32.xlu0 %v5366_v0, %s5303_s24  ;;  %596 = vrot.lane.b32.xlu1 %v5371_v1, %s5303_s24 }
  0x33   :  { %711 = vrot.lane.b32.xlu2 %v5387_v3, %s5304_s25 }
  0x3a   :  { %715 = vrot.lane.b32.xlu0 %v5382_v2, %s5304_s25  ;;  %717 = vrot.lane.b32.xlu1 %v5366_v0, %s5304_s25 }
  0x3b   :  { %713 = vrot.lane.b32.xlu2 %v5371_v1, %s5304_s25 }
  0x42   :  { %828 = vrot.lane.b32.xlu0 %v5387_v3, %s5305_s26  ;;  %832 = vrot.lane.b32.xlu1 %v5382_v2, %s5305_s26 }
  0x43   :  { %834 = vrot.lane.b32.xlu2 %v5366_v0, %s5305_s26 }
  0x4a   :  { %830 = vrot.lane.b32.xlu0 %v5371_v1, %s5305_s26  ;;  %945 = vrot.lane.b32.xlu1 %v5387_v3, %s5306_s27 }
  0x4b   :  { %949 = vrot.lane.b32.xlu2 %v5382_v2, %s5306_s27 }
  0x52   :  { %951 = vrot.lane.b32.xlu0 %v5366_v0, %s5306_s27  ;;  %947 = vrot.lane.b32.xlu1 %v5371_v1, %s5306_s27 }
  0x5d   :  { %v47_v4 = vpop.permute.xlu2 %46 }
  0x65   :  { %v49_v5 = vpop.permute.xlu2 %48 }
  0x66   :  { %v56_v21 = vsel %vm54_vm1, %v47_v4, %v49_v5 }
  0x67   :  { %v71_v32 = vmul.f32 %v5469_v18, %v56_v21 }
  0x6d   :  { %v5447_v6 = vpop.permute.xlu2 %273 }
  0x74   :  { %v81_v8 = vpop.permute.xlu1 %80  ;;  %v77_v9 = vpop.permute.xlu0 %76 }
  0x75   :  { %v5459_v13 = vpop.permute.xlu2 %271 }
  0x76   :  { %v282_v37 = vsel %vm279_vm3, %v5459_v13, %v5447_v6 }
  0x77   :  { %v296_v44 = vmul.f32 %v5493_v33, %v282_v37 }
  0x7c   :  { %v79_v19 = vpop.permute.xlu0 %78  ;;  %v75_v20 = vpop.permute.xlu1 %74 }
  0x7d   :  { %v86_v22 = vsel %vm82_vm0, %v81_v8, %v75_v20  ;;  %v85_v23 = vsel %vm82_vm0, %v75_v20, %v77_v9  ;;  %v84_v24 = vsel %vm82_vm0, %v77_v9, %v79_v19  ;;  %v83_v25 = vsel %vm82_vm0, %v79_v19, %v81_v8  ;;  %v5508_v38 = vpop.permute.xlu2 %394 }
  0x7e   :  { %v98_v26 = vmul.f32 %v5461_v14, %v86_v22  ;;  %v99_v27 = vmul.f32 %v5463_v15, %v85_v23  ;;  %v100_v28 = vmul.f32 %v5465_v16, %v84_v24  ;;  %v101_v29 = vmul.f32 %v5467_v17, %v83_v25  ;;  %v5073_v25 = vld [vmem:[%s7111_s2 + $0x20] sm:$0xff] }
  0x7f   :  { %v5577_v19 = vperm.slane %v5067_v62, 0  ;;  %v5579_v20 = vperm.slane %v5067_v62, 1 }
  0x80   :  { %123 = vmatpush.msra.mxu0 %v98_v26  ;;  %143 = vmatpush.msra.mxu1 %v99_v27  ;;  %v5078_v26 = vld [vmem:[%s7110_s9 + $0x14] sm:$0xf]  ;;  %v5084_v27 = vld [vmem:[%s7110_s9 + $0x18] sm:$0xf] }
  0x81   :  { %163 = vmatpush.msra.mxu2 %v100_v28  ;;  %183 = vmatpush.msra.mxu3 %v101_v29  ;;  %7190 = vst [vmem:[#allocation7_spill] sm:$0xff] %v5577_v19  ;;  %v5603_v29 = vperm.slane %v5078_v26, 2  ;;  %v5605_v30 = vperm.slane %v5078_v26, 3  ;;  %v5613_v37 = vperm.slane %v5084_v27, 0 }
  0x82   :  { %5054 = vmatmul.msk.f32.vlgmr.msra.gmra.mxu1 %vm104_vm2, %v5052_v31  ;;  %5055 = vmatmul.msk.f32.vlgmr.msra.gmra.mxu2 %vm104_vm2, %v5052_v31  ;;  %7191 = vst [vmem:[#allocation8_spill] sm:$0xff] %v5579_v20 }
  0x83   :  { %246 = vmatpush.msrb.mxu2 %v71_v32  ;;  %5053 = vmatmul.msk.f32.vlgmr.msra.gmra.mxu0 %vm104_vm2, %v5052_v31  ;;  %7192 = vst [vmem:[#allocation9_spill] sm:$0xff] %v5603_v29  ;;  %v5609_v32 = vperm.slane %v5078_v26, 1 }
  0x84   :  { %v51_v39 = vpop.permute.xlu0 %50  ;;  %v45_v40 = vpop.permute.xlu1 %44  ;;  %5056 = vmatmul.msk.f32.vlgmr.msra.gmra.mxu3 %vm104_vm2, %v5052_v31  ;;  %7193 = vst [vmem:[#allocation10_spill] sm:$0xff] %v5605_v30  ;;  %v5607_v31 = vperm.slane %v5078_v26, 0 }
  0x85   :  { %v58_v41 = vsel %vm54_vm1, %v51_v39, %v45_v40  ;;  %v57_v42 = vsel %vm54_vm1, %v45_v40, %v47_v4  ;;  %v55_v43 = vsel %vm54_vm1, %v49_v5, %v51_v39  ;;  %v5542_v57 = vpop.permute.xlu2 %598  ;;  %v5558_v4 = vperm.slane %v5067_v62, 3  ;;  %7195 = vst [vmem:[#allocation12_spill] sm:$0xff] %v5609_v32 }
  0x86   :  { %v69_v45 = vmul.f32 %v5497_v34, %v58_v41  ;;  %v70_v46 = vmul.f32 %v5499_v35, %v57_v42  ;;  %v72_v47 = vmul.f32 %v5501_v36, %v55_v43  ;;  %7194 = vst [vmem:[#allocation11_spill] sm:$0xff] %v5607_v31 }
  0x87   :  { %7189 = vst [vmem:[#allocation6_spill] sm:$0xff] %v5558_v4 }
  0x88   :  { %206 = vmatpush.msrb.mxu0 %v69_v45  ;;  %226 = vmatpush.msrb.mxu1 %v70_v46  ;;  %7196 = vst [vmem:[#allocation13_spill] sm:$0xff] %v5613_v37 }
  0x89   :  { %266 = vmatpush.msrb.mxu3 %v72_v47 }
  0x8a   :  { %339 = vmatpush.msra.mxu1 %v296_v44  ;;  %5059 = vmatmul.msk.f32.vlgmr.msrb.gmra.mxu2 %vm104_vm2, %v73_v48 }
  0x8b   :  { %5058 = vmatmul.msk.f32.vlgmr.msrb.gmra.mxu1 %vm104_vm2, %v73_v48  ;;  %5057 = vmatmul.msk.f32.vlgmr.msrb.gmra.mxu0 %vm104_vm2, %v73_v48 }
  0x8c   :  { %v276_v52 = vpop.permute.xlu0 %275  ;;  %v278_v53 = vpop.permute.xlu1 %277  ;;  %5060 = vmatmul.msk.f32.vlgmr.msrb.gmra.mxu3 %vm104_vm2, %v73_v48  ;;  %v5079_v48 = vld [vmem:[%s7111_s2 + $0x28] sm:$0xff] }
  0x8d   :  { %v281_v54 = vsel %vm279_vm3, %v5447_v6, %v276_v52  ;;  %v280_v55 = vsel %vm279_vm3, %v276_v52, %v278_v53  ;;  %v283_v56 = vsel %vm279_vm3, %v278_v53, %v5459_v13  ;;  %v5572_v13 = vpop.permute.xlu2 %711  ;;  %v5639_v52 = vperm.slane %v5084_v27, 1 }
  0x8e   :  { %v297_v58 = vmul.f32 %v5526_v49, %v281_v54  ;;  %v295_v59 = vmul.f32 %v5528_v50, %v283_v56  ;;  %v298_v60 = vmul.f32 %v5530_v51, %v280_v55  ;;  %v5641_v53 = vperm.slane %v5084_v27, 2  ;;  %v43_v55 = vld [vmem:[%s7112_s8] sm:$0xff] }
  0x8f   :  { %7197 = vst [vmem:[#allocation14_spill] sm:$0xff] %v5639_v52  ;;  %v5643_v54 = vperm.slane %v5084_v27, 3 }
  0x90   :  { %319 = vmatpush.msra.mxu0 %v295_v59  ;;  %359 = vmatpush.msra.mxu2 %v297_v58  ;;  %7198 = vst [vmem:[#allocation15_spill] sm:$0xff] %v5641_v53  ;;  %v5307_v58 = vmov 0  }
  0x91   :  { %379 = vmatpush.msra.mxu3 %v298_v60  ;;  %7199 = vst [vmem:[#allocation16_spill] sm:$0xff] %v5643_v54  ;;  %5296 = vset.pattern.permute.xlu2 %v5307_v58 }
  0x92   :  { %5065 = vmatmul.msk.f32.vlgmr.msra.gmra.mxu2 %vm104_vm2, %v5062_v61  ;;  %1064 = vperm.xlu2 %5296, %v43_v55  }
  0x93   :  { %5064 = vmatmul.msk.f32.vlgmr.msra.gmra.mxu1 %vm104_vm2, %v5062_v61  ;;  %5063 = vmatmul.msk.f32.vlgmr.msra.gmra.mxu0 %vm104_vm2, %v5062_v61 }
  0x94   :  { %v391_v5 = vpop.permute.xlu0 %390  ;;  %v393_v6 = vpop.permute.xlu1 %392  ;;  %5066 = vmatmul.msk.f32.vlgmr.msra.gmra.mxu3 %vm104_vm2, %v5062_v61  ;;  %5297 = vset.pattern.permute.xlu1 %v5307_v58 }
  0x95   :  { %v397_v7 = vsel %vm396_vm4, %v393_v6, %v5508_v38  ;;  %v398_v8 = vsel %vm396_vm4, %v391_v5, %v393_v6  ;;  %v714_v28 = vpop.permute.xlu2 %713  ;;  %5298 = vset.pattern.permute.xlu0 %v5307_v58 }
  0x96   :  { %v414_v9 = vmul.f32 %v5556_v63, %v398_v8  ;;  %v415_v11 = vmul.f32 %v5558_v4, %v397_v7  ;;  %v722_v40 = vsel %vm719_vm6, %v5572_v13, %v714_v28  ;;  %v5090_v7 = vld [vmem:[%s7110_s9 + $0x1c] sm:$0xf]  ;;  %v5085_v8 = vld [vmem:[%s7111_s2 + $0x30] sm:$0xff] }
  0x97   :  { %v735_v47 = vmul.f32 %v5613_v37, %v722_v40  ;;  %v5688_v26 = vperm.slane %v5090_v7, 1 }
  0x98   :  { %476 = vmatpush.msrb.mxu2 %v414_v9  ;;  %496 = vmatpush.msrb.mxu3 %v415_v11  ;;  %v5669_v9 = vperm.slane %v5090_v7, 3 }
  0x99   :  { %7203 = vst [vmem:[#allocation20_spill] sm:$0xff] %v5688_v26 }
  0x9a   :  { %565 = vmatpush.msra.mxu2 %v5382_v2  ;;  %585 = vmatpush.msra.mxu3 %v5366_v0  ;;  %7200 = vst [vmem:[#allocation17_spill] sm:$0xff] %v5669_v9 }
  0x9b   :  { %5071 = vmatmul.msk.f32.vlgmr.msrb.gmra.mxu2 %vm104_vm2, %v5068_v12 }
  0x9c   :  { %v389_v21 = vpop.permute.xlu0 %388  ;;  %v595_v22 = vpop.permute.xlu1 %594  ;;  %5072 = vmatmul.msk.f32.vlgmr.msrb.gmra.mxu3 %vm104_vm2, %v5068_v12 }
  0x9d   :  { %v399_v23 = vsel %vm396_vm4, %v389_v21, %v391_v5  ;;  %v400_v24 = vsel %vm396_vm4, %v5508_v38, %v389_v21  ;;  %v835_v11 = vpop.permute.xlu2 %834 }
  0x9e   :  { %v412_v2 = vmul.f32 %v5577_v19, %v400_v24  ;;  %v413_v0 = vmul.f32 %v5579_v20, %v399_v23 }
  0xa0   :  { %436 = vmatpush.msrb.mxu0 %v412_v2  ;;  %456 = vmatpush.msrb.mxu1 %v413_v0  ;;  %v5091_v0 = vld [vmem:[%s7111_s2 + $0x38] sm:$0xff] }
  0xa1   :  { %5069 = vmatmul.msk.f32.vlgmr.msrb.gmra.mxu0 %vm104_vm2, %v5068_v12  ;;  %5070 = vmatmul.msk.f32.vlgmr.msrb.gmra.mxu1 %vm104_vm2, %v5068_v12  ;;  %v5671_v12 = vperm.slane %v5090_v7, 2 }
  0xa2   :  { %525 = vmatpush.msra.mxu0 %v5387_v3  ;;  %545 = vmatpush.msra.mxu1 %v5371_v1 }
  0xa3   :  { %5076 = vmatmul.msk.f32.vlgmr.msra.gmra.mxu2 %vm104_vm2, %v5073_v25  ;;  %7201 = vst [vmem:[#allocation18_spill] sm:$0xff] %v5671_v12 }
  0xa4   :  { %v601_v38 = vpop.permute.xlu0 %600  ;;  %v597_v39 = vpop.permute.xlu1 %596  ;;  %5077 = vmatmul.msk.f32.vlgmr.msra.gmra.mxu3 %vm104_vm2, %v5073_v25 }
  0xa5   :  { %v603_v41 = vsel %vm602_vm5, %v5542_v57, %v601_v38  ;;  %v606_v42 = vsel %vm602_vm5, %v601_v38, %v595_v22  ;;  %v604_v1 = vsel %vm602_vm5, %v597_v39, %v5542_v57  ;;  %v605_v3 = vsel %vm602_vm5, %v595_v22, %v597_v39 }
  0xa6   :  { %v620_v43 = vmul.f32 %v5603_v29, %v603_v41  ;;  %v621_v44 = vmul.f32 %v5605_v30, %v606_v42  ;;  %v618_v45 = vmul.f32 %v5607_v31, %v605_v3  ;;  %v619_v46 = vmul.f32 %v5609_v32, %v604_v1  ;;  %v5096_v42 = vld [vmem:[%s7110_s9 + $0x20] sm:$0xf] }
  0xa7   :  { %v5704_v1 = vperm.slane %v5096_v42, 3  ;;  %v5706_v3 = vperm.slane %v5096_v42, 2 }
  0xa8   :  { %642 = vmatpush.msrb.mxu0 %v618_v45  ;;  %662 = vmatpush.msrb.mxu1 %v619_v46  ;;  %v5710_v45 = vperm.slane %v5096_v42, 1 }
  0xa9   :  { %682 = vmatpush.msrb.mxu2 %v620_v43  ;;  %702 = vmatpush.msrb.mxu3 %v621_v44  ;;  %7204 = vst [vmem:[#allocation21_spill] sm:$0xff] %v5704_v1  ;;  %v950_v43 = vpop.permute.xlu2 %949  ;;  %v5708_v44 = vperm.slane %v5096_v42, 0 }
  0xaa   :  { %5074 = vmatmul.msk.f32.vlgmr.msra.gmra.mxu0 %vm104_vm2, %v5073_v25  ;;  %5075 = vmatmul.msk.f32.vlgmr.msra.gmra.mxu1 %vm104_vm2, %v5073_v25  ;;  %v5686_v25 = vperm.slane %v5090_v7, 0  ;;  %7205 = vst [vmem:[#allocation22_spill] sm:$0xff] %v5706_v3  ;;  %v5747_v7 = vld [vmem:[%s7113_s1 + $0x18] sm:$0xff] }
  0xab   :  { %5082 = vmatmul.msk.f32.vlgmr.msrb.gmra.mxu2 %vm104_vm2, %v5079_v48  ;;  %759 = vmatpush.msra.mxu0 %v735_v47  ;;  %7206 = vst [vmem:[#allocation23_spill] sm:$0xff] %v5708_v44 }
  0xac   :  { %v716_v56 = vpop.permute.xlu0 %715  ;;  %v718_v57 = vpop.permute.xlu1 %717  ;;  %5083 = vmatmul.msk.f32.vlgmr.msrb.gmra.mxu3 %vm104_vm2, %v5079_v48  ;;  %7202 = vst [vmem:[#allocation19_spill] sm:$0xff] %v5686_v25  ;;  %1216 = vrot.lane.b32.xlu2 %v5747_v7, %s5299_s17 }
  0xad   :  { %v721_v59 = vsel %vm719_vm6, %v714_v28, %v716_v56  ;;  %v720_v60 = vsel %vm719_vm6, %v716_v56, %v718_v57  ;;  %v723_v61 = vsel %vm719_vm6, %v718_v57, %v5572_v13  ;;  %7207 = vst [vmem:[#allocation24_spill] sm:$0xff] %v5710_v45 }
  0xae   :  { %v736_v62 = vmul.f32 %v5639_v52, %v721_v59  ;;  %v737_v5 = vmul.f32 %v5641_v53, %v720_v60  ;;  %v738_v6 = vmul.f32 %v5643_v54, %v723_v61 }
  0xb0   :  { %779 = vmatpush.msra.mxu1 %v736_v62  ;;  %799 = vmatpush.msra.mxu2 %v737_v5  ;;  %v5097_v62 = vld [vmem:[%s7111_s2 + $0x40] sm:$0xff]  ;;  %v5734_v5 = vld [vmem:[%s7113_s1 + $0x8] sm:$0xff] }
  0xb1   :  { %819 = vmatpush.msra.mxu3 %v738_v6  ;;  %1208 = vrot.lane.b32.xlu0 %v5734_v5, %s5299_s17  ;;  %v5742_v6 = vld [vmem:[%s7113_s1] sm:$0xff] }
  0xb2   :  { %5080 = vmatmul.msk.f32.vlgmr.msrb.gmra.mxu0 %vm104_vm2, %v5079_v48  ;;  %5081 = vmatmul.msk.f32.vlgmr.msrb.gmra.mxu1 %vm104_vm2, %v5079_v48 }
  0xb3   :  { %5088 = vmatmul.msk.f32.vlgmr.msra.gmra.mxu2 %vm104_vm2, %v5085_v8 }
  0xb4   :  { %v829_v13 = vpop.permute.xlu0 %828  ;;  %v833_v21 = vpop.permute.xlu1 %832  ;;  %5089 = vmatmul.msk.f32.vlgmr.msra.gmra.mxu3 %vm104_vm2, %v5085_v8 }
  0xb5   :  { %v840_v22 = vsel %vm836_vm7, %v835_v11, %v829_v13  ;;  %v837_v23 = vsel %vm836_vm7, %v833_v21, %v835_v11 }
  0xb6   :  { %v855_v24 = vmul.f32 %v5669_v9, %v840_v22  ;;  %v854_v2 = vmul.f32 %v5671_v12, %v837_v23 }
  0xb8   :  { %916 = vmatpush.msrb.mxu2 %v854_v2  ;;  %936 = vmatpush.msrb.mxu3 %v855_v24 }
  0xb9   :  { %1204 = vrot.lane.b32.xlu0 %v5742_v6, %s5299_s17 }
  0xba   :  { %5086 = vmatmul.msk.f32.vlgmr.msra.gmra.mxu0 %vm104_vm2, %v5085_v8  ;;  %5087 = vmatmul.msk.f32.vlgmr.msra.gmra.mxu1 %vm104_vm2, %v5085_v8  ;;  %v5752_v8 = vld [vmem:[%s7113_s1 + $0x10] sm:$0xff] }
  0xbb   :  { %5094 = vmatmul.msk.f32.vlgmr.msrb.gmra.mxu2 %vm104_vm2, %v5091_v0  ;;  %1212 = vrot.lane.b32.xlu1 %v5752_v8, %s5299_s17 }
  0xbc   :  { %v831_v27 = vpop.permute.xlu0 %830  ;;  %v946_v28 = vpop.permute.xlu1 %945  ;;  %5095 = vmatmul.msk.f32.vlgmr.msrb.gmra.mxu3 %vm104_vm2, %v5091_v0  ;;  %1179 = vrot.lane.b32.xlu2 %v5752_v8, %s5300_s18 }
  0xbd   :  { %v838_v38 = vsel %vm836_vm7, %v831_v27, %v833_v21  ;;  %v839_v39 = vsel %vm836_vm7, %v829_v13, %v831_v27 }
  0xbe   :  { %v852_v40 = vmul.f32 %v5686_v25, %v839_v39  ;;  %v853_v41 = vmul.f32 %v5688_v26, %v838_v38 }
  0xc0   :  { %876 = vmatpush.msrb.mxu0 %v852_v40  ;;  %896 = vmatpush.msrb.mxu1 %v853_v41 }
  0xc1   :  { %1183 = vrot.lane.b32.xlu0 %v5747_v7, %s5300_s18 }
  0xc2   :  { %5092 = vmatmul.msk.f32.vlgmr.msrb.gmra.mxu0 %vm104_vm2, %v5091_v0  ;;  %5093 = vmatmul.msk.f32.vlgmr.msrb.gmra.mxu1 %vm104_vm2, %v5091_v0 }
  0xc3   :  { %1175 = vrot.lane.b32.xlu1 %v5734_v5, %s5300_s18 }
  0xc4   :  { %v952_v46 = vpop.permute.xlu0 %951  ;;  %v948_v47 = vpop.permute.xlu1 %947  ;;  %1171 = vrot.lane.b32.xlu2 %v5742_v6, %s5300_s18 }
  0xc5   :  { %v957_v48 = vsel %vm953_vm8, %v952_v46, %v946_v28  ;;  %v954_v55 = vsel %vm953_vm8, %v950_v43, %v952_v46  ;;  %v955_v56 = vsel %vm953_vm8, %v948_v47, %v950_v43  ;;  %v956_v57 = vsel %vm953_vm8, %v946_v28, %v948_v47 }
  0xc6   :  { %v972_v58 = vmul.f32 %v5704_v1, %v957_v48  ;;  %v971_v59 = vmul.f32 %v5706_v3, %v954_v55  ;;  %v969_v60 = vmul.f32 %v5708_v44, %v956_v57  ;;  %v970_v61 = vmul.f32 %v5710_v45, %v955_v56 }
  0xc8   :  { %993 = vmatpush.msra.mxu0 %v969_v60  ;;  %1013 = vmatpush.msra.mxu1 %v970_v61 }
  0xc9   :  { %1033 = vmatpush.msra.mxu2 %v971_v59  ;;  %1053 = vmatpush.msra.mxu3 %v972_v58 }
  0xca   :  { %5098 = vmatmul.msk.f32.vlgmr.msra.gmra.mxu0 %vm104_vm2, %v5097_v62  ;;  %5099 = vmatmul.msk.f32.vlgmr.msra.gmra.mxu1 %vm104_vm2, %v5097_v62 }
  0xcb   :  { %5100 = vmatmul.msk.f32.vlgmr.msra.gmra.mxu2 %vm104_vm2, %v5097_v62  ;;  %5101 = vmatmul.msk.f32.vlgmr.msra.gmra.mxu3 %vm104_vm2, %v5097_v62 }
  0xcc   :  { %1121 = vmatpush.msrb.mxu1 %v5734_v5  ;;  %1101 = vmatpush.msrb.mxu0 %v5742_v6 }
  0xcd   :  { %1141 = vmatpush.msrb.mxu2 %v5752_v8  ;;  %1161 = vmatpush.msrb.mxu3 %v5747_v7 }
  0xce   :  { %1416 = vrot.lane.b32.xlu0 %v5747_v7, %s5301_s23  ;;  %1408 = vrot.lane.b32.xlu1 %v5734_v5, %s5301_s23 }
  0xcf   :  { %1412 = vrot.lane.b32.xlu2 %v5752_v8, %s5301_s23 }
  0xd6   :  { %1529 = vrot.lane.b32.xlu0 %v5734_v5, %s5302_s0  ;;  %1404 = vrot.lane.b32.xlu1 %v5742_v6, %s5301_s23 }
  0xd7   :  { %1537 = vrot.lane.b32.xlu2 %v5747_v7, %s5302_s0 }
  0xde   :  { %1525 = vrot.lane.b32.xlu0 %v5742_v6, %s5302_s0  ;;  %1533 = vrot.lane.b32.xlu1 %v5752_v8, %s5302_s0 }
  0xdf   :  { %1735 = vrot.lane.b32.xlu2 %v5742_v6, %s5303_s24 }
  0xe6   :  { %1743 = vrot.lane.b32.xlu0 %v5752_v8, %s5303_s24  ;;  %1747 = vrot.lane.b32.xlu1 %v5747_v7, %s5303_s24 }
  0xe7   :  { %1739 = vrot.lane.b32.xlu2 %v5734_v5, %s5303_s24 }
  0xee   :  { %1868 = vrot.lane.b32.xlu0 %v5747_v7, %s5304_s25  ;;  %1856 = vrot.lane.b32.xlu1 %v5742_v6, %s5304_s25 }
  0xef   :  { %1864 = vrot.lane.b32.xlu2 %v5752_v8, %s5304_s25 }
  0xf6   :  { %1860 = vrot.lane.b32.xlu1 %v5734_v5, %s5304_s25 }
  0xff   :  { %v145_v11 = vpop.f32.mrf.mxu1 }
 0x100   :  { %v125_v13 = vpop.f32.mrf.mxu0 }
 0x105   :  { %v165_v21 = vpop.f32.mrf.mxu2 }
 0x107   :  { %v185_v22 = vpop.f32.mrf.mxu3 }
 0x108   :  { %v228_v23 = vpop.f32.mrf.mxu1  ;;  %v208_v24 = vpop.f32.mrf.mxu0 }
 0x109   :  { %v209_v45 = vadd.f32 %v208_v24, %v125_v13  ;;  %v229_v44 = vadd.f32 %v228_v23, %v145_v11  ;;  %v1065_v23 = vpop.permute.xlu2 %1064 }
 0x10d   :  { %v248_v2 = vpop.f32.mrf.mxu2 }
 0x10e   :  { %v249_v61 = vadd.f32 %v248_v2, %v165_v21 }
 0x10f   :  { %v268_v0 = vpop.f32.mrf.mxu3 }
 0x110   :  { %v341_v28 = vpop.f32.mrf.mxu1  ;;  %v321_v38 = vpop.f32.mrf.mxu0  ;;  %v269_v60 = vadd.f32 %v268_v0, %v185_v22 }
 0x111   :  { %v385_v9 = vadd.f32 %v341_v28, %v229_v44  ;;  %v384_v26 = vadd.f32 %v321_v38, %v209_v45 }
 0x115   :  { %v361_v27 = vpop.f32.mrf.mxu2 }
 0x116   :  { %v386_v12 = vadd.f32 %v361_v27, %v249_v61 }
 0x117   :  { %v381_v39 = vpop.f32.mrf.mxu3 }
 0x118   :  { %v387_v1 = vadd.f32 %v381_v39, %v269_v60 }
 0x11e   :  { %v478_v40 = vpop.f32.mrf.mxu2  ;;  %v438_v41 = vpop.f32.mrf.mxu0 }
 0x11f   :  { %v458_v42 = vpop.f32.mrf.mxu1  ;;  %v498_v43 = vpop.f32.mrf.mxu3  ;;  %v501_v53 = vadd.f32 %v438_v41, %v384_v26  ;;  %v503_v30 = vadd.f32 %v478_v40, %v386_v12 }
 0x120   :  { %v504_v52 = vadd.f32 %v498_v43, %v387_v1  ;;  %v502_v37 = vadd.f32 %v458_v42, %v385_v9  ;;  %v1217_v42 = vpop.permute.xlu2 %1216 }
 0x126   :  { %v567_v48 = vpop.f32.mrf.mxu2 }
 0x127   :  { %v527_v46 = vpop.f32.mrf.mxu0  ;;  %v547_v47 = vpop.f32.mrf.mxu1  ;;  %v592_v0 = vadd.f32 %v567_v48, %v503_v30 }
 0x128   :  { %v587_v55 = vpop.f32.mrf.mxu3  ;;  %v590_v4 = vadd.f32 %v527_v46, %v501_v53  ;;  %v591_v19 = vadd.f32 %v547_v47, %v502_v37  ;;  %v1209_v47 = vpop.permute.xlu0 %1208 }
 0x129   :  { %v593_v22 = vadd.f32 %v587_v55, %v504_v52  ;;  %v5827_v48 = vpop.permute.xlu2 %1179 }
 0x12e   :  { %v684_v58 = vpop.f32.mrf.mxu2 }
 0x12f   :  { %v644_v56 = vpop.f32.mrf.mxu0  ;;  %v664_v57 = vpop.f32.mrf.mxu1  ;;  %v709_v1 = vadd.f32 %v684_v58, %v592_v0 }
 0x130   :  { %v704_v59 = vpop.f32.mrf.mxu3  ;;  %v707_v21 = vadd.f32 %v644_v56, %v590_v4  ;;  %v708_v2 = vadd.f32 %v664_v57, %v591_v19  ;;  %v1205_v55 = vpop.permute.xlu0 %1204 }
 0x131   :  { %v710_v11 = vadd.f32 %v704_v59, %v593_v22  ;;  %v1223_v56 = vsel %vm82_vm0, %v1205_v55, %v1209_v47  ;;  %v1225_v57 = vsel %vm82_vm0, %v1217_v42, %v1205_v55  ;;  %v1213_v58 = vpop.permute.xlu1 %1212 }
 0x132   :  { %v1230_v59 = vmul.f32 %v1225_v57, %v5461_v14  ;;  %v1231_v60 = vmul.f32 %v1223_v56, %v5463_v15  ;;  %v1219_v61 = vsel %vm82_vm0, %v1213_v58, %v1217_v42 }
 0x136   :  { %v801_v25 = vpop.f32.mrf.mxu2 }
 0x137   :  { %v761_v62 = vpop.f32.mrf.mxu0  ;;  %v781_v3 = vpop.f32.mrf.mxu1  ;;  %v826_v52 = vadd.f32 %v801_v25, %v709_v1 }
 0x138   :  { %v821_v54 = vpop.f32.mrf.mxu3  ;;  %v824_v13 = vadd.f32 %v761_v62, %v707_v21  ;;  %v825_v24 = vadd.f32 %v781_v3, %v708_v2  ;;  %v1221_v62 = vsel %vm82_vm0, %v1209_v47, %v1213_v58  ;;  %v1233_v21 = vmul.f32 %v1219_v61, %v5467_v17  ;;  %v5847_v2 = vpop.permute.xlu2 %1171 }
 0x139   :  { %v827_v39 = vadd.f32 %v821_v54, %v710_v11  ;;  %v1232_v22 = vmul.f32 %v1221_v62, %v5465_v16  ;;  %v5855_v0 = vpop.permute.xlu0 %1183  ;;  %v5108_v62 = vld [vmem:[%s7115_s4 + $0x8] sm:$0xff] }
 0x13a   :  { %v1192_v47 = vsel %vm54_vm1, %v5855_v0, %v5847_v2 }
 0x13e   :  { %v918_v44 = vpop.f32.mrf.mxu2 }
 0x13f   :  { %v878_v29 = vpop.f32.mrf.mxu0  ;;  %v898_v31 = vpop.f32.mrf.mxu1  ;;  %v943_v30 = vadd.f32 %v918_v44, %v826_v52 }
 0x140   :  { %v941_v45 = vadd.f32 %v878_v29, %v824_v13  ;;  %v942_v27 = vadd.f32 %v898_v31, %v825_v24  ;;  %v938_v28 = vpop.f32.mrf.mxu3  ;;  %v5857_v13 = vpop.permute.xlu1 %1175 }
 0x141   :  { %v944_v3 = vadd.f32 %v938_v28, %v827_v39  ;;  %v5865_v24 = vpop.permute.xlu2 %1412  ;;  %v1190_v57 = vsel %vm54_vm1, %v5847_v2, %v5857_v13 }
 0x147   :  { %v995_v26 = vpop.f32.mrf.mxu0  ;;  %v1015_v9 = vpop.f32.mrf.mxu1 }
 0x148   :  { %v1058_v12 = vadd.f32 %v995_v26, %v941_v45  ;;  %v1059_v38 = vadd.f32 %v1015_v9, %v942_v27  ;;  %v5867_v11 = vpop.permute.xlu1 %1408 }
 0x149   :  { %v5877_v44 = vpop.permute.xlu2 %1537 }
 0x14a   :  { %v1067_v53 = vadd.f32 %v1065_v23, %v1058_v12  ;;  %v1068_v37 = vadd.f32 %v1065_v23, %v1059_v38 }
 0x14c   :  { %v5803_v4 = vmax.f32 %v1067_v53, 0.0  ;;  %v5805_v19 = vmax.f32 %v1068_v37, 0.0 }
 0x14e   :  { %v1035_v40 = vpop.f32.mrf.mxu2  ;;  %v1055_v41 = vpop.f32.mrf.mxu3  ;;  %1202 = vrot.lane.b32.xlu1 %v5803_v4, %s5299_s17  ;;  %1102 = vmatpush.msrb.mxu0 %v5803_v4 }
 0x14f   :  { %v1060_v29 = vadd.f32 %v1035_v40, %v943_v30  ;;  %v1061_v31 = vadd.f32 %v1055_v41, %v944_v3  ;;  %1173 = vrot.lane.b32.xlu2 %v5805_v19, %s5300_s18  ;;  %1206 = vrot.lane.b32.xlu0 %v5805_v19, %s5299_s17  ;;  %v1075_v3 = vld [vmem:[%s7114_s3] sm:$0xff] }
 0x150   :  { %1122 = vmatpush.msrb.mxu1 %v5805_v19  ;;  %1253 = vmatpush.msra.mxu0 %v1230_v59  ;;  %v5879_v45 = vpop.permute.xlu1 %1404 }
 0x151   :  { %v1069_v54 = vadd.f32 %v1065_v23, %v1060_v29  ;;  %v1070_v25 = vadd.f32 %v1065_v23, %v1061_v31  ;;  %v5869_v23 = vpop.permute.xlu0 %1416  ;;  %v5891_v1 = vpop.permute.xlu2 %1735  ;;  %5104 = vmatmul.msk.f32.vlgmr.msrb.gmra.mxu1 %vm1083_vm9, %v1075_v3  ;;  %5103 = vmatmul.msk.f32.vlgmr.msrb.gmra.mxu0 %vm1083_vm9, %v1075_v3 }
 0x152   :  { %1273 = vmatpush.msra.mxu1 %v1231_v60 }
 0x153   :  { %v5815_v43 = vmax.f32 %v1069_v54, 0.0  ;;  %v5817_v46 = vmax.f32 %v1070_v25, 0.0 }
 0x155   :  { %1142 = vmatpush.msrb.mxu2 %v5815_v43  ;;  %1162 = vmatpush.msrb.mxu3 %v5817_v46 }
 0x156   :  { %1406 = vrot.lane.b32.xlu1 %v5805_v19, %s5301_s23  ;;  %5105 = vmatmul.msk.f32.vlgmr.msrb.gmra.mxu2 %vm1083_vm9, %v1075_v3 }
 0x157   :  { %1402 = vrot.lane.b32.xlu2 %v5803_v4, %s5301_s23  ;;  %1169 = vrot.lane.b32.xlu0 %v5803_v4, %s5300_s18 }
 0x158   :  { %1293 = vmatpush.msra.mxu2 %v1232_v22  ;;  %1313 = vmatpush.msra.mxu3 %v1233_v21  ;;  %v5889_v28 = vpop.permute.xlu1 %1533  ;;  %v1197_v22 = vmul.f32 %v1192_v47, %v5497_v34  ;;  %v1198_v21 = vmul.f32 %v1190_v57, %v5499_v35 }
 0x159   :  { %v5881_v27 = vpop.permute.xlu0 %1529  ;;  %v5903_v12 = vpop.permute.xlu2 %1739  ;;  %5106 = vmatmul.msk.f32.vlgmr.msrb.gmra.mxu3 %vm1083_vm9, %v1075_v3 }
 0x15e   :  { %1523 = vrot.lane.b32.xlu1 %v5803_v4, %s5302_s0 }
 0x15f   :  { %1733 = vrot.lane.b32.xlu2 %v5803_v4, %s5303_s24  ;;  %1527 = vrot.lane.b32.xlu0 %v5805_v19, %s5302_s0 }
 0x160   :  { %v5901_v9 = vpop.permute.xlu1 %1747 }
 0x161   :  { %v5899_v26 = vpop.permute.xlu0 %1525  ;;  %v1865_v53 = vpop.permute.xlu2 %1864 }
 0x166   :  { %1854 = vrot.lane.b32.xlu1 %v5803_v4, %s5304_s25 }
 0x167   :  { %1214 = vrot.lane.b32.xlu2 %v5817_v46, %s5299_s17  ;;  %1737 = vrot.lane.b32.xlu0 %v5805_v19, %s5303_s24 }
 0x168   :  { %v1857_v39 = vpop.permute.xlu1 %1856 }
 0x169   :  { %v5911_v38 = vpop.permute.xlu0 %1743 }
 0x16e   :  { %1210 = vrot.lane.b32.xlu1 %v5815_v43, %s5299_s17 }
 0x16f   :  { %1858 = vrot.lane.b32.xlu2 %v5805_v19, %s5304_s25  ;;  %1977 = vrot.lane.b32.xlu0 %v5742_v6, %s5305_s26 }
 0x170   :  { %v1861_v40 = vpop.permute.xlu1 %1860 }
 0x171   :  { %v1869_v37 = vpop.permute.xlu0 %1868  ;;  %v5934_v41 = vsel %vm719_vm6, %v1861_v40, %v1865_v53  ;;  %v5938_v29 = vsel %vm719_vm6, %v1857_v39, %v1861_v40 }
 0x172   :  { %v5921_v52 = vsel %vm719_vm6, %v1865_v53, %v1869_v37  ;;  %v5925_v30 = vsel %vm719_vm6, %v1869_v37, %v1857_v39  ;;  %v1423_v37 = vsel %vm279_vm3, %v5879_v45, %v5867_v11 }
 0x173   :  { %v1431_v57 = vmul.f32 %v1423_v37, %v5493_v33 }
 0x176   :  { %1181 = vrot.lane.b32.xlu1 %v5817_v46, %s5300_s18 }
 0x177   :  { %1410 = vrot.lane.b32.xlu2 %v5815_v43, %s5301_s23  ;;  %1177 = vrot.lane.b32.xlu0 %v5815_v43, %s5300_s18 }
 0x17e   :  { %1985 = vrot.lane.b32.xlu1 %v5752_v8, %s5305_s26 }
 0x17f   :  { %1535 = vrot.lane.b32.xlu2 %v5817_v46, %s5302_s0  ;;  %1414 = vrot.lane.b32.xlu0 %v5817_v46, %s5301_s23 }
 0x186   :  { %1531 = vrot.lane.b32.xlu1 %v5815_v43, %s5302_s0 }
 0x187   :  { %1989 = vrot.lane.b32.xlu2 %v5747_v7, %s5305_s26  ;;  %1975 = vrot.lane.b32.xlu0 %v5803_v4, %s5305_s26 }
 0x18e   :  { %1979 = vrot.lane.b32.xlu1 %v5805_v19, %s5305_s26 }
 0x18f   :  { %2098 = vrot.lane.b32.xlu2 %v5742_v6, %s5306_s27  ;;  %1981 = vrot.lane.b32.xlu0 %v5734_v5, %s5305_s26 }
 0x196   :  { %1745 = vrot.lane.b32.xlu1 %v5817_v46, %s5303_s24 }
 0x197   :  { %1862 = vrot.lane.b32.xlu2 %v5815_v43, %s5304_s25  ;;  %1741 = vrot.lane.b32.xlu0 %v5815_v43, %s5303_s24 }
 0x19e   :  { %2110 = vrot.lane.b32.xlu1 %v5747_v7, %s5306_s27 }
 0x19f   :  { %1987 = vrot.lane.b32.xlu2 %v5817_v46, %s5305_s26  ;;  %1866 = vrot.lane.b32.xlu0 %v5817_v46, %s5304_s25 }
 0x1a6   :  { %1983 = vrot.lane.b32.xlu1 %v5815_v43, %s5305_s26 }
 0x1a7   :  { %2096 = vrot.lane.b32.xlu2 %v5803_v4, %s5306_s27  ;;  %2106 = vrot.lane.b32.xlu0 %v5752_v8, %s5306_s27 }
 0x1a9   :  { %v5954_v31 = vpop.permute.xlu2 %1173 }
 0x1ae   :  { %2108 = vrot.lane.b32.xlu1 %v5817_v46, %s5306_s27 }
 0x1af   :  { %2102 = vrot.lane.b32.xlu2 %v5734_v5, %s5306_s27  ;;  %2104 = vrot.lane.b32.xlu0 %v5815_v43, %s5306_s27 }
 0x1b1   :  { %v5962_v54 = vpop.permute.xlu2 %1402 }
 0x1b7   :  { %2100 = vrot.lane.b32.xlu0 %v5805_v19, %s5306_s27 }
 0x1b9   :  { %v5966_v25 = vpop.permute.xlu2 %1733 }
 0x1c0   :  { %v1203_v42 = vpop.permute.xlu1 %1202 }
 0x1c1   :  { %v1215_v55 = vpop.permute.xlu2 %1214  ;;  %v1207_v56 = vpop.permute.xlu0 %1206 }
 0x1c2   :  { %v1222_v58 = vsel %vm82_vm0, %v1203_v42, %v1207_v56  ;;  %v1224_v59 = vsel %vm82_vm0, %v1215_v55, %v1203_v42  ;;  %v6004_v42 = vld [vmem:[%s7115_s4] sm:$0xff] }
 0x1c3   :  { %v1226_v60 = vmul.f32 %v1224_v59, %v5461_v14  ;;  %v1227_v61 = vmul.f32 %v1222_v58, %v5463_v15  ;;  %v1544_v58 = vsel %vm396_vm4, %v5899_v26, %v5881_v27 }
 0x1c5   :  { %1254 = vmatpush.msra.mxu0 %v1226_v60  ;;  %1274 = vmatpush.msra.mxu1 %v1227_v61  ;;  %v1552_v60 = vmul.f32 %v1544_v58, %v5579_v20 }
 0x1c6   :  { %5110 = vmatmul.msk.f32.vlgmr.msra.gmra.mxu1 %vm1083_vm9, %v5108_v62  ;;  %5109 = vmatmul.msk.f32.vlgmr.msra.gmra.mxu0 %vm1083_vm9, %v5108_v62 }
 0x1c7   :  { %1336 = vmatpush.msrb.mxu0 %v1197_v22  ;;  %1356 = vmatpush.msrb.mxu1 %v1198_v21 }
 0x1c8   :  { %v5989_v2 = vpop.permute.xlu1 %1406 }
 0x1c9   :  { %v5991_v39 = vpop.permute.xlu2 %1858  ;;  %v1170_v53 = vpop.permute.xlu0 %1169  ;;  %v1422_v47 = vsel %vm279_vm3, %v5962_v54, %v5989_v2 }
 0x1ca   :  { %v1189_v3 = vsel %vm54_vm1, %v1170_v53, %v5954_v31  ;;  %v1427_v59 = vmul.f32 %v1422_v47, %v5493_v33 }
 0x1cb   :  { %v1194_v40 = vmul.f32 %v1189_v3, %v5499_v35 }
 0x1cd   :  { %1357 = vmatpush.msrb.mxu1 %v1194_v40  ;;  %v6033_v40 = vld [vmem:[%s7115_s4 + $0x10] sm:$0xff] }
 0x1ce   :  { %5114 = vmatmul.msk.f32.vlgmr.msrb.gmra.mxu1 %vm1083_vm9, %v6004_v42 }
 0x1cf   :  { %1473 = vmatpush.msra.mxu1 %v1431_v57 }
 0x1d0   :  { %v6019_v61 = vpop.permute.xlu1 %1523 }
 0x1d1   :  { %1474 = vmatpush.msra.mxu1 %v1427_v59  ;;  %v6021_v22 = vpop.permute.xlu2 %1410  ;;  %v6023_v21 = vpop.permute.xlu0 %1527  ;;  %v1752_v59 = vsel %vm602_vm5, %v5903_v12, %v5911_v38 }
 0x1d2   :  { %v1543_v37 = vsel %vm396_vm4, %v6019_v61, %v6023_v21 }
 0x1d3   :  { %1594 = vmatpush.msrb.mxu1 %v1552_v60  ;;  %v1548_v3 = vmul.f32 %v1543_v37, %v5579_v20  ;;  %v6052_v60 = vld [vmem:[%s7115_s4 + $0x18] sm:$0xff]  ;;  %v1186_v37 = vsel %vm54_vm1, %v5827_v48, %v5855_v0 }
 0x1d4   :  { %v1200_v0 = vmul.f32 %v1186_v37, %v5501_v36  ;;  %v1419_v37 = vsel %vm279_vm3, %v5865_v24, %v5869_v23 }
 0x1d5   :  { %1595 = vmatpush.msrb.mxu1 %v1548_v3  ;;  %v1188_v3 = vsel %vm54_vm1, %v5857_v13, %v5827_v48  ;;  %v6080_v48 = vld [vmem:[%s7115_s4 + $0x20] sm:$0xff] }
 0x1d6   :  { %5119 = vmatmul.msk.f32.vlgmr.msra.gmra.mxu1 %vm1083_vm9, %v6033_v40  ;;  %v1199_v15 = vmul.f32 %v1188_v3, %v5469_v18 }
 0x1d7   :  { %1683 = vmatpush.msra.mxu1 %v5734_v5  ;;  %v1762_v5 = vmul.f32 %v1752_v59, %v5609_v32 }
 0x1d8   :  { %v6038_v47 = vpop.permute.xlu1 %1854 }
 0x1d9   :  { %1684 = vmatpush.msra.mxu1 %v5805_v19  ;;  %v6041_v57 = vpop.permute.xlu2 %1535  ;;  %v6043_v58 = vpop.permute.xlu0 %1737 }
 0x1de   :  { %5124 = vmatmul.msk.f32.vlgmr.msrb.gmra.mxu1 %vm1083_vm9, %v6052_v60 }
 0x1df   :  { %1804 = vmatpush.msrb.mxu1 %v1762_v5 }
 0x1e0   :  { %v1211_v19 = vpop.permute.xlu1 %1210 }
 0x1e1   :  { %v6065_v20 = vpop.permute.xlu2 %1989  ;;  %v6067_v33 = vpop.permute.xlu0 %1977  ;;  %v1218_v59 = vsel %vm82_vm0, %v1211_v19, %v1215_v55  ;;  %v1220_v5 = vsel %vm82_vm0, %v1207_v56, %v1211_v19 }
 0x1e2   :  { %v1228_v35 = vmul.f32 %v1220_v5, %v5465_v16  ;;  %v1229_v14 = vmul.f32 %v1218_v59, %v5467_v17  ;;  %v1420_v59 = vsel %vm279_vm3, %v5989_v2, %v6021_v22 }
 0x1e4   :  { %1294 = vmatpush.msra.mxu2 %v1228_v35  ;;  %1314 = vmatpush.msra.mxu3 %v1229_v14  ;;  %v1425_v35 = vsel %vm279_vm3, %v5869_v23, %v5879_v45  ;;  %v1433_v23 = vmul.f32 %v1419_v37, %v5530_v51 }
 0x1e5   :  { %5111 = vmatmul.msk.f32.vlgmr.msra.gmra.mxu2 %vm1083_vm9, %v5108_v62  ;;  %5112 = vmatmul.msk.f32.vlgmr.msra.gmra.mxu3 %vm1083_vm9, %v5108_v62 }
 0x1e6   :  { %1376 = vmatpush.msrb.mxu2 %v1199_v15  ;;  %1396 = vmatpush.msrb.mxu3 %v1200_v0 }
 0x1e7   :  { %5129 = vmatmul.msk.f32.vlgmr.msra.gmra.mxu1 %vm1083_vm9, %v6080_v48 }
 0x1e8   :  { %v1182_v13 = vpop.permute.xlu1 %1181 }
 0x1e9   :  { %v6086_v55 = vpop.permute.xlu2 %2098  ;;  %v1178_v56 = vpop.permute.xlu0 %1177  ;;  %v1191_v14 = vsel %vm54_vm1, %v1182_v13, %v1170_v53  ;;  %v1421_v53 = vsel %vm279_vm3, %v5867_v11, %v5865_v24  ;;  %v1542_v24 = vsel %vm396_vm4, %v5881_v27, %v5889_v28  ;;  %v1428_v11 = vmul.f32 %v1420_v59, %v5526_v49 }
 0x1ea   :  { %v1187_v15 = vsel %vm54_vm1, %v5954_v31, %v1178_v56  ;;  %v1185_v62 = vsel %vm54_vm1, %v1178_v56, %v1182_v13  ;;  %v1193_v19 = vmul.f32 %v1191_v14, %v5497_v34  ;;  %v1430_v31 = vmul.f32 %v1425_v35, %v5528_v50 }
 0x1eb   :  { %v1195_v45 = vmul.f32 %v1187_v15, %v5469_v18  ;;  %v1196_v3 = vmul.f32 %v1185_v62, %v5501_v36  ;;  %v1432_v5 = vmul.f32 %v1421_v53, %v5526_v49  ;;  %v1553_v0 = vmul.f32 %v1542_v24, %v5556_v63  ;;  %v7208_v62 = vld [vmem:[#allocation7_spill] sm:$0xff] }
 0x1ec   :  { %1337 = vmatpush.msrb.mxu0 %v1193_v19  ;;  %v1546_v27 = vsel %vm396_vm4, %v5877_v44, %v5899_v26  ;;  %v1540_v14 = vsel %vm396_vm4, %v5889_v28, %v5877_v44 }
 0x1ed   :  { %1377 = vmatpush.msrb.mxu2 %v1195_v45  ;;  %1397 = vmatpush.msrb.mxu3 %v1196_v3  ;;  %v1551_v19 = vmul.f32 %v1546_v27, %v7208_v62  ;;  %v1754_v3 = vsel %vm602_vm5, %v5891_v1, %v5903_v12  ;;  %v7210_v12 = vld [vmem:[#allocation11_spill] sm:$0xff] }
 0x1ee   :  { %5113 = vmatmul.msk.f32.vlgmr.msrb.gmra.mxu0 %vm1083_vm9, %v6004_v42  ;;  %5115 = vmatmul.msk.f32.vlgmr.msrb.gmra.mxu2 %vm1083_vm9, %v6004_v42  ;;  %v1761_v59 = vmul.f32 %v1754_v3, %v7210_v12 }
 0x1ef   :  { %5116 = vmatmul.msk.f32.vlgmr.msrb.gmra.mxu3 %vm1083_vm9, %v6004_v42  ;;  %1453 = vmatpush.msra.mxu0 %v1430_v31 }
 0x1f0   :  { %1493 = vmatpush.msra.mxu2 %v1432_v5  ;;  %1513 = vmatpush.msra.mxu3 %v1433_v23  ;;  %v6128_v2 = vpop.permute.xlu1 %1985 }
 0x1f1   :  { %v1415_v13 = vpop.permute.xlu0 %1414  ;;  %v6145_v35 = vpop.permute.xlu2 %1862 }
 0x1f2   :  { %1494 = vmatpush.msra.mxu2 %v1428_v11  ;;  %v1418_v42 = vsel %vm279_vm3, %v6021_v22, %v1415_v13  ;;  %v1424_v56 = vsel %vm279_vm3, %v1415_v13, %v5962_v54  ;;  %v1545_v22 = vsel %vm396_vm4, %v6041_v57, %v6019_v61  ;;  %v7209_v54 = vld [vmem:[#allocation6_spill] sm:$0xff]  ;;  %v7213_v11 = vld [vmem:[#allocation13_spill] sm:$0xff] }
 0x1f3   :  { %v1426_v15 = vmul.f32 %v1424_v56, %v5528_v50  ;;  %v1429_v26 = vmul.f32 %v1418_v42, %v5530_v51  ;;  %v1554_v37 = vmul.f32 %v1540_v14, %v7209_v54  ;;  %v1547_v44 = vmul.f32 %v1545_v22, %v7208_v62 }
 0x1f4   :  { %1614 = vmatpush.msrb.mxu2 %v1553_v0  ;;  %v1872_v22 = vsel %vm719_vm6, %v5991_v39, %v6145_v35 }
 0x1f5   :  { %1454 = vmatpush.msra.mxu0 %v1426_v15  ;;  %1514 = vmatpush.msra.mxu3 %v1429_v26  ;;  %v5132_v15 = vld [vmem:[%s7115_s4 + $0x28] sm:$0xff] }
 0x1f6   :  { %5118 = vmatmul.msk.f32.vlgmr.msra.gmra.mxu0 %vm1083_vm9, %v6033_v40  ;;  %5120 = vmatmul.msk.f32.vlgmr.msra.gmra.mxu2 %vm1083_vm9, %v6033_v40  ;;  %v7214_v26 = vld [vmem:[#allocation15_spill] sm:$0xff] }
 0x1f7   :  { %5121 = vmatmul.msk.f32.vlgmr.msra.gmra.mxu3 %vm1083_vm9, %v6033_v40  ;;  %1574 = vmatpush.msrb.mxu0 %v1551_v19  ;;  %v7215_v19 = vld [vmem:[#allocation14_spill] sm:$0xff] }
 0x1f8   :  { %1634 = vmatpush.msrb.mxu3 %v1554_v37  ;;  %v1532_v28 = vpop.permute.xlu1 %1531  ;;  %v1883_v37 = vmul.f32 %v5934_v41, %v7215_v19  ;;  %v5107_v41 = vld [vmem:[%s7112_s8 + $0x10] sm:$0xff]  ;;  %v1879_v3 = vmul.f32 %v1872_v22, %v7215_v19 }
 0x1f9   :  { %1575 = vmatpush.msrb.mxu0 %v1547_v44  ;;  %v6162_v61 = vpop.permute.xlu0 %1975  ;;  %v1539_v53 = vsel %vm396_vm4, %v1532_v28, %v6041_v57  ;;  %v1541_v45 = vsel %vm396_vm4, %v6023_v21, %v1532_v28  ;;  %v1750_v57 = vsel %vm602_vm5, %v5911_v38, %v5901_v9  ;;  %v1753_v21 = vsel %vm602_vm5, %v5966_v25, %v6043_v58 }
 0x1fa   :  { %v1549_v40 = vmul.f32 %v1541_v45, %v5556_v63  ;;  %v1550_v31 = vmul.f32 %v1539_v53, %v7209_v54  ;;  %v1756_v38 = vsel %vm602_vm5, %v5901_v9, %v5891_v1  ;;  %v1757_v5 = vmul.f32 %v1753_v21, %v7210_v12  ;;  %v7212_v1 = vld [vmem:[#allocation10_spill] sm:$0xff]  ;;  %v7217_v53 = vld [vmem:[#allocation19_spill] sm:$0xff]  ;;  %2219 = vperm.xlu1 %5297, %v5107_v41  }
 0x1fb   :  { %1663 = vmatpush.msra.mxu0 %v5742_v6  ;;  %v6187_v6 = vpop.permute.xlu2 %1987  ;;  %v1764_v9 = vmul.f32 %v1756_v38, %v7212_v1  ;;  %v1998_v38 = vsel %vm836_vm7, %v6065_v20, %v6067_v33 }
 0x1fc   :  { %1615 = vmatpush.msrb.mxu2 %v1549_v40  ;;  %1635 = vmatpush.msrb.mxu3 %v1550_v31  ;;  %v7218_v31 = vld [vmem:[#allocation20_spill] sm:$0xff] }
 0x1fd   :  { %1664 = vmatpush.msra.mxu0 %v5803_v4  ;;  %v7211_v4 = vld [vmem:[#allocation9_spill] sm:$0xff] }
 0x1fe   :  { %1703 = vmatpush.msra.mxu2 %v5752_v8  ;;  %5123 = vmatmul.msk.f32.vlgmr.msrb.gmra.mxu0 %vm1083_vm9, %v6052_v60  ;;  %v1763_v23 = vmul.f32 %v1750_v57, %v7211_v4 }
 0x1ff   :  { %5125 = vmatmul.msk.f32.vlgmr.msrb.gmra.mxu2 %vm1083_vm9, %v6052_v60  ;;  %5126 = vmatmul.msk.f32.vlgmr.msrb.gmra.mxu3 %vm1083_vm9, %v6052_v60  ;;  %v1874_v60 = vsel %vm719_vm6, %v6038_v47, %v5991_v39 }
 0x200   :  { %1784 = vmatpush.msrb.mxu0 %v1761_v59  ;;  %1723 = vmatpush.msra.mxu3 %v5747_v7  ;;  %v6204_v8 = vpop.permute.xlu1 %1979  ;;  %v1882_v7 = vmul.f32 %v5938_v29, %v7213_v11 }
 0x201   :  { %1704 = vmatpush.msra.mxu2 %v5815_v43  ;;  %v1982_v24 = vpop.permute.xlu0 %1981  ;;  %v1878_v43 = vmul.f32 %v1874_v60, %v7213_v11  ;;  %v1995_v28 = vsel %vm836_vm7, %v6162_v61, %v6204_v8  ;;  %v1997_v60 = vsel %vm836_vm7, %v6187_v6, %v6162_v61 }
 0x202   :  { %1785 = vmatpush.msrb.mxu0 %v1757_v5  ;;  %1724 = vmatpush.msra.mxu3 %v5817_v46  ;;  %v1994_v44 = vsel %vm836_vm7, %v1982_v24, %v6128_v2  ;;  %v1999_v21 = vmul.f32 %v1995_v28, %v7217_v53  ;;  %v7224_v28 = vld [vmem:[#allocation22_spill] sm:$0xff] }
 0x203   :  { %1824 = vmatpush.msrb.mxu2 %v1763_v23  ;;  %v6219_v0 = vpop.permute.xlu2 %2096  ;;  %v2004_v57 = vmul.f32 %v1994_v44, %v7218_v31 }
 0x204   :  { %1844 = vmatpush.msrb.mxu3 %v1764_v9  ;;  %v1992_v9 = vsel %vm836_vm7, %v6128_v2, %v6065_v20  ;;  %v7219_v20 = vld [vmem:[#allocation17_spill] sm:$0xff] }
 0x205   :  { %v2006_v2 = vmul.f32 %v1998_v38, %v7219_v20  ;;  %v2002_v61 = vmul.f32 %v1997_v60, %v7219_v20 }
 0x206   :  { %5128 = vmatmul.msk.f32.vlgmr.msra.gmra.mxu0 %vm1083_vm9, %v6080_v48 }
 0x207   :  { %5130 = vmatmul.msk.f32.vlgmr.msra.gmra.mxu2 %vm1083_vm9, %v6080_v48  ;;  %5131 = vmatmul.msk.f32.vlgmr.msra.gmra.mxu3 %vm1083_vm9, %v6080_v48 }
 0x208   :  { %1905 = vmatpush.msra.mxu0 %v1882_v7  ;;  %v1746_v46 = vpop.permute.xlu1 %1745  ;;  %v7220_v7 = vld [vmem:[#allocation18_spill] sm:$0xff] }
 0x209   :  { %v1742_v13 = vpop.permute.xlu0 %1741  ;;  %v1755_v29 = vsel %vm602_vm5, %v1746_v46, %v5966_v25  ;;  %v1996_v25 = vsel %vm836_vm7, %v6067_v33, %v1982_v24 }
 0x20a   :  { %1906 = vmatpush.msra.mxu0 %v1878_v43  ;;  %v1751_v27 = vsel %vm602_vm5, %v6043_v58, %v1742_v13  ;;  %v1749_v42 = vsel %vm602_vm5, %v1742_v13, %v1746_v46  ;;  %v1760_v56 = vmul.f32 %v1755_v29, %v7212_v1  ;;  %v1884_v58 = vmul.f32 %v5921_v52, %v7214_v26  ;;  %v7216_v52 = vld [vmem:[#allocation16_spill] sm:$0xff]  ;;  %v7221_v13 = vld [vmem:[#allocation23_spill] sm:$0xff] }
 0x20b   :  { %v1758_v14 = vmul.f32 %v1751_v27, %v5609_v32  ;;  %v1759_v48 = vmul.f32 %v1749_v42, %v7211_v4  ;;  %v1885_v39 = vmul.f32 %v5925_v30, %v7216_v52  ;;  %v2003_v45 = vmul.f32 %v1996_v25, %v7217_v53  ;;  %v2103_v30 = vpop.permute.xlu2 %2102  ;;  %v7222_v42 = vld [vmem:[#allocation21_spill] sm:$0xff] }
 0x20c   :  { %1845 = vmatpush.msrb.mxu3 %v1760_v56  ;;  %v2005_v43 = vmul.f32 %v1992_v9, %v7220_v7  ;;  %v6348_v9 = vpop.f32.mrf.mxu1 }
 0x20d   :  { %1805 = vmatpush.msrb.mxu1 %v1758_v14  ;;  %1825 = vmatpush.msrb.mxu2 %v1759_v48  ;;  %7225 = vst [vmem:[#allocation7_spill] sm:$0xff] %v6348_v9 }
 0x20e   :  { %5133 = vmatmul.msk.f32.vlgmr.msrb.gmra.mxu0 %vm1083_vm9, %v5132_v15  ;;  %5134 = vmatmul.msk.f32.vlgmr.msrb.gmra.mxu1 %vm1083_vm9, %v5132_v15 }
 0x20f   :  { %5135 = vmatmul.msk.f32.vlgmr.msrb.gmra.mxu2 %vm1083_vm9, %v5132_v15  ;;  %5136 = vmatmul.msk.f32.vlgmr.msrb.gmra.mxu3 %vm1083_vm9, %v5132_v15 }
 0x210   :  { %1925 = vmatpush.msra.mxu1 %v1883_v37  ;;  %1945 = vmatpush.msra.mxu2 %v1884_v58  ;;  %v2111_v40 = vpop.permute.xlu1 %2110  ;;  %v7223_v37 = vld [vmem:[#allocation24_spill] sm:$0xff] }
 0x211   :  { %1965 = vmatpush.msra.mxu3 %v1885_v39  ;;  %2026 = vmatpush.msrb.mxu0 %v2003_v45  ;;  %v1867_v59 = vpop.permute.xlu0 %1866  ;;  %v2119_v46 = vsel %vm953_vm8, %v2111_v40, %v6086_v55 }
 0x212   :  { %1926 = vmatpush.msra.mxu1 %v1879_v3  ;;  %v1870_v23 = vsel %vm719_vm6, %v6145_v35, %v1867_v59  ;;  %v1876_v5 = vsel %vm719_vm6, %v1867_v59, %v6038_v47  ;;  %v5137_v35 = vld [vmem:[%s7115_s4 + $0x30] sm:$0xff]  ;;  %v2117_v47 = vsel %vm953_vm8, %v6086_v55, %v2103_v30  ;;  %v2127_v56 = vmul.f32 %v2119_v46, %v7222_v42 }
 0x213   :  { %2027 = vmatpush.msrb.mxu0 %v1999_v21  ;;  %v1880_v24 = vmul.f32 %v1870_v23, %v7214_v26  ;;  %v1881_v33 = vmul.f32 %v1876_v5, %v7216_v52  ;;  %v2124_v29 = vmul.f32 %v2117_v47, %v7221_v13  ;;  %v5147_v21 = vld [vmem:[%s7115_s4 + $0x40] sm:$0xff]  ;;  %v6354_v47 = vpop.f32.mrf.mxu3 }
 0x214   :  { %2046 = vmatpush.msrb.mxu1 %v2004_v57  ;;  %7228 = vst [vmem:[#allocation26_spill] sm:$0xff] %v6354_v47 }
 0x215   :  { %1946 = vmatpush.msra.mxu2 %v1880_v24  ;;  %1966 = vmatpush.msra.mxu3 %v1881_v33  ;;  %v6350_v24 = vpop.f32.mrf.mxu0 }
 0x216   :  { %5138 = vmatmul.msk.f32.vlgmr.msra.gmra.mxu0 %vm1083_vm9, %v5137_v35  ;;  %5139 = vmatmul.msk.f32.vlgmr.msra.gmra.mxu1 %vm1083_vm9, %v5137_v35  ;;  %7226 = vst [vmem:[#allocation6_spill] sm:$0xff] %v6350_v24 }
 0x217   :  { %5140 = vmatmul.msk.f32.vlgmr.msra.gmra.mxu2 %vm1083_vm9, %v5137_v35  ;;  %5141 = vmatmul.msk.f32.vlgmr.msra.gmra.mxu3 %vm1083_vm9, %v5137_v35  ;;  %v6352_v35 = vpop.f32.mrf.mxu2 }
 0x218   :  { %2066 = vmatpush.msrb.mxu2 %v2005_v43  ;;  %2086 = vmatpush.msrb.mxu3 %v2006_v2  ;;  %v1984_v27 = vpop.permute.xlu1 %1983  ;;  %7227 = vst [vmem:[#allocation25_spill] sm:$0xff] %v6352_v35 }
 0x219   :  { %2147 = vmatpush.msra.mxu0 %v2124_v29  ;;  %v2107_v14 = vpop.permute.xlu0 %2106  ;;  %v1991_v55 = vsel %vm836_vm7, %v1984_v27, %v6187_v6  ;;  %v1993_v48 = vsel %vm836_vm7, %v6204_v8, %v1984_v27  ;;  %v5142_v6 = vld [vmem:[%s7115_s4 + $0x38] sm:$0xff] }
 0x21a   :  { %2087 = vmatpush.msrb.mxu3 %v2002_v61  ;;  %v2113_v15 = vsel %vm953_vm8, %v2107_v14, %v2111_v40  ;;  %v2115_v25 = vsel %vm953_vm8, %v2103_v30, %v2107_v14  ;;  %v2000_v58 = vmul.f32 %v1993_v48, %v7218_v31  ;;  %v2001_v22 = vmul.f32 %v1991_v55, %v7220_v7 }
 0x21b   :  { %v2125_v44 = vmul.f32 %v2115_v25, %v7223_v37  ;;  %v2126_v39 = vmul.f32 %v2113_v15, %v7224_v28 }
 0x21c   :  { %2207 = vmatpush.msra.mxu3 %v2127_v56  ;;  %2047 = vmatpush.msrb.mxu1 %v2000_v58 }
 0x21d   :  { %2067 = vmatpush.msrb.mxu2 %v2001_v22 }
 0x21e   :  { %2167 = vmatpush.msra.mxu1 %v2125_v44  ;;  %5143 = vmatmul.msk.f32.vlgmr.msrb.gmra.mxu0 %vm1083_vm9, %v5142_v6 }
 0x21f   :  { %2187 = vmatpush.msra.mxu2 %v2126_v39  ;;  %5144 = vmatmul.msk.f32.vlgmr.msrb.gmra.mxu1 %vm1083_vm9, %v5142_v6 }
 0x220   :  { %5145 = vmatmul.msk.f32.vlgmr.msrb.gmra.mxu2 %vm1083_vm9, %v5142_v6  ;;  %5146 = vmatmul.msk.f32.vlgmr.msrb.gmra.mxu3 %vm1083_vm9, %v5142_v6  ;;  %v2109_v8 = vpop.permute.xlu1 %2108 }
 0x221   :  { %v2105_v45 = vpop.permute.xlu0 %2104  ;;  %v2118_v41 = vsel %vm953_vm8, %v2109_v8, %v6219_v0 }
 0x222   :  { %v2112_v3 = vsel %vm953_vm8, %v2105_v45, %v2109_v8  ;;  %v2123_v40 = vmul.f32 %v2118_v41, %v7222_v42 }
 0x223   :  { %v2122_v57 = vmul.f32 %v2112_v3, %v7224_v28 }
 0x224   :  { %2208 = vmatpush.msra.mxu3 %v2123_v40 }
 0x225   :  { %2188 = vmatpush.msra.mxu2 %v2122_v57 }
 0x228   :  { %5150 = vmatmul.msk.f32.vlgmr.msra.gmra.mxu2 %vm1083_vm9, %v5147_v21  ;;  %5151 = vmatmul.msk.f32.vlgmr.msra.gmra.mxu3 %vm1083_vm9, %v5147_v21 }
 0x229   :  { %v2101_v30 = vpop.permute.xlu0 %2100 }
 0x22a   :  { %v2114_v59 = vsel %vm953_vm8, %v2101_v30, %v2105_v45  ;;  %v2116_v38 = vsel %vm953_vm8, %v6219_v0, %v2101_v30 }
 0x22b   :  { %v2120_v23 = vmul.f32 %v2116_v38, %v7221_v13  ;;  %v2121_v5 = vmul.f32 %v2114_v59, %v7223_v37 }
 0x22d   :  { %2148 = vmatpush.msra.mxu0 %v2120_v23  ;;  %2168 = vmatpush.msra.mxu1 %v2121_v5 }
 0x22e   :  { %5148 = vmatmul.msk.f32.vlgmr.msra.gmra.mxu0 %vm1083_vm9, %v5147_v21  ;;  %5149 = vmatmul.msk.f32.vlgmr.msra.gmra.mxu1 %vm1083_vm9, %v5147_v21 }
 0x243   :  { %v1276_v33 = vpop.f32.mrf.mxu1  ;;  %v1256_v0 = vpop.f32.mrf.mxu0 }
 0x24b   :  { %v1359_v60 = vpop.f32.mrf.mxu1 }
 0x24c   :  { %v1360_v40 = vadd.f32 %v1359_v60, %v1276_v33 }
 0x253   :  { %v1476_v61 = vpop.f32.mrf.mxu1 }
 0x254   :  { %v1520_v59 = vadd.f32 %v1476_v61, %v1360_v40 }
 0x25b   :  { %v1597_v48 = vpop.f32.mrf.mxu1 }
 0x25c   :  { %v1641_v5 = vadd.f32 %v1597_v48, %v1520_v59 }
 0x264   :  { %v1686_v22 = vpop.f32.mrf.mxu1 }
 0x265   :  { %v1730_v42 = vadd.f32 %v1686_v22, %v1641_v5 }
 0x268   :  { %v1296_v2 = vpop.f32.mrf.mxu2  ;;  %v1316_v43 = vpop.f32.mrf.mxu3 }
 0x26b   :  { %v1339_v46 = vpop.f32.mrf.mxu0 }
 0x26c   :  { %v1340_v23 = vadd.f32 %v1339_v46, %v1256_v0  ;;  %v2220_v22 = vpop.permute.xlu1 %2219 }
 0x271   :  { %v1379_v29 = vpop.f32.mrf.mxu2 }
 0x272   :  { %v1399_v27 = vpop.f32.mrf.mxu3  ;;  %v1380_v47 = vadd.f32 %v1379_v29, %v1296_v2 }
 0x273   :  { %v1456_v56 = vpop.f32.mrf.mxu0  ;;  %v1400_v24 = vadd.f32 %v1399_v27, %v1316_v43 }
 0x274   :  { %v1519_v9 = vadd.f32 %v1456_v56, %v1340_v23 }
 0x279   :  { %v1496_v14 = vpop.f32.mrf.mxu2 }
 0x27a   :  { %v1516_v55 = vpop.f32.mrf.mxu3  ;;  %v1521_v28 = vadd.f32 %v1496_v14, %v1380_v47 }
 0x27b   :  { %v1577_v15 = vpop.f32.mrf.mxu0  ;;  %v1522_v7 = vadd.f32 %v1516_v55, %v1400_v24 }
 0x27c   :  { %v1640_v60 = vadd.f32 %v1577_v15, %v1519_v9 }
 0x282   :  { %v1617_v25 = vpop.f32.mrf.mxu2  ;;  %v1637_v58 = vpop.f32.mrf.mxu3 }
 0x283   :  { %v1666_v44 = vpop.f32.mrf.mxu0  ;;  %v1642_v31 = vadd.f32 %v1617_v25, %v1521_v28  ;;  %v1643_v20 = vadd.f32 %v1637_v58, %v1522_v7  ;;  %v5102_v58 = vld [vmem:[%s7112_s8 + $0x8] sm:$0xff] }
 0x284   :  { %v1729_v40 = vadd.f32 %v1666_v44, %v1640_v60  ;;  %v5152_v44 = vld [vmem:[%s7112_s8 + $0x18] sm:$0xff] }
 0x28a   :  { %v1706_v39 = vpop.f32.mrf.mxu2  ;;  %v1726_v6 = vpop.f32.mrf.mxu3 }
 0x28b   :  { %v1807_v8 = vpop.f32.mrf.mxu1  ;;  %v1787_v45 = vpop.f32.mrf.mxu0  ;;  %v1731_v52 = vadd.f32 %v1706_v39, %v1642_v31  ;;  %v1732_v26 = vadd.f32 %v1726_v6, %v1643_v20 }
 0x28c   :  { %v1851_v53 = vadd.f32 %v1807_v8, %v1730_v42  ;;  %v1850_v2 = vadd.f32 %v1787_v45, %v1729_v40  ;;  %v7229_v45 = vld [vmem:[#allocation3_spill] sm:$0xff]  ;;  %v7230_v40 = vld [vmem:[#allocation2_spill] sm:$0xff] }
 0x292   :  { %v1827_v41 = vpop.f32.mrf.mxu2  ;;  %v1847_v3 = vpop.f32.mrf.mxu3 }
 0x293   :  { %v1928_v57 = vpop.f32.mrf.mxu1  ;;  %v1908_v38 = vpop.f32.mrf.mxu0  ;;  %v1852_v0 = vadd.f32 %v1827_v41, %v1731_v52  ;;  %v1853_v46 = vadd.f32 %v1847_v3, %v1732_v26  ;;  %v5153_v3 = vld [vmem:[%s7116_s5 + $0x8] sm:$0xff] }
 0x294   :  { %v1972_v61 = vadd.f32 %v1928_v57, %v1851_v53  ;;  %v1971_v47 = vadd.f32 %v1908_v38, %v1850_v2 }
 0x29a   :  { %v1948_v21 = vpop.f32.mrf.mxu2  ;;  %v1968_v30 = vpop.f32.mrf.mxu3 }
 0x29b   :  { %v2029_v33 = vpop.f32.mrf.mxu0  ;;  %v1973_v27 = vadd.f32 %v1948_v21, %v1852_v0  ;;  %v1974_v56 = vadd.f32 %v1968_v30, %v1853_v46 }
 0x29c   :  { %v2049_v35 = vpop.f32.mrf.mxu1  ;;  %v2092_v31 = vadd.f32 %v2029_v33, %v1971_v47 }
 0x29d   :  { %v2093_v43 = vadd.f32 %v2049_v35, %v1972_v61 }
 0x2a3   :  { %v2069_v37 = vpop.f32.mrf.mxu2  ;;  %v2089_v13 = vpop.f32.mrf.mxu3 }
 0x2a4   :  { %v2094_v7 = vadd.f32 %v2069_v37, %v1973_v27  ;;  %v2095_v42 = vadd.f32 %v2089_v13, %v1974_v56 }
 0x2ab   :  { %v2170_v29 = vpop.f32.mrf.mxu1  ;;  %v2190_v24 = vpop.f32.mrf.mxu2 }
 0x2ac   :  { %v2214_v48 = vadd.f32 %v2170_v29, %v2093_v43  ;;  %v2210_v28 = vpop.f32.mrf.mxu3  ;;  %v2150_v14 = vpop.f32.mrf.mxu0  ;;  %v2215_v20 = vadd.f32 %v2190_v24, %v2094_v7 }
 0x2ad   :  { %v2216_v53 = vadd.f32 %v2210_v28, %v2095_v42  ;;  %v2213_v26 = vadd.f32 %v2150_v14, %v2092_v31  ;;  %v7231_v42 = vld [vmem:[#allocation5_spill] sm:$0xff]  ;;  %v2248_v31 = vld [vmem:[%s7116_s5] sm:$0xff] }
 0x2ae   :  { %v2223_v9 = vadd.f32 %v2220_v22, %v2214_v48  ;;  %v2224_v52 = vadd.f32 %v2220_v22, %v2215_v20 }
 0x2af   :  { %v2225_v37 = vadd.f32 %v2220_v22, %v2216_v53  ;;  %v2222_v13 = vadd.f32 %v2220_v22, %v2213_v26 }
 0x2b0   :  { %v6356_v55 = vmax.f32 %v2223_v9, 0.0  ;;  %v6364_v35 = vmax.f32 %v2224_v52, 0.0 }
 0x2b1   :  { %v6366_v15 = vmax.f32 %v2225_v37, 0.0  ;;  %v6368_v25 = vmax.f32 %v2222_v13, 0.0 }
 0x2b2   :  { %2435 = vrot.lane.b32.xlu1 %v6356_v55, %s5301_s23  ;;  %2234 = vrot.lane.b32.xlu0 %v6356_v55, %s5300_s18 }
 0x2b3   :  { %2251 = vrot.lane.b32.xlu2 %v6356_v55, %s5299_s17 }
 0x2ba   :  { %2255 = vrot.lane.b32.xlu1 %v6366_v15, %s5299_s17  ;;  %2253 = vrot.lane.b32.xlu0 %v6364_v35, %s5299_s17 }
 0x2bb   :  { %2249 = vrot.lane.b32.xlu2 %v6368_v25, %s5299_s17 }
 0x2c2   :  { %2236 = vrot.lane.b32.xlu1 %v6364_v35, %s5300_s18  ;;  %2232 = vrot.lane.b32.xlu0 %v6368_v25, %s5300_s18 }
 0x2c3   :  { %2540 = vrot.lane.b32.xlu2 %v6356_v55, %s5302_s0 }
 0x2ca   :  { %2433 = vrot.lane.b32.xlu1 %v6368_v25, %s5301_s23  ;;  %2439 = vrot.lane.b32.xlu0 %v6366_v15, %s5301_s23 }
 0x2cb   :  { %2238 = vrot.lane.b32.xlu2 %v6366_v15, %s5300_s18 }
 0x2d2   :  { %2544 = vrot.lane.b32.xlu1 %v6366_v15, %s5302_s0  ;;  %2542 = vrot.lane.b32.xlu0 %v6364_v35, %s5302_s0 }
 0x2d3   :  { %2437 = vrot.lane.b32.xlu2 %v6364_v35, %s5301_s23 }
 0x2da   :  { %2837 = vrot.lane.b32.xlu1 %v6368_v25, %s5304_s25  ;;  %2732 = vrot.lane.b32.xlu0 %v6368_v25, %s5303_s24 }
 0x2db   :  { %2538 = vrot.lane.b32.xlu2 %v6368_v25, %s5302_s0 }
 0x2e2   :  { %2736 = vrot.lane.b32.xlu1 %v6364_v35, %s5303_s24  ;;  %2734 = vrot.lane.b32.xlu0 %v6356_v55, %s5303_s24 }
 0x2e3   :  { %2942 = vrot.lane.b32.xlu2 %v6368_v25, %s5305_s26 }
 0x2ea   :  { %2839 = vrot.lane.b32.xlu1 %v6356_v55, %s5304_s25  ;;  %2843 = vrot.lane.b32.xlu0 %v6366_v15, %s5304_s25 }
 0x2eb   :  { %2738 = vrot.lane.b32.xlu2 %v6366_v15, %s5303_s24 }
 0x2f2   :  { %2948 = vrot.lane.b32.xlu1 %v6366_v15, %s5305_s26  ;;  %2946 = vrot.lane.b32.xlu0 %v6364_v35, %s5305_s26 }
 0x2f3   :  { %2841 = vrot.lane.b32.xlu2 %v6364_v35, %s5304_s25 }
 0x2fa   :  { %3051 = vrot.lane.b32.xlu1 %v6364_v35, %s5306_s27  ;;  %3047 = vrot.lane.b32.xlu0 %v6368_v25, %s5306_s27 }
 0x2fb   :  { %2944 = vrot.lane.b32.xlu2 %v6356_v55, %s5305_s26 }
 0x302   :  { %1080 = vperm.xlu1 %5297, %v5102_v58   ;;  %3049 = vrot.lane.b32.xlu0 %v6356_v55, %s5306_s27 }
 0x303   :  { %3053 = vrot.lane.b32.xlu2 %v6366_v15, %s5306_s27 }
 0x30b   :  { %3154 = vperm.xlu2 %5296, %v5152_v44  }
 0x30d   :  { %v2252_v39 = vpop.permute.xlu2 %2251 }
 0x315   :  { %v2250_v6 = vpop.permute.xlu2 %2249 }
 0x316   :  { %v2259_v8 = vsel %vm82_vm0, %v2250_v6, %v2252_v39 }
 0x317   :  { %v2262_v41 = vmul.f32 %v2259_v8, %v7229_v45 }
 0x319   :  { %2305 = vmatpush.msrb.mxu1 %v2262_v41 }
 0x31a   :  { %5155 = vmatmul.msk.f32.vlgmr.msrb.gmra.mxu1 %vm104_vm2, %v5153_v3 }
 0x31d   :  { %v6441_v57 = vpop.permute.xlu2 %2540 }
 0x324   :  { %v2436_v21 = vpop.permute.xlu1 %2435  ;;  %v2235_v30 = vpop.permute.xlu0 %2234 }
 0x325   :  { %v2239_v59 = vpop.permute.xlu2 %2238 }
 0x32c   :  { %v2256_v38 = vpop.permute.xlu1 %2255  ;;  %v2254_v23 = vpop.permute.xlu0 %2253 }
 0x32d   :  { %v2260_v5 = vsel %vm82_vm0, %v2256_v38, %v2250_v6  ;;  %v2257_v33 = vsel %vm82_vm0, %v2254_v23, %v2256_v38  ;;  %v2258_v60 = vsel %vm82_vm0, %v2252_v39, %v2254_v23  ;;  %v2438_v61 = vpop.permute.xlu2 %2437  ;;  %v7232_v39 = vld [vmem:[#allocation4_spill] sm:$0xff] }
 0x32e   :  { %v2261_v0 = vmul.f32 %v2260_v5, %v7230_v40  ;;  %v2263_v46 = vmul.f32 %v2258_v60, %v5465_v16  ;;  %v2264_v43 = vmul.f32 %v2257_v33, %v5467_v17  ;;  %v2442_v9 = vsel %vm279_vm3, %v2436_v21, %v2438_v61 }
 0x32f   :  { %v2447_v20 = vmul.f32 %v2442_v9, %v5526_v49 }
 0x330   :  { %2285 = vmatpush.msrb.mxu0 %v2261_v0  ;;  %2325 = vmatpush.msrb.mxu2 %v2263_v46 }
 0x331   :  { %2345 = vmatpush.msrb.mxu3 %v2264_v43  ;;  %5154 = vmatmul.msk.f32.vlgmr.msrb.gmra.mxu0 %vm104_vm2, %v5153_v3 }
 0x332   :  { %5156 = vmatmul.msk.f32.vlgmr.msrb.gmra.mxu2 %vm104_vm2, %v5153_v3  ;;  %5157 = vmatmul.msk.f32.vlgmr.msrb.gmra.mxu3 %vm104_vm2, %v5153_v3  ;;  %v7233_v3 = vld [vmem:[#allocation8_spill] sm:$0xff] }
 0x334   :  { %v2237_v2 = vpop.permute.xlu1 %2236  ;;  %v2233_v29 = vpop.permute.xlu0 %2232 }
 0x335   :  { %v2240_v27 = vsel %vm54_vm1, %v2237_v2, %v2239_v59  ;;  %v2241_v56 = vsel %vm54_vm1, %v2235_v30, %v2237_v2  ;;  %v2242_v48 = vsel %vm54_vm1, %v2233_v29, %v2235_v30  ;;  %v2243_v22 = vsel %vm54_vm1, %v2239_v59, %v2233_v29  ;;  %v2539_v47 = vpop.permute.xlu2 %2538 }
 0x336   :  { %v2246_v24 = vmul.f32 %v2241_v56, %v5469_v18  ;;  %v2247_v28 = vmul.f32 %v2240_v27, %v5501_v36  ;;  %v2244_v7 = vmul.f32 %v2243_v22, %v5497_v34  ;;  %v2245_v14 = vmul.f32 %v2242_v48, %v7231_v42 }
 0x337   :  { %v2548_v53 = vsel %vm396_vm4, %v2539_v47, %v6441_v57 }
 0x338   :  { %2368 = vmatpush.msra.mxu0 %v2244_v7  ;;  %2388 = vmatpush.msra.mxu1 %v2245_v14  ;;  %v2551_v30 = vmul.f32 %v2548_v53, %v7233_v3  ;;  %v5177_v7 = vld [vmem:[%s7116_s5 + $0x28] sm:$0xff] }
 0x339   :  { %2408 = vmatpush.msra.mxu2 %v2246_v24  ;;  %2428 = vmatpush.msra.mxu3 %v2247_v28 }
 0x33a   :  { %5158 = vmatmul.msk.f32.vlgmr.msra.gmra.mxu0 %vm104_vm2, %v2248_v31  ;;  %5159 = vmatmul.msk.f32.vlgmr.msra.gmra.mxu1 %vm104_vm2, %v2248_v31 }
 0x33b   :  { %5160 = vmatmul.msk.f32.vlgmr.msra.gmra.mxu2 %vm104_vm2, %v2248_v31  ;;  %5161 = vmatmul.msk.f32.vlgmr.msra.gmra.mxu3 %vm104_vm2, %v2248_v31 }
 0x33c   :  { %2509 = vmatpush.msrb.mxu2 %v2447_v20  ;;  %v2434_v26 = vpop.permute.xlu1 %2433  ;;  %v2440_v52 = vpop.permute.xlu0 %2439 }
 0x33d   :  { %v2443_v37 = vsel %vm279_vm3, %v2434_v26, %v2436_v21  ;;  %v2441_v13 = vsel %vm279_vm3, %v2438_v61, %v2440_v52  ;;  %v2444_v58 = vsel %vm279_vm3, %v2440_v52, %v2434_v26  ;;  %v6486_v44 = vpop.permute.xlu2 %2942  ;;  %v5162_v21 = vld [vmem:[%s7116_s5 + $0x10] sm:$0xff] }
 0x33e   :  { %v2446_v6 = vmul.f32 %v2443_v37, %v7232_v39  ;;  %v2445_v8 = vmul.f32 %v2444_v58, %v5528_v50  ;;  %v2448_v41 = vmul.f32 %v2441_v13, %v5530_v51  ;;  %v7234_v58 = vld [vmem:[#allocation15_spill] sm:$0xff] }
 0x340   :  { %2469 = vmatpush.msrb.mxu0 %v2445_v8  ;;  %2489 = vmatpush.msrb.mxu1 %v2446_v6  ;;  %v7235_v8 = vld [vmem:[#allocation16_spill] sm:$0xff] }
 0x341   :  { %2529 = vmatpush.msrb.mxu3 %v2448_v41 }
 0x342   :  { %2594 = vmatpush.msra.mxu1 %v2551_v30  ;;  %5163 = vmatmul.msk.f32.vlgmr.msrb.gmra.mxu0 %vm104_vm2, %v5162_v21 }
 0x343   :  { %5164 = vmatmul.msk.f32.vlgmr.msrb.gmra.mxu1 %vm104_vm2, %v5162_v21  ;;  %5165 = vmatmul.msk.f32.vlgmr.msrb.gmra.mxu2 %vm104_vm2, %v5162_v21 }
 0x344   :  { %5166 = vmatmul.msk.f32.vlgmr.msrb.gmra.mxu3 %vm104_vm2, %v5162_v21  ;;  %2683 = vmatpush.msrb.mxu1 %v6356_v55  ;;  %v2545_v59 = vpop.permute.xlu1 %2544  ;;  %v2543_v38 = vpop.permute.xlu0 %2542  ;;  %v5167_v55 = vld [vmem:[%s7116_s5 + $0x18] sm:$0xff]  ;;  %v5182_v21 = vld [vmem:[%s7116_s5 + $0x30] sm:$0xff] }
 0x345   :  { %v2549_v23 = vsel %vm396_vm4, %v2545_v59, %v2539_v47  ;;  %v2546_v5 = vsel %vm396_vm4, %v2543_v38, %v2545_v59  ;;  %v2547_v33 = vsel %vm396_vm4, %v6441_v57, %v2543_v38  ;;  %v2739_v46 = vpop.permute.xlu2 %2738  ;;  %v7236_v59 = vld [vmem:[#allocation19_spill] sm:$0xff] }
 0x346   :  { %v2550_v60 = vmul.f32 %v2549_v23, %v7208_v62  ;;  %v2552_v61 = vmul.f32 %v2547_v33, %v5556_v63  ;;  %v2553_v0 = vmul.f32 %v2546_v5, %v7209_v54 }
 0x348   :  { %2574 = vmatpush.msra.mxu0 %v2550_v60  ;;  %2614 = vmatpush.msra.mxu2 %v2552_v61 }
 0x349   :  { %2634 = vmatpush.msra.mxu3 %v2553_v0  ;;  %v7237_v0 = vld [vmem:[#allocation17_spill] sm:$0xff] }
 0x34a   :  { %2663 = vmatpush.msrb.mxu0 %v6368_v25  ;;  %2703 = vmatpush.msrb.mxu2 %v6364_v35  ;;  %v5172_v25 = vld [vmem:[%s7116_s5 + $0x20] sm:$0xff] }
 0x34b   :  { %5168 = vmatmul.msk.f32.vlgmr.msra.gmra.mxu0 %vm104_vm2, %v5167_v55  ;;  %5169 = vmatmul.msk.f32.vlgmr.msra.gmra.mxu1 %vm104_vm2, %v5167_v55 }
 0x34c   :  { %5170 = vmatmul.msk.f32.vlgmr.msra.gmra.mxu2 %vm104_vm2, %v5167_v55  ;;  %5171 = vmatmul.msk.f32.vlgmr.msra.gmra.mxu3 %vm104_vm2, %v5167_v55  ;;  %v2838_v57 = vpop.permute.xlu1 %2837  ;;  %v2733_v43 = vpop.permute.xlu0 %2732  ;;  %v7238_v55 = vld [vmem:[#allocation20_spill] sm:$0xff] }
 0x34d   :  { %2723 = vmatpush.msrb.mxu3 %v6366_v15  ;;  %v2743_v2 = vsel %vm602_vm5, %v2739_v46, %v2733_v43  ;;  %v2842_v27 = vpop.permute.xlu2 %2841 }
 0x34e   :  { %v2747_v29 = vmul.f32 %v2743_v2, %v7212_v1 }
 0x350   :  { %2828 = vmatpush.msra.mxu3 %v2747_v29  ;;  %v5187_v29 = vld [vmem:[%s7116_s5 + $0x38] sm:$0xff] }
 0x353   :  { %5173 = vmatmul.msk.f32.vlgmr.msrb.gmra.mxu0 %vm104_vm2, %v5172_v25  ;;  %5174 = vmatmul.msk.f32.vlgmr.msrb.gmra.mxu1 %vm104_vm2, %v5172_v25 }
 0x354   :  { %5175 = vmatmul.msk.f32.vlgmr.msrb.gmra.mxu2 %vm104_vm2, %v5172_v25  ;;  %5176 = vmatmul.msk.f32.vlgmr.msrb.gmra.mxu3 %vm104_vm2, %v5172_v25  ;;  %v2737_v35 = vpop.permute.xlu1 %2736  ;;  %v2735_v15 = vpop.permute.xlu0 %2734 }
 0x355   :  { %v2740_v56 = vsel %vm602_vm5, %v2737_v35, %v2739_v46  ;;  %v2741_v48 = vsel %vm602_vm5, %v2735_v15, %v2737_v35  ;;  %v2742_v22 = vsel %vm602_vm5, %v2733_v43, %v2735_v15  ;;  %v2945_v14 = vpop.permute.xlu2 %2944  ;;  %v7239_v43 = vld [vmem:[#allocation18_spill] sm:$0xff] }
 0x356   :  { %v2746_v47 = vmul.f32 %v2740_v56, %v7211_v4  ;;  %v2744_v24 = vmul.f32 %v2742_v22, %v7210_v12  ;;  %v2745_v28 = vmul.f32 %v2741_v48, %v5609_v32  ;;  %v2952_v30 = vsel %vm836_vm7, %v6486_v44, %v2945_v14  ;;  %v7240_v56 = vld [vmem:[#allocation22_spill] sm:$0xff]  ;;  %v7241_v22 = vld [vmem:[#allocation21_spill] sm:$0xff] }
 0x357   :  { %v2954_v38 = vmul.f32 %v2952_v30, %v7236_v59 }
 0x358   :  { %2768 = vmatpush.msra.mxu0 %v2744_v24  ;;  %2788 = vmatpush.msra.mxu1 %v2745_v28  ;;  %v5192_v24 = vld [vmem:[%s7116_s5 + $0x40] sm:$0xff] }
 0x359   :  { %2808 = vmatpush.msra.mxu2 %v2746_v47 }
 0x35b   :  { %5178 = vmatmul.msk.f32.vlgmr.msra.gmra.mxu0 %vm104_vm2, %v5177_v7  ;;  %5179 = vmatmul.msk.f32.vlgmr.msra.gmra.mxu1 %vm104_vm2, %v5177_v7 }
 0x35c   :  { %5180 = vmatmul.msk.f32.vlgmr.msra.gmra.mxu2 %vm104_vm2, %v5177_v7  ;;  %5181 = vmatmul.msk.f32.vlgmr.msra.gmra.mxu3 %vm104_vm2, %v5177_v7  ;;  %v2840_v9 = vpop.permute.xlu1 %2839  ;;  %v2844_v31 = vpop.permute.xlu0 %2843 }
 0x35d   :  { %v2846_v20 = vsel %vm719_vm6, %v2840_v9, %v2842_v27  ;;  %v2847_v53 = vsel %vm719_vm6, %v2838_v57, %v2840_v9  ;;  %v2845_v26 = vsel %vm719_vm6, %v2842_v27, %v2844_v31  ;;  %v2848_v52 = vsel %vm719_vm6, %v2844_v31, %v2838_v57  ;;  %v7242_v9 = vld [vmem:[#allocation23_spill] sm:$0xff] }
 0x35e   :  { %v2849_v37 = vmul.f32 %v2847_v53, %v7213_v11  ;;  %v2850_v13 = vmul.f32 %v2846_v20, %v7215_v19  ;;  %v2851_v6 = vmul.f32 %v2845_v26, %v7234_v58  ;;  %v2852_v41 = vmul.f32 %v2848_v52, %v7235_v8  ;;  %v7243_v20 = vld [vmem:[#allocation24_spill] sm:$0xff] }
 0x360   :  { %2873 = vmatpush.msrb.mxu0 %v2849_v37  ;;  %2893 = vmatpush.msrb.mxu1 %v2850_v13 }
 0x361   :  { %2913 = vmatpush.msrb.mxu2 %v2851_v6  ;;  %2933 = vmatpush.msrb.mxu3 %v2852_v41 }
 0x362   :  { %2978 = vmatpush.msra.mxu0 %v2954_v38 }
 0x363   :  { %5183 = vmatmul.msk.f32.vlgmr.msrb.gmra.mxu0 %vm104_vm2, %v5182_v21  ;;  %5184 = vmatmul.msk.f32.vlgmr.msrb.gmra.mxu1 %vm104_vm2, %v5182_v21 }
 0x364   :  { %5185 = vmatmul.msk.f32.vlgmr.msrb.gmra.mxu2 %vm104_vm2, %v5182_v21  ;;  %5186 = vmatmul.msk.f32.vlgmr.msrb.gmra.mxu3 %vm104_vm2, %v5182_v21  ;;  %v2949_v23 = vpop.permute.xlu1 %2948  ;;  %v2947_v5 = vpop.permute.xlu0 %2946 }
 0x365   :  { %v2953_v33 = vsel %vm836_vm7, %v2949_v23, %v6486_v44  ;;  %v2950_v60 = vsel %vm836_vm7, %v2947_v5, %v2949_v23  ;;  %v2951_v61 = vsel %vm836_vm7, %v2945_v14, %v2947_v5  ;;  %v3054_v44 = vpop.permute.xlu2 %3053 }
 0x366   :  { %v2957_v46 = vmul.f32 %v2953_v33, %v7237_v0  ;;  %v2955_v57 = vmul.f32 %v2951_v61, %v7238_v55  ;;  %v2956_v2 = vmul.f32 %v2950_v60, %v7239_v43 }
 0x368   :  { %2998 = vmatpush.msra.mxu1 %v2955_v57  ;;  %3018 = vmatpush.msra.mxu2 %v2956_v2 }
 0x369   :  { %3038 = vmatpush.msra.mxu3 %v2957_v46 }
 0x36b   :  { %5188 = vmatmul.msk.f32.vlgmr.msra.gmra.mxu0 %vm104_vm2, %v5187_v29  ;;  %5189 = vmatmul.msk.f32.vlgmr.msra.gmra.mxu1 %vm104_vm2, %v5187_v29 }
 0x36c   :  { %5190 = vmatmul.msk.f32.vlgmr.msra.gmra.mxu2 %vm104_vm2, %v5187_v29  ;;  %5191 = vmatmul.msk.f32.vlgmr.msra.gmra.mxu3 %vm104_vm2, %v5187_v29  ;;  %v3052_v25 = vpop.permute.xlu1 %3051  ;;  %v3048_v27 = vpop.permute.xlu0 %3047 }
 0x36d   :  { %v3055_v35 = vsel %vm953_vm8, %v3052_v25, %v3054_v44  ;;  %v3058_v15 = vsel %vm953_vm8, %v3054_v44, %v3048_v27 }
 0x36e   :  { %v3061_v48 = vmul.f32 %v3055_v35, %v7240_v56  ;;  %v3062_v47 = vmul.f32 %v3058_v15, %v7241_v22 }
 0x370   :  { %3123 = vmatpush.msrb.mxu2 %v3061_v48  ;;  %3143 = vmatpush.msrb.mxu3 %v3062_v47 }
 0x374   :  { %5195 = vmatmul.msk.f32.vlgmr.msrb.gmra.mxu2 %vm104_vm2, %v5192_v24  ;;  %5196 = vmatmul.msk.f32.vlgmr.msrb.gmra.mxu3 %vm104_vm2, %v5192_v24  ;;  %v3050_v28 = vpop.permute.xlu0 %3049 }
 0x375   :  { %v3056_v7 = vsel %vm953_vm8, %v3050_v28, %v3052_v25  ;;  %v3057_v14 = vsel %vm953_vm8, %v3048_v27, %v3050_v28 }
 0x376   :  { %v3059_v31 = vmul.f32 %v3057_v14, %v7242_v9  ;;  %v3060_v53 = vmul.f32 %v3056_v7, %v7243_v20 }
 0x378   :  { %3083 = vmatpush.msrb.mxu0 %v3059_v31  ;;  %3103 = vmatpush.msrb.mxu1 %v3060_v53 }
 0x379   :  { %5193 = vmatmul.msk.f32.vlgmr.msrb.gmra.mxu0 %vm104_vm2, %v5192_v24  ;;  %5194 = vmatmul.msk.f32.vlgmr.msrb.gmra.mxu1 %vm104_vm2, %v5192_v24 }
 0x397   :  { %v2307_v26 = vpop.f32.mrf.mxu1 }
 0x3ae   :  { %v2287_v52 = vpop.f32.mrf.mxu0 }
 0x3b5   :  { %v2327_v37 = vpop.f32.mrf.mxu2  ;;  %v2347_v13 = vpop.f32.mrf.mxu3 }
 0x3b7   :  { %v2370_v6 = vpop.f32.mrf.mxu0  ;;  %v2390_v41 = vpop.f32.mrf.mxu1 }
 0x3b8   :  { %v2391_v31 = vadd.f32 %v2390_v41, %v2307_v26  ;;  %v2371_v22 = vadd.f32 %v2370_v6, %v2287_v52  ;;  %v1081_v6 = vpop.permute.xlu1 %1080 }
 0x3be   :  { %v2410_v30 = vpop.f32.mrf.mxu2  ;;  %v2430_v21 = vpop.f32.mrf.mxu3 }
 0x3bf   :  { %v2471_v38 = vpop.f32.mrf.mxu0  ;;  %v2431_v28 = vadd.f32 %v2430_v21, %v2347_v13  ;;  %v2411_v56 = vadd.f32 %v2410_v30, %v2327_v37 }
 0x3c0   :  { %v2491_v23 = vpop.f32.mrf.mxu1  ;;  %v2534_v19 = vadd.f32 %v2471_v38, %v2371_v22 }
 0x3c1   :  { %v2535_v20 = vadd.f32 %v2491_v23, %v2391_v31 }
 0x3c6   :  { %v2511_v5 = vpop.f32.mrf.mxu2 }
 0x3c7   :  { %v2531_v33 = vpop.f32.mrf.mxu3  ;;  %v2536_v9 = vadd.f32 %v2511_v5, %v2411_v56 }
 0x3c8   :  { %v2576_v60 = vpop.f32.mrf.mxu0  ;;  %v2596_v61 = vpop.f32.mrf.mxu1  ;;  %v2537_v53 = vadd.f32 %v2531_v33, %v2431_v28 }
 0x3c9   :  { %v2640_v55 = vadd.f32 %v2596_v61, %v2535_v20  ;;  %v2639_v11 = vadd.f32 %v2576_v60, %v2534_v19 }
 0x3cf   :  { %v2616_v46 = vpop.f32.mrf.mxu2  ;;  %v2636_v57 = vpop.f32.mrf.mxu3 }
 0x3d0   :  { %v2665_v2 = vpop.f32.mrf.mxu0  ;;  %v2685_v29 = vpop.f32.mrf.mxu1  ;;  %v2642_v59 = vadd.f32 %v2636_v57, %v2537_v53  ;;  %v2641_v8 = vadd.f32 %v2616_v46, %v2536_v9 }
 0x3d1   :  { %v2729_v1 = vadd.f32 %v2685_v29, %v2640_v55  ;;  %v2728_v12 = vadd.f32 %v2665_v2, %v2639_v11 }
 0x3d7   :  { %v2705_v44 = vpop.f32.mrf.mxu2  ;;  %v2725_v25 = vpop.f32.mrf.mxu3 }
 0x3d8   :  { %v2770_v27 = vpop.f32.mrf.mxu0  ;;  %v2790_v35 = vpop.f32.mrf.mxu1  ;;  %v2730_v32 = vadd.f32 %v2705_v44, %v2641_v8  ;;  %v2731_v13 = vadd.f32 %v2725_v25, %v2642_v59  ;;  %v7246_v44 = vld [vmem:[#allocation25_spill] sm:$0xff] }
 0x3d9   :  { %v2834_v21 = vadd.f32 %v2790_v35, %v2729_v1  ;;  %v2833_v37 = vadd.f32 %v2770_v27, %v2728_v12  ;;  %v3155_v8 = vpop.permute.xlu2 %3154  ;;  %v7244_v1 = vld [vmem:[#allocation7_spill] sm:$0xff]  ;;  %v1145_v25 = vadd.f32 %v7246_v44, %v1081_v6 }
 0x3da   :  { %v1125_v11 = vadd.f32 %v7244_v1, %v1081_v6 }
 0x3df   :  { %v2810_v15 = vpop.f32.mrf.mxu2  ;;  %v2830_v48 = vpop.f32.mrf.mxu3 }
 0x3e0   :  { %v2875_v47 = vpop.f32.mrf.mxu0  ;;  %v2895_v24 = vpop.f32.mrf.mxu1  ;;  %v2835_v26 = vadd.f32 %v2810_v15, %v2730_v32  ;;  %v2836_v41 = vadd.f32 %v2830_v48, %v2731_v13 }
 0x3e1   :  { %v2939_v52 = vadd.f32 %v2895_v24, %v2834_v21  ;;  %v2938_v5 = vadd.f32 %v2875_v47, %v2833_v37 }
 0x3e7   :  { %v2915_v7 = vpop.f32.mrf.mxu2  ;;  %v2935_v14 = vpop.f32.mrf.mxu3 }
 0x3e8   :  { %v3000_v0 = vpop.f32.mrf.mxu1  ;;  %v2980_v4 = vpop.f32.mrf.mxu0  ;;  %v2940_v56 = vadd.f32 %v2915_v7, %v2835_v26  ;;  %v2941_v20 = vadd.f32 %v2935_v14, %v2836_v41  ;;  %v5197_v7 = vld [vmem:[%s7112_s8 + $0x20] sm:$0xff] }
 0x3e9   :  { %v3044_v30 = vadd.f32 %v3000_v0, %v2939_v52  ;;  %v3043_v59 = vadd.f32 %v2980_v4, %v2938_v5  ;;  %v7248_v4 = vld [vmem:[#allocation6_spill] sm:$0xff] }
 0x3ea   :  { %v1105_v27 = vadd.f32 %v7248_v4, %v1081_v6 }
 0x3ef   :  { %v3020_v43 = vpop.f32.mrf.mxu2  ;;  %v3040_v58 = vpop.f32.mrf.mxu3 }
 0x3f0   :  { %v3045_v9 = vadd.f32 %v3020_v43, %v2940_v56  ;;  %v3046_v55 = vadd.f32 %v3040_v58, %v2941_v20  ;;  %v7247_v43 = vld [vmem:[#allocation26_spill] sm:$0xff] }
 0x3f1   :  { %v1165_v58 = vadd.f32 %v7247_v43, %v1081_v6 }
 0x3f6   :  { %v3105_v38 = vpop.f32.mrf.mxu1  ;;  %v3085_v33 = vpop.f32.mrf.mxu0 }
 0x3f7   :  { %v3125_v23 = vpop.f32.mrf.mxu2  ;;  %v3145_v22 = vpop.f32.mrf.mxu3  ;;  %v3149_v19 = vadd.f32 %v3105_v38, %v3044_v30  ;;  %v3148_v12 = vadd.f32 %v3085_v33, %v3043_v59 }
 0x3f8   :  { %v3150_v32 = vadd.f32 %v3125_v23, %v3045_v9  ;;  %v3151_v60 = vadd.f32 %v3145_v22, %v3046_v55  ;;  %v5198_v9 = vld [vmem:[%s7117_s6 + $0x8] sm:$0xff] }
 0x3f9   :  { %v3158_v61 = vadd.f32 %v3155_v8, %v3149_v19  ;;  %v3157_v29 = vadd.f32 %v3155_v8, %v3148_v12 }
 0x3fa   :  { %v3159_v57 = vadd.f32 %v3155_v8, %v3150_v32  ;;  %v3160_v2 = vadd.f32 %v3155_v8, %v3151_v60  ;;  %v3187_v60 = vld [vmem:[%s7117_s6] sm:$0xff] }
 0x3fb   :  { %v3162_v46 = vadd.f32 %v3158_v61, %v1125_v11  ;;  %v3161_v48 = vadd.f32 %v3157_v29, %v1105_v27 }
 0x3fc   :  { %v3163_v35 = vadd.f32 %v3159_v57, %v1145_v25  ;;  %v3164_v15 = vadd.f32 %v3160_v2, %v1165_v58  ;;  %v5207_v58 = vld [vmem:[%s7117_s6 + $0x10] sm:$0xff] }
 0x3fd   :  { %v6606_v0 = vmax.f32 %v3162_v46, 0.0  ;;  %v6621_v28 = vmax.f32 %v3161_v48, 0.0 }
 0x3fe   :  { %v6617_v47 = vmax.f32 %v3163_v35, 0.0  ;;  %v6619_v24 = vmax.f32 %v3164_v15, 0.0 }
 0x3ff   :  { %7245 = vst [vmem:[#allocation3_spill] sm:$0xff] %v6606_v0  ;;  %3374 = vrot.lane.b32.xlu2 %v6606_v0, %s5301_s23  ;;  %3173 = vrot.lane.b32.xlu1 %v6606_v0, %s5300_s18 }
 0x400   :  { %3190 = vrot.lane.b32.xlu0 %v6606_v0, %s5299_s17  ;;  %7249 = vst [vmem:[#allocation2_spill] sm:$0xff] %v6617_v47 }
 0x401   :  { %7250 = vst [vmem:[#allocation5_spill] sm:$0xff] %v6619_v24 }
 0x402   :  { %7251 = vst [vmem:[#allocation4_spill] sm:$0xff] %v6621_v28 }
 0x407   :  { %3194 = vrot.lane.b32.xlu2 %v6619_v24, %s5299_s17  ;;  %3192 = vrot.lane.b32.xlu1 %v6617_v47, %s5299_s17 }
 0x408   :  { %3188 = vrot.lane.b32.xlu0 %v6621_v28, %s5299_s17 }
 0x40f   :  { %3175 = vrot.lane.b32.xlu2 %v6617_v47, %s5300_s18  ;;  %3171 = vrot.lane.b32.xlu1 %v6621_v28, %s5300_s18 }
 0x410   :  { %3479 = vrot.lane.b32.xlu0 %v6606_v0, %s5302_s0 }
 0x417   :  { %3372 = vrot.lane.b32.xlu2 %v6621_v28, %s5301_s23  ;;  %3378 = vrot.lane.b32.xlu1 %v6619_v24, %s5301_s23 }
 0x418   :  { %3177 = vrot.lane.b32.xlu0 %v6619_v24, %s5300_s18 }
 0x41f   :  { %3483 = vrot.lane.b32.xlu2 %v6619_v24, %s5302_s0  ;;  %3481 = vrot.lane.b32.xlu1 %v6617_v47, %s5302_s0 }
 0x420   :  { %3376 = vrot.lane.b32.xlu0 %v6617_v47, %s5301_s23 }
 0x427   :  { %3776 = vrot.lane.b32.xlu2 %v6621_v28, %s5304_s25  ;;  %3671 = vrot.lane.b32.xlu1 %v6621_v28, %s5303_s24 }
 0x428   :  { %3477 = vrot.lane.b32.xlu0 %v6621_v28, %s5302_s0 }
 0x42f   :  { %3675 = vrot.lane.b32.xlu2 %v6617_v47, %s5303_s24  ;;  %3673 = vrot.lane.b32.xlu1 %v6606_v0, %s5303_s24 }
 0x430   :  { %3881 = vrot.lane.b32.xlu0 %v6621_v28, %s5305_s26 }
 0x437   :  { %3778 = vrot.lane.b32.xlu2 %v6606_v0, %s5304_s25  ;;  %3782 = vrot.lane.b32.xlu1 %v6619_v24, %s5304_s25 }
 0x438   :  { %3677 = vrot.lane.b32.xlu0 %v6619_v24, %s5303_s24 }
 0x43f   :  { %3887 = vrot.lane.b32.xlu2 %v6619_v24, %s5305_s26  ;;  %3885 = vrot.lane.b32.xlu1 %v6617_v47, %s5305_s26 }
 0x440   :  { %3780 = vrot.lane.b32.xlu0 %v6617_v47, %s5304_s25 }
 0x447   :  { %3990 = vrot.lane.b32.xlu2 %v6617_v47, %s5306_s27  ;;  %3986 = vrot.lane.b32.xlu1 %v6621_v28, %s5306_s27 }
 0x448   :  { %3883 = vrot.lane.b32.xlu0 %v6606_v0, %s5305_s26 }
 0x44f   :  { %4093 = vperm.xlu2 %5296, %v5197_v7   ;;  %3988 = vrot.lane.b32.xlu1 %v6606_v0, %s5306_s27 }
 0x450   :  { %3992 = vrot.lane.b32.xlu0 %v6619_v24, %s5306_s27 }
 0x459   :  { %v6684_v14 = vpop.permute.xlu2 %3374 }
 0x461   :  { %v3195_v31 = vpop.permute.xlu2 %3194 }
 0x469   :  { %v3176_v53 = vpop.permute.xlu2 %3175 }
 0x471   :  { %v3174_v13 = vpop.permute.xlu1 %3173  ;;  %v3373_v26 = vpop.permute.xlu2 %3372 }
 0x472   :  { %v3191_v21 = vpop.permute.xlu0 %3190  ;;  %v3180_v52 = vsel %vm54_vm1, %v3174_v13, %v3176_v53  ;;  %v3382_v33 = vsel %vm279_vm3, %v3373_v26, %v6684_v14 }
 0x473   :  { %v3185_v55 = vmul.f32 %v3180_v52, %v5469_v18  ;;  %v3385_v32 = vmul.f32 %v3382_v33, %v7232_v39  ;;  %v7253_v33 = vld [vmem:[#allocation12_spill] sm:$0xff] }
 0x479   :  { %v3193_v41 = vpop.permute.xlu1 %3192  ;;  %v3484_v1 = vpop.permute.xlu2 %3483 }
 0x47a   :  { %v3196_v37 = vsel %vm82_vm0, %v3193_v41, %v3195_v31  ;;  %v3197_v6 = vsel %vm82_vm0, %v3191_v21, %v3193_v41  ;;  %v3189_v56 = vpop.permute.xlu0 %3188 }
 0x47b   :  { %v3202_v20 = vmul.f32 %v3197_v6, %v5465_v16  ;;  %v3203_v30 = vmul.f32 %v3196_v37, %v5467_v17  ;;  %v3198_v23 = vsel %vm82_vm0, %v3189_v56, %v3191_v21  ;;  %v3199_v5 = vsel %vm82_vm0, %v3195_v31, %v3189_v56 }
 0x47c   :  { %v3200_v22 = vmul.f32 %v3199_v5, %v7230_v40  ;;  %v3201_v38 = vmul.f32 %v3198_v23, %v7229_v45 }
 0x47d   :  { %3264 = vmatpush.msra.mxu2 %v3202_v20  ;;  %3284 = vmatpush.msra.mxu3 %v3203_v30  ;;  %v5212_v20 = vld [vmem:[%s7117_s6 + $0x18] sm:$0xff] }
 0x47e   :  { %3224 = vmatpush.msra.mxu0 %v3200_v22  ;;  %3244 = vmatpush.msra.mxu1 %v3201_v38 }
 0x47f   :  { %5200 = vmatmul.msk.f32.vlgmr.msra.gmra.mxu1 %vm104_vm2, %v5198_v9  ;;  %3347 = vmatpush.msrb.mxu2 %v3185_v55 }
 0x480   :  { %5199 = vmatmul.msk.f32.vlgmr.msra.gmra.mxu0 %vm104_vm2, %v5198_v9  ;;  %5201 = vmatmul.msk.f32.vlgmr.msra.gmra.mxu2 %vm104_vm2, %v5198_v9 }
 0x481   :  { %v3172_v19 = vpop.permute.xlu1 %3171  ;;  %5202 = vmatmul.msk.f32.vlgmr.msra.gmra.mxu3 %vm104_vm2, %v5198_v9  ;;  %v3777_v43 = vpop.permute.xlu2 %3776  ;;  %v7252_v9 = vld [vmem:[#allocation11_spill] sm:$0xff] }
 0x482   :  { %v3181_v8 = vsel %vm54_vm1, %v3172_v19, %v3174_v13  ;;  %v3480_v59 = vpop.permute.xlu0 %3479 }
 0x483   :  { %v3184_v11 = vmul.f32 %v3181_v8, %v7231_v42 }
 0x485   :  { %3327 = vmatpush.msrb.mxu1 %v3184_v11 }
 0x487   :  { %3428 = vmatpush.msra.mxu1 %v3385_v32 }
 0x488   :  { %5204 = vmatmul.msk.f32.vlgmr.msrb.gmra.mxu1 %vm104_vm2, %v3187_v60  ;;  %5205 = vmatmul.msk.f32.vlgmr.msrb.gmra.mxu2 %vm104_vm2, %v3187_v60 }
 0x489   :  { %v3379_v61 = vpop.permute.xlu1 %3378 }
 0x48a   :  { %v3383_v12 = vsel %vm279_vm3, %v3379_v61, %v3373_v26  ;;  %v3178_v46 = vpop.permute.xlu0 %3177  ;;  %v3676_v26 = vpop.permute.xlu2 %3675 }
 0x48b   :  { %v3179_v57 = vsel %vm54_vm1, %v3176_v53, %v3178_v46  ;;  %v3182_v2 = vsel %vm54_vm1, %v3178_v46, %v3172_v19  ;;  %v3384_v29 = vmul.f32 %v3383_v12, %v5528_v50 }
 0x48c   :  { %v3183_v44 = vmul.f32 %v3182_v2, %v5497_v34  ;;  %v3186_v25 = vmul.f32 %v3179_v57, %v5501_v36  ;;  %v7255_v2 = vld [vmem:[#allocation9_spill] sm:$0xff] }
 0x48e   :  { %3307 = vmatpush.msrb.mxu0 %v3183_v44  ;;  %3367 = vmatpush.msrb.mxu3 %v3186_v25  ;;  %v7256_v44 = vld [vmem:[#allocation10_spill] sm:$0xff] }
 0x48f   :  { %5203 = vmatmul.msk.f32.vlgmr.msrb.gmra.mxu0 %vm104_vm2, %v3187_v60  ;;  %5206 = vmatmul.msk.f32.vlgmr.msrb.gmra.mxu3 %vm104_vm2, %v3187_v60 }
 0x490   :  { %3408 = vmatpush.msra.mxu0 %v3384_v29  ;;  %5209 = vmatmul.msk.f32.vlgmr.msra.gmra.mxu1 %vm104_vm2, %v5207_v58 }
 0x491   :  { %v3482_v4 = vpop.permute.xlu1 %3481 }
 0x492   :  { %v3485_v27 = vsel %vm396_vm4, %v3482_v4, %v3484_v1  ;;  %v3486_v35 = vsel %vm396_vm4, %v3480_v59, %v3482_v4  ;;  %v3377_v15 = vpop.permute.xlu0 %3376  ;;  %v3779_v30 = vpop.permute.xlu2 %3778 }
 0x493   :  { %v3380_v48 = vsel %vm279_vm3, %v3377_v15, %v3379_v61  ;;  %v3381_v7 = vsel %vm279_vm3, %v6684_v14, %v3377_v15  ;;  %v3491_v53 = vmul.f32 %v3486_v35, %v5556_v63  ;;  %v3492_v13 = vmul.f32 %v3485_v27, %v7209_v54  ;;  %v7258_v35 = vld [vmem:[#allocation17_spill] sm:$0xff] }
 0x494   :  { %v3387_v31 = vmul.f32 %v3380_v48, %v5530_v51  ;;  %v3386_v21 = vmul.f32 %v3381_v7, %v5526_v49  ;;  %v3786_v8 = vsel %vm719_vm6, %v3777_v43, %v3779_v30 }
 0x496   :  { %3468 = vmatpush.msra.mxu3 %v3387_v31  ;;  %3448 = vmatpush.msra.mxu2 %v3386_v21  ;;  %v7259_v21 = vld [vmem:[#allocation14_spill] sm:$0xff] }
 0x497   :  { %5208 = vmatmul.msk.f32.vlgmr.msra.gmra.mxu0 %vm104_vm2, %v5207_v58  ;;  %5210 = vmatmul.msk.f32.vlgmr.msra.gmra.mxu2 %vm104_vm2, %v5207_v58 }
 0x498   :  { %5211 = vmatmul.msk.f32.vlgmr.msra.gmra.mxu3 %vm104_vm2, %v5207_v58  ;;  %3553 = vmatpush.msrb.mxu2 %v3491_v53  ;;  %v5222_v58 = vld [vmem:[%s7117_s6 + $0x28] sm:$0xff] }
 0x499   :  { %3573 = vmatpush.msrb.mxu3 %v3492_v13  ;;  %v3672_v14 = vpop.permute.xlu1 %3671 }
 0x49a   :  { %3642 = vmatpush.msra.mxu2 %v6617_v47  ;;  %v3478_v41 = vpop.permute.xlu0 %3477  ;;  %v3888_v57 = vpop.permute.xlu2 %3887 }
 0x49b   :  { %3662 = vmatpush.msra.mxu3 %v6619_v24  ;;  %v3487_v52 = vsel %vm396_vm4, %v3478_v41, %v3480_v59  ;;  %v3488_v37 = vsel %vm396_vm4, %v3484_v1, %v3478_v41  ;;  %v5217_v59 = vld [vmem:[%s7117_s6 + $0x20] sm:$0xff]  ;;  %v7254_v1 = vld [vmem:[#allocation13_spill] sm:$0xff] }
 0x49c   :  { %v3489_v6 = vmul.f32 %v3488_v37, %v7208_v62  ;;  %v3490_v56 = vmul.f32 %v3487_v52, %v7233_v3  ;;  %v3788_v11 = vmul.f32 %v3786_v8, %v7254_v1  ;;  %v5227_v52 = vld [vmem:[%s7117_s6 + $0x30] sm:$0xff]  ;;  %v7261_v37 = vld [vmem:[#allocation18_spill] sm:$0xff]  ;;  %v5232_v8 = vld [vmem:[%s7117_s6 + $0x38] sm:$0xff] }
 0x49e   :  { %3513 = vmatpush.msrb.mxu0 %v3489_v6  ;;  %3533 = vmatpush.msrb.mxu1 %v3490_v56 }
 0x49f   :  { %5213 = vmatmul.msk.f32.vlgmr.msrb.gmra.mxu0 %vm104_vm2, %v5212_v20  ;;  %5214 = vmatmul.msk.f32.vlgmr.msrb.gmra.mxu1 %vm104_vm2, %v5212_v20 }
 0x4a0   :  { %5215 = vmatmul.msk.f32.vlgmr.msrb.gmra.mxu2 %vm104_vm2, %v5212_v20  ;;  %5216 = vmatmul.msk.f32.vlgmr.msrb.gmra.mxu3 %vm104_vm2, %v5212_v20 }
 0x4a1   :  { %3602 = vmatpush.msra.mxu0 %v6621_v28  ;;  %3622 = vmatpush.msra.mxu1 %v6606_v0  ;;  %v3674_v23 = vpop.permute.xlu1 %3673 }
 0x4a2   :  { %v3680_v5 = vsel %vm602_vm5, %v3674_v23, %v3676_v26  ;;  %v3681_v22 = vsel %vm602_vm5, %v3672_v14, %v3674_v23  ;;  %v3882_v38 = vpop.permute.xlu0 %3881 }
 0x4a3   :  { %v3683_v55 = vmul.f32 %v3681_v22, %v7252_v9  ;;  %v3684_v19 = vmul.f32 %v3680_v5, %v7253_v33  ;;  %v3892_v4 = vsel %vm836_vm7, %v3888_v57, %v3882_v38  ;;  %v7262_v5 = vld [vmem:[#allocation19_spill] sm:$0xff] }
 0x4a4   :  { %v3896_v15 = vmul.f32 %v3892_v4, %v7258_v35 }
 0x4a5   :  { %3707 = vmatpush.msrb.mxu0 %v3683_v55  ;;  %3727 = vmatpush.msrb.mxu1 %v3684_v19  ;;  %v7263_v55 = vld [vmem:[#allocation20_spill] sm:$0xff] }
 0x4a7   :  { %5218 = vmatmul.msk.f32.vlgmr.msra.gmra.mxu0 %vm104_vm2, %v5217_v59  ;;  %5219 = vmatmul.msk.f32.vlgmr.msra.gmra.mxu1 %vm104_vm2, %v5217_v59 }
 0x4a8   :  { %5220 = vmatmul.msk.f32.vlgmr.msra.gmra.mxu2 %vm104_vm2, %v5217_v59  ;;  %5221 = vmatmul.msk.f32.vlgmr.msra.gmra.mxu3 %vm104_vm2, %v5217_v59  ;;  %v3991_v59 = vpop.permute.xlu2 %3990 }
 0x4a9   :  { %3812 = vmatpush.msra.mxu0 %v3788_v11  ;;  %v3783_v32 = vpop.permute.xlu1 %3782 }
 0x4aa   :  { %v3787_v60 = vsel %vm719_vm6, %v3783_v32, %v3777_v43  ;;  %v3678_v61 = vpop.permute.xlu0 %3677  ;;  %v7257_v43 = vld [vmem:[#allocation16_spill] sm:$0xff] }
 0x4ab   :  { %v3679_v12 = vsel %vm602_vm5, %v3676_v26, %v3678_v61  ;;  %v3682_v46 = vsel %vm602_vm5, %v3678_v61, %v3672_v14  ;;  %v3791_v27 = vmul.f32 %v3787_v60, %v7257_v43  ;;  %v7260_v14 = vld [vmem:[#allocation15_spill] sm:$0xff] }
 0x4ac   :  { %v3685_v29 = vmul.f32 %v3679_v12, %v7255_v2  ;;  %v3686_v25 = vmul.f32 %v3682_v46, %v7256_v44  ;;  %v7264_v61 = vld [vmem:[#allocation23_spill] sm:$0xff]  ;;  %v7265_v46 = vld [vmem:[#allocation24_spill] sm:$0xff] }
 0x4ae   :  { %3747 = vmatpush.msrb.mxu2 %v3685_v29  ;;  %3767 = vmatpush.msrb.mxu3 %v3686_v25 }
 0x4af   :  { %5223 = vmatmul.msk.f32.vlgmr.msrb.gmra.mxu0 %vm104_vm2, %v5222_v58  ;;  %5224 = vmatmul.msk.f32.vlgmr.msrb.gmra.mxu1 %vm104_vm2, %v5222_v58 }
 0x4b0   :  { %5225 = vmatmul.msk.f32.vlgmr.msrb.gmra.mxu2 %vm104_vm2, %v5222_v58  ;;  %5226 = vmatmul.msk.f32.vlgmr.msrb.gmra.mxu3 %vm104_vm2, %v5222_v58  ;;  %v7266_v58 = vld [vmem:[#allocation22_spill] sm:$0xff] }
 0x4b1   :  { %3872 = vmatpush.msra.mxu3 %v3791_v27  ;;  %v3886_v48 = vpop.permute.xlu1 %3885  ;;  %v7267_v27 = vld [vmem:[#allocation21_spill] sm:$0xff] }
 0x4b2   :  { %v3889_v7 = vsel %vm836_vm7, %v3886_v48, %v3888_v57  ;;  %v3781_v31 = vpop.permute.xlu0 %3780 }
 0x4b3   :  { %3977 = vmatpush.msrb.mxu3 %v3896_v15  ;;  %v3784_v53 = vsel %vm719_vm6, %v3781_v31, %v3783_v32  ;;  %v3785_v13 = vsel %vm719_vm6, %v3779_v30, %v3781_v31  ;;  %v3895_v6 = vmul.f32 %v3889_v7, %v7261_v37 }
 0x4b4   :  { %v3789_v26 = vmul.f32 %v3785_v13, %v7259_v21  ;;  %v3790_v41 = vmul.f32 %v3784_v53, %v7260_v14 }
 0x4b6   :  { %3832 = vmatpush.msra.mxu1 %v3789_v26  ;;  %3852 = vmatpush.msra.mxu2 %v3790_v41 }
 0x4b7   :  { %5228 = vmatmul.msk.f32.vlgmr.msra.gmra.mxu0 %vm104_vm2, %v5227_v52  ;;  %5229 = vmatmul.msk.f32.vlgmr.msra.gmra.mxu1 %vm104_vm2, %v5227_v52 }
 0x4b8   :  { %5230 = vmatmul.msk.f32.vlgmr.msra.gmra.mxu2 %vm104_vm2, %v5227_v52  ;;  %5231 = vmatmul.msk.f32.vlgmr.msra.gmra.mxu3 %vm104_vm2, %v5227_v52 }
 0x4b9   :  { %3957 = vmatpush.msrb.mxu2 %v3895_v6  ;;  %v3987_v56 = vpop.permute.xlu1 %3986 }
 0x4ba   :  { %v3884_v20 = vpop.permute.xlu0 %3883 }
 0x4bb   :  { %v3890_v30 = vsel %vm836_vm7, %v3884_v20, %v3886_v48  ;;  %v3891_v23 = vsel %vm836_vm7, %v3882_v38, %v3884_v20  ;;  %v5237_v48 = vld [vmem:[%s7117_s6 + $0x40] sm:$0xff] }
 0x4bc   :  { %v3893_v22 = vmul.f32 %v3891_v23, %v7262_v5  ;;  %v3894_v19 = vmul.f32 %v3890_v30, %v7263_v55 }
 0x4be   :  { %3917 = vmatpush.msrb.mxu0 %v3893_v22  ;;  %3937 = vmatpush.msrb.mxu1 %v3894_v19 }
 0x4bf   :  { %5233 = vmatmul.msk.f32.vlgmr.msrb.gmra.mxu0 %vm104_vm2, %v5232_v8  ;;  %5234 = vmatmul.msk.f32.vlgmr.msrb.gmra.mxu1 %vm104_vm2, %v5232_v8 }
 0x4c0   :  { %5235 = vmatmul.msk.f32.vlgmr.msrb.gmra.mxu2 %vm104_vm2, %v5232_v8  ;;  %5236 = vmatmul.msk.f32.vlgmr.msrb.gmra.mxu3 %vm104_vm2, %v5232_v8 }
 0x4c1   :  { %v3989_v38 = vpop.permute.xlu1 %3988 }
 0x4c2   :  { %v3995_v11 = vsel %vm953_vm8, %v3989_v38, %v3991_v59  ;;  %v3996_v32 = vsel %vm953_vm8, %v3987_v56, %v3989_v38  ;;  %v3993_v60 = vpop.permute.xlu0 %3992 }
 0x4c3   :  { %v3998_v12 = vmul.f32 %v3996_v32, %v7264_v61  ;;  %v3999_v57 = vmul.f32 %v3995_v11, %v7265_v46  ;;  %v3994_v29 = vsel %vm953_vm8, %v3991_v59, %v3993_v60  ;;  %v3997_v25 = vsel %vm953_vm8, %v3993_v60, %v3987_v56 }
 0x4c4   :  { %v4000_v4 = vmul.f32 %v3994_v29, %v7266_v58  ;;  %v4001_v15 = vmul.f32 %v3997_v25, %v7267_v27 }
 0x4c5   :  { %4022 = vmatpush.msra.mxu0 %v3998_v12  ;;  %4042 = vmatpush.msra.mxu1 %v3999_v57 }
 0x4c6   :  { %4062 = vmatpush.msra.mxu2 %v4000_v4  ;;  %4082 = vmatpush.msra.mxu3 %v4001_v15 }
 0x4c7   :  { %5238 = vmatmul.msk.f32.vlgmr.msra.gmra.mxu0 %vm104_vm2, %v5237_v48  ;;  %5239 = vmatmul.msk.f32.vlgmr.msra.gmra.mxu1 %vm104_vm2, %v5237_v48 }
 0x4c8   :  { %5240 = vmatmul.msk.f32.vlgmr.msra.gmra.mxu2 %vm104_vm2, %v5237_v48  ;;  %5241 = vmatmul.msk.f32.vlgmr.msra.gmra.mxu3 %vm104_vm2, %v5237_v48 }
 0x4fc   :  { %v3246_v7 = vpop.f32.mrf.mxu1 }
 0x4fd   :  { %v3226_v31 = vpop.f32.mrf.mxu0 }
 0x503   :  { %v3266_v53 = vpop.f32.mrf.mxu2 }
 0x504   :  { %v3286_v13 = vpop.f32.mrf.mxu3 }
 0x505   :  { %v3329_v26 = vpop.f32.mrf.mxu1 }
 0x506   :  { %v3330_v48 = vadd.f32 %v3329_v26, %v3246_v7 }
 0x50b   :  { %v3349_v52 = vpop.f32.mrf.mxu2 }
 0x50c   :  { %v3309_v41 = vpop.f32.mrf.mxu0  ;;  %v3350_v5 = vadd.f32 %v3349_v52, %v3266_v53 }
 0x50d   :  { %v3430_v56 = vpop.f32.mrf.mxu1  ;;  %v3310_v27 = vadd.f32 %v3309_v41, %v3226_v31 }
 0x50e   :  { %v3474_v24 = vadd.f32 %v3430_v56, %v3330_v48 }
 0x512   :  { %v3369_v6 = vpop.f32.mrf.mxu3 }
 0x513   :  { %v3370_v58 = vadd.f32 %v3369_v6, %v3286_v13 }
 0x514   :  { %v3410_v20 = vpop.f32.mrf.mxu0 }
 0x515   :  { %v3473_v37 = vadd.f32 %v3410_v20, %v3310_v27 }
 0x51a   :  { %v3450_v30 = vpop.f32.mrf.mxu2 }
 0x51b   :  { %v3470_v23 = vpop.f32.mrf.mxu3  ;;  %v3475_v21 = vadd.f32 %v3450_v30, %v3350_v5 }
 0x51c   :  { %v3515_v22 = vpop.f32.mrf.mxu0  ;;  %v3535_v19 = vpop.f32.mrf.mxu1  ;;  %v3476_v35 = vadd.f32 %v3470_v23, %v3370_v58  ;;  %v5242_v23 = vld [vmem:[%s7112_s8 + $0x28] sm:$0xff] }
 0x51d   :  { %v3579_v47 = vadd.f32 %v3535_v19, %v3474_v24  ;;  %v3578_v43 = vadd.f32 %v3515_v22, %v3473_v37 }
 0x523   :  { %v3555_v8 = vpop.f32.mrf.mxu2  ;;  %v3575_v59 = vpop.f32.mrf.mxu3 }
 0x524   :  { %v3604_v38 = vpop.f32.mrf.mxu0  ;;  %v3624_v11 = vpop.f32.mrf.mxu1  ;;  %v3580_v2 = vadd.f32 %v3555_v8, %v3475_v21  ;;  %v3581_v1 = vadd.f32 %v3575_v59, %v3476_v35 }
 0x525   :  { %v3668_v61 = vadd.f32 %v3624_v11, %v3579_v47  ;;  %v3667_v33 = vadd.f32 %v3604_v38, %v3578_v43  ;;  %v4094_v47 = vpop.permute.xlu2 %4093 }
 0x52b   :  { %v3644_v32 = vpop.f32.mrf.mxu2  ;;  %v3664_v60 = vpop.f32.mrf.mxu3 }
 0x52c   :  { %v3709_v12 = vpop.f32.mrf.mxu0  ;;  %v3729_v57 = vpop.f32.mrf.mxu1  ;;  %v3669_v56 = vadd.f32 %v3644_v32, %v3580_v2  ;;  %v3670_v19 = vadd.f32 %v3664_v60, %v3581_v1 }
 0x52d   :  { %v3773_v14 = vadd.f32 %v3729_v57, %v3668_v61  ;;  %v3772_v31 = vadd.f32 %v3709_v12, %v3667_v33 }
 0x533   :  { %v3749_v29 = vpop.f32.mrf.mxu2  ;;  %v3769_v25 = vpop.f32.mrf.mxu3 }
 0x534   :  { %v3814_v4 = vpop.f32.mrf.mxu0  ;;  %v3834_v15 = vpop.f32.mrf.mxu1  ;;  %v3774_v6 = vadd.f32 %v3749_v29, %v3669_v56  ;;  %v3775_v53 = vadd.f32 %v3769_v25, %v3670_v19  ;;  %v5243_v56 = vld [vmem:[%s7118_s7 + $0x8] sm:$0xff] }
 0x535   :  { %v3878_v44 = vadd.f32 %v3834_v15, %v3773_v14  ;;  %v3877_v27 = vadd.f32 %v3814_v4, %v3772_v31 }
 0x53b   :  { %v3854_v0 = vpop.f32.mrf.mxu2  ;;  %v3874_v28 = vpop.f32.mrf.mxu3 }
 0x53c   :  { %v3939_v46 = vpop.f32.mrf.mxu1  ;;  %v3919_v55 = vpop.f32.mrf.mxu0  ;;  %v3879_v58 = vadd.f32 %v3854_v0, %v3774_v6  ;;  %v3880_v37 = vadd.f32 %v3874_v28, %v3775_v53 }
 0x53d   :  { %v3983_v7 = vadd.f32 %v3939_v46, %v3878_v44  ;;  %v3982_v14 = vadd.f32 %v3919_v55, %v3877_v27 }
 0x543   :  { %v3959_v26 = vpop.f32.mrf.mxu2  ;;  %v3979_v24 = vpop.f32.mrf.mxu3 }
 0x544   :  { %v4044_v13 = vpop.f32.mrf.mxu1  ;;  %v4024_v61 = vpop.f32.mrf.mxu0  ;;  %v3984_v43 = vadd.f32 %v3959_v26, %v3879_v58  ;;  %v3985_v44 = vadd.f32 %v3979_v24, %v3880_v37  ;;  %v5252_v37 = vld [vmem:[%s7118_s7 + $0x10] sm:$0xff] }
 0x545   :  { %v4088_v41 = vadd.f32 %v4044_v13, %v3983_v7  ;;  %v4087_v35 = vadd.f32 %v4024_v61, %v3982_v14 }
 0x547   :  { %v4097_v5 = vadd.f32 %v4094_v47, %v4088_v41  ;;  %v4096_v0 = vadd.f32 %v4094_v47, %v4087_v35  ;;  %v4122_v41 = vld [vmem:[%s7118_s7] sm:$0xff] }
 0x549   :  { %v6851_v21 = vmax.f32 %v4097_v5, 0.0  ;;  %v6863_v30 = vmax.f32 %v4096_v0, 0.0 }
 0x54b   :  { %v4064_v46 = vpop.f32.mrf.mxu2  ;;  %v4084_v2 = vpop.f32.mrf.mxu3  ;;  %4309 = vrot.lane.b32.xlu2 %v6851_v21, %s5301_s23  ;;  %4108 = vrot.lane.b32.xlu1 %v6851_v21, %s5300_s18 }
 0x54c   :  { %v4089_v33 = vadd.f32 %v4064_v46, %v3984_v43  ;;  %v4090_v1 = vadd.f32 %v4084_v2, %v3985_v44  ;;  %4125 = vrot.lane.b32.xlu0 %v6851_v21, %s5299_s17 }
 0x54e   :  { %v4098_v28 = vadd.f32 %v4094_v47, %v4089_v33  ;;  %v4099_v55 = vadd.f32 %v4094_v47, %v4090_v1 }
 0x550   :  { %v6859_v52 = vmax.f32 %v4098_v28, 0.0  ;;  %v6861_v20 = vmax.f32 %v4099_v55, 0.0  ;;  %v5257_v55 = vld [vmem:[%s7118_s7 + $0x18] sm:$0xff] }
 0x553   :  { %4129 = vrot.lane.b32.xlu2 %v6861_v20, %s5299_s17  ;;  %4127 = vrot.lane.b32.xlu1 %v6859_v52, %s5299_s17 }
 0x554   :  { %4123 = vrot.lane.b32.xlu0 %v6863_v30, %s5299_s17 }
 0x55b   :  { %4110 = vrot.lane.b32.xlu2 %v6859_v52, %s5300_s18  ;;  %4106 = vrot.lane.b32.xlu1 %v6863_v30, %s5300_s18 }
 0x55c   :  { %4414 = vrot.lane.b32.xlu0 %v6851_v21, %s5302_s0 }
 0x563   :  { %4307 = vrot.lane.b32.xlu2 %v6863_v30, %s5301_s23  ;;  %4313 = vrot.lane.b32.xlu1 %v6861_v20, %s5301_s23 }
 0x564   :  { %4112 = vrot.lane.b32.xlu0 %v6861_v20, %s5300_s18 }
 0x56b   :  { %4418 = vrot.lane.b32.xlu2 %v6861_v20, %s5302_s0  ;;  %4416 = vrot.lane.b32.xlu1 %v6859_v52, %s5302_s0 }
 0x56c   :  { %4311 = vrot.lane.b32.xlu0 %v6859_v52, %s5301_s23 }
 0x573   :  { %4711 = vrot.lane.b32.xlu2 %v6863_v30, %s5304_s25  ;;  %4606 = vrot.lane.b32.xlu1 %v6863_v30, %s5303_s24 }
 0x574   :  { %4412 = vrot.lane.b32.xlu0 %v6863_v30, %s5302_s0 }
 0x57b   :  { %4610 = vrot.lane.b32.xlu2 %v6859_v52, %s5303_s24  ;;  %4608 = vrot.lane.b32.xlu1 %v6851_v21, %s5303_s24 }
 0x57c   :  { %4816 = vrot.lane.b32.xlu0 %v6863_v30, %s5305_s26 }
 0x583   :  { %4713 = vrot.lane.b32.xlu2 %v6851_v21, %s5304_s25  ;;  %4717 = vrot.lane.b32.xlu1 %v6861_v20, %s5304_s25 }
 0x584   :  { %4612 = vrot.lane.b32.xlu0 %v6861_v20, %s5303_s24 }
 0x58b   :  { %4822 = vrot.lane.b32.xlu2 %v6861_v20, %s5305_s26  ;;  %4820 = vrot.lane.b32.xlu1 %v6859_v52, %s5305_s26 }
 0x58c   :  { %4715 = vrot.lane.b32.xlu0 %v6859_v52, %s5304_s25 }
 0x593   :  { %4925 = vrot.lane.b32.xlu2 %v6859_v52, %s5306_s27  ;;  %4921 = vrot.lane.b32.xlu1 %v6863_v30, %s5306_s27 }
 0x594   :  { %4818 = vrot.lane.b32.xlu0 %v6851_v21, %s5305_s26 }
 0x59b   :  { %5028 = vperm.xlu2 %5296, %v5242_v23   ;;  %4923 = vrot.lane.b32.xlu1 %v6851_v21, %s5306_s27 }
 0x59c   :  { %4927 = vrot.lane.b32.xlu0 %v6861_v20, %s5306_s27 }
 0x5a5   :  { %v6926_v22 = vpop.permute.xlu2 %4309 }
 0x5ad   :  { %v4130_v8 = vpop.permute.xlu2 %4129 }
 0x5b5   :  { %v4111_v59 = vpop.permute.xlu2 %4110 }
 0x5bd   :  { %v4109_v38 = vpop.permute.xlu1 %4108  ;;  %v4308_v32 = vpop.permute.xlu2 %4307 }
 0x5be   :  { %v4126_v11 = vpop.permute.xlu0 %4125  ;;  %v4115_v12 = vsel %vm54_vm1, %v4109_v38, %v4111_v59 }
 0x5bf   :  { %v4120_v19 = vmul.f32 %v4115_v12, %v5469_v18 }
 0x5c5   :  { %v4128_v60 = vpop.permute.xlu1 %4127 }
 0x5c6   :  { %v4131_v57 = vsel %vm82_vm0, %v4128_v60, %v4130_v8  ;;  %v4132_v29 = vsel %vm82_vm0, %v4126_v11, %v4128_v60  ;;  %v4124_v25 = vpop.permute.xlu0 %4123 }
 0x5c7   :  { %v4137_v4 = vmul.f32 %v4132_v29, %v5465_v16  ;;  %v4138_v15 = vmul.f32 %v4131_v57, %v5467_v17  ;;  %v4133_v48 = vsel %vm82_vm0, %v4124_v25, %v4126_v11  ;;  %v4134_v7 = vsel %vm82_vm0, %v4130_v8, %v4124_v25  ;;  %v7268_v8 = vld [vmem:[#allocation12_spill] sm:$0xff]  ;;  %v7270_v25 = vld [vmem:[#allocation9_spill] sm:$0xff] }
 0x5c8   :  { %v4135_v26 = vmul.f32 %v4134_v7, %v7230_v40  ;;  %v4136_v24 = vmul.f32 %v4133_v48, %v7229_v45  ;;  %v4317_v16 = vsel %vm279_vm3, %v4308_v32, %v6926_v22  ;;  %v4419_v40 = vpop.permute.xlu2 %4418  ;;  %v5267_v7 = vld [vmem:[%s7118_s7 + $0x28] sm:$0xff] }
 0x5c9   :  { %4199 = vmatpush.msrb.mxu2 %v4137_v4  ;;  %4219 = vmatpush.msrb.mxu3 %v4138_v15  ;;  %v4320_v13 = vmul.f32 %v4317_v16, %v7232_v39  ;;  %v7271_v15 = vld [vmem:[#allocation10_spill] sm:$0xff] }
 0x5ca   :  { %4159 = vmatpush.msrb.mxu0 %v4135_v26  ;;  %4179 = vmatpush.msrb.mxu1 %v4136_v24  ;;  %v7272_v24 = vld [vmem:[#allocation16_spill] sm:$0xff] }
 0x5cb   :  { %4282 = vmatpush.msra.mxu2 %v4120_v19  ;;  %5245 = vmatmul.msk.f32.vlgmr.msrb.gmra.mxu1 %vm104_vm2, %v5243_v56  ;;  %v7273_v19 = vld [vmem:[#allocation17_spill] sm:$0xff] }
 0x5cc   :  { %5246 = vmatmul.msk.f32.vlgmr.msrb.gmra.mxu2 %vm104_vm2, %v5243_v56  ;;  %5244 = vmatmul.msk.f32.vlgmr.msrb.gmra.mxu0 %vm104_vm2, %v5243_v56 }
 0x5cd   :  { %v4107_v17 = vpop.permute.xlu1 %4106  ;;  %5247 = vmatmul.msk.f32.vlgmr.msrb.gmra.mxu3 %vm104_vm2, %v5243_v56 }
 0x5ce   :  { %v4116_v18 = vsel %vm54_vm1, %v4107_v17, %v4109_v38  ;;  %v4415_v45 = vpop.permute.xlu0 %4414 }
 0x5cf   :  { %v4119_v31 = vmul.f32 %v4116_v18, %v7231_v42 }
 0x5d0   :  { %v4712_v58 = vpop.permute.xlu2 %4711 }
 0x5d1   :  { %4262 = vmatpush.msra.mxu1 %v4119_v31 }
 0x5d3   :  { %4363 = vmatpush.msrb.mxu1 %v4320_v13  ;;  %v7274_v13 = vld [vmem:[#allocation14_spill] sm:$0xff] }
 0x5d4   :  { %5249 = vmatmul.msk.f32.vlgmr.msra.gmra.mxu1 %vm104_vm2, %v4122_v41  ;;  %5250 = vmatmul.msk.f32.vlgmr.msra.gmra.mxu2 %vm104_vm2, %v4122_v41 }
 0x5d5   :  { %v4314_v47 = vpop.permute.xlu1 %4313 }
 0x5d6   :  { %v4318_v6 = vsel %vm279_vm3, %v4314_v47, %v4308_v32  ;;  %v4113_v53 = vpop.permute.xlu0 %4112 }
 0x5d7   :  { %v4114_v42 = vsel %vm54_vm1, %v4111_v59, %v4113_v53  ;;  %v4117_v39 = vsel %vm54_vm1, %v4113_v53, %v4107_v17  ;;  %v4319_v27 = vmul.f32 %v4318_v6, %v5528_v50  ;;  %v5272_v53 = vld [vmem:[%s7118_s7 + $0x30] sm:$0xff] }
 0x5d8   :  { %v4118_v61 = vmul.f32 %v4117_v39, %v5497_v34  ;;  %v4121_v5 = vmul.f32 %v4114_v42, %v5501_v36  ;;  %v4611_v1 = vpop.permute.xlu2 %4610  ;;  %v7276_v42 = vld [vmem:[#allocation18_spill] sm:$0xff] }
 0x5da   :  { %4242 = vmatpush.msra.mxu0 %v4118_v61  ;;  %4302 = vmatpush.msra.mxu3 %v4121_v5 }
 0x5db   :  { %5248 = vmatmul.msk.f32.vlgmr.msra.gmra.mxu0 %vm104_vm2, %v4122_v41  ;;  %5251 = vmatmul.msk.f32.vlgmr.msra.gmra.mxu3 %vm104_vm2, %v4122_v41 }
 0x5dc   :  { %4343 = vmatpush.msrb.mxu0 %v4319_v27  ;;  %5254 = vmatmul.msk.f32.vlgmr.msrb.gmra.mxu1 %vm104_vm2, %v5252_v37 }
 0x5dd   :  { %v4417_v14 = vpop.permute.xlu1 %4416 }
 0x5de   :  { %v4420_v34 = vsel %vm396_vm4, %v4417_v14, %v4419_v40  ;;  %v4421_v36 = vsel %vm396_vm4, %v4415_v45, %v4417_v14  ;;  %v4312_v50 = vpop.permute.xlu0 %4311 }
 0x5df   :  { %v4315_v43 = vsel %vm279_vm3, %v4312_v50, %v4314_v47  ;;  %v4316_v44 = vsel %vm279_vm3, %v6926_v22, %v4312_v50  ;;  %v4426_v46 = vmul.f32 %v4421_v36, %v5556_v63  ;;  %v4427_v2 = vmul.f32 %v4420_v34, %v7209_v54  ;;  %v7275_v47 = vld [vmem:[#allocation15_spill] sm:$0xff]  ;;  %v7278_v34 = vld [vmem:[#allocation20_spill] sm:$0xff]  ;;  %v5277_v50 = vld [vmem:[%s7118_s7 + $0x38] sm:$0xff] }
 0x5e0   :  { %v4322_v35 = vmul.f32 %v4315_v43, %v5530_v51  ;;  %v4321_v33 = vmul.f32 %v4316_v44, %v5526_v49 }
 0x5e2   :  { %4403 = vmatpush.msrb.mxu3 %v4322_v35  ;;  %4383 = vmatpush.msrb.mxu2 %v4321_v33  ;;  %v7279_v33 = vld [vmem:[#allocation23_spill] sm:$0xff] }
 0x5e3   :  { %5253 = vmatmul.msk.f32.vlgmr.msrb.gmra.mxu0 %vm104_vm2, %v5252_v37  ;;  %5255 = vmatmul.msk.f32.vlgmr.msrb.gmra.mxu2 %vm104_vm2, %v5252_v37 }
 0x5e4   :  { %5256 = vmatmul.msk.f32.vlgmr.msrb.gmra.mxu3 %vm104_vm2, %v5252_v37  ;;  %4488 = vmatpush.msra.mxu2 %v4426_v46  ;;  %v7277_v37 = vld [vmem:[#allocation19_spill] sm:$0xff] }
 0x5e5   :  { %4508 = vmatpush.msra.mxu3 %v4427_v2  ;;  %v4607_v0 = vpop.permute.xlu1 %4606 }
 0x5e6   :  { %4577 = vmatpush.msrb.mxu2 %v6859_v52  ;;  %v4413_v51 = vpop.permute.xlu0 %4412  ;;  %v4714_v52 = vpop.permute.xlu2 %4713 }
 0x5e7   :  { %4597 = vmatpush.msrb.mxu3 %v6861_v20  ;;  %v4422_v49 = vsel %vm396_vm4, %v4413_v51, %v4415_v45  ;;  %v4423_v63 = vsel %vm396_vm4, %v4419_v40, %v4413_v51  ;;  %v4721_v38 = vsel %vm719_vm6, %v4712_v58, %v4714_v52 }
 0x5e8   :  { %v4424_v54 = vmul.f32 %v4423_v63, %v7208_v62  ;;  %v4425_v28 = vmul.f32 %v4422_v49, %v7233_v3 }
 0x5ea   :  { %4448 = vmatpush.msra.mxu0 %v4424_v54  ;;  %4468 = vmatpush.msra.mxu1 %v4425_v28  ;;  %v7281_v54 = vld [vmem:[#allocation22_spill] sm:$0xff] }
 0x5eb   :  { %5258 = vmatmul.msk.f32.vlgmr.msra.gmra.mxu0 %vm104_vm2, %v5257_v55  ;;  %5259 = vmatmul.msk.f32.vlgmr.msra.gmra.mxu1 %vm104_vm2, %v5257_v55 }
 0x5ec   :  { %5260 = vmatmul.msk.f32.vlgmr.msra.gmra.mxu2 %vm104_vm2, %v5257_v55  ;;  %5261 = vmatmul.msk.f32.vlgmr.msra.gmra.mxu3 %vm104_vm2, %v5257_v55  ;;  %v7282_v55 = vld [vmem:[#allocation21_spill] sm:$0xff] }
 0x5ed   :  { %4537 = vmatpush.msrb.mxu0 %v6863_v30  ;;  %4557 = vmatpush.msrb.mxu1 %v6851_v21  ;;  %v4609_v62 = vpop.permute.xlu1 %4608  ;;  %v5262_v30 = vld [vmem:[%s7118_s7 + $0x20] sm:$0xff]  ;;  %v7269_v21 = vld [vmem:[#allocation13_spill] sm:$0xff] }
 0x5ee   :  { %v4615_v3 = vsel %vm602_vm5, %v4609_v62, %v4611_v1  ;;  %v4616_v20 = vsel %vm602_vm5, %v4607_v0, %v4609_v62  ;;  %v4817_v23 = vpop.permute.xlu0 %4816  ;;  %v4723_v11 = vmul.f32 %v4721_v38, %v7269_v21  ;;  %v4823_v29 = vpop.permute.xlu2 %4822  ;;  %v5282_v62 = vld [vmem:[%s7118_s7 + $0x40] sm:$0xff] }
 0x5ef   :  { %v4618_v22 = vmul.f32 %v4616_v20, %v7252_v9  ;;  %v4619_v59 = vmul.f32 %v4615_v3, %v7268_v8  ;;  %v4827_v26 = vsel %vm836_vm7, %v4823_v29, %v4817_v23 }
 0x5f0   :  { %v4831_v16 = vmul.f32 %v4827_v26, %v7273_v19 }
 0x5f1   :  { %4642 = vmatpush.msra.mxu0 %v4618_v22  ;;  %4662 = vmatpush.msra.mxu1 %v4619_v59 }
 0x5f3   :  { %5263 = vmatmul.msk.f32.vlgmr.msrb.gmra.mxu0 %vm104_vm2, %v5262_v30  ;;  %5264 = vmatmul.msk.f32.vlgmr.msrb.gmra.mxu1 %vm104_vm2, %v5262_v30 }
 0x5f4   :  { %5265 = vmatmul.msk.f32.vlgmr.msrb.gmra.mxu2 %vm104_vm2, %v5262_v30  ;;  %5266 = vmatmul.msk.f32.vlgmr.msrb.gmra.mxu3 %vm104_vm2, %v5262_v30 }
 0x5f5   :  { %4747 = vmatpush.msrb.mxu0 %v4723_v11  ;;  %v4718_v9 = vpop.permute.xlu1 %4717 }
 0x5f6   :  { %v4722_v32 = vsel %vm719_vm6, %v4718_v9, %v4712_v58  ;;  %v4613_v60 = vpop.permute.xlu0 %4612  ;;  %v4926_v43 = vpop.permute.xlu2 %4925 }
 0x5f7   :  { %v4614_v12 = vsel %vm602_vm5, %v4611_v1, %v4613_v60  ;;  %v4617_v57 = vsel %vm602_vm5, %v4613_v60, %v4607_v0  ;;  %v4726_v56 = vmul.f32 %v4722_v32, %v7272_v24  ;;  %v7280_v0 = vld [vmem:[#allocation24_spill] sm:$0xff] }
 0x5f8   :  { %v4620_v4 = vmul.f32 %v4614_v12, %v7270_v25  ;;  %v4621_v48 = vmul.f32 %v4617_v57, %v7271_v15 }
 0x5fa   :  { %4682 = vmatpush.msra.mxu2 %v4620_v4  ;;  %4702 = vmatpush.msra.mxu3 %v4621_v48 }
 0x5fb   :  { %5268 = vmatmul.msk.f32.vlgmr.msra.gmra.mxu0 %vm104_vm2, %v5267_v7  ;;  %5269 = vmatmul.msk.f32.vlgmr.msra.gmra.mxu1 %vm104_vm2, %v5267_v7 }
 0x5fc   :  { %5270 = vmatmul.msk.f32.vlgmr.msra.gmra.mxu2 %vm104_vm2, %v5267_v7  ;;  %5271 = vmatmul.msk.f32.vlgmr.msra.gmra.mxu3 %vm104_vm2, %v5267_v7 }
 0x5fd   :  { %4807 = vmatpush.msrb.mxu3 %v4726_v56  ;;  %v4821_v17 = vpop.permute.xlu1 %4820 }
 0x5fe   :  { %v4824_v18 = vsel %vm836_vm7, %v4821_v17, %v4823_v29  ;;  %v4716_v45 = vpop.permute.xlu0 %4715 }
 0x5ff   :  { %4912 = vmatpush.msra.mxu3 %v4831_v16  ;;  %v4719_v40 = vsel %vm719_vm6, %v4716_v45, %v4718_v9  ;;  %v4720_v31 = vsel %vm719_vm6, %v4714_v52, %v4716_v45  ;;  %v4830_v39 = vmul.f32 %v4824_v18, %v7276_v42 }
 0x600   :  { %v4724_v41 = vmul.f32 %v4720_v31, %v7274_v13  ;;  %v4725_v6 = vmul.f32 %v4719_v40, %v7275_v47 }
 0x602   :  { %4767 = vmatpush.msrb.mxu1 %v4724_v41  ;;  %4787 = vmatpush.msrb.mxu2 %v4725_v6 }
 0x603   :  { %5273 = vmatmul.msk.f32.vlgmr.msrb.gmra.mxu0 %vm104_vm2, %v5272_v53  ;;  %5274 = vmatmul.msk.f32.vlgmr.msrb.gmra.mxu1 %vm104_vm2, %v5272_v53 }
 0x604   :  { %5275 = vmatmul.msk.f32.vlgmr.msrb.gmra.mxu2 %vm104_vm2, %v5272_v53  ;;  %5276 = vmatmul.msk.f32.vlgmr.msrb.gmra.mxu3 %vm104_vm2, %v5272_v53 }
 0x605   :  { %4892 = vmatpush.msra.mxu2 %v4830_v39  ;;  %v4922_v27 = vpop.permute.xlu1 %4921 }
 0x606   :  { %v4819_v61 = vpop.permute.xlu0 %4818 }
 0x607   :  { %v4825_v5 = vsel %vm836_vm7, %v4819_v61, %v4821_v17  ;;  %v4826_v58 = vsel %vm836_vm7, %v4817_v23, %v4819_v61 }
 0x608   :  { %v4828_v14 = vmul.f32 %v4826_v58, %v7277_v37  ;;  %v4829_v36 = vmul.f32 %v4825_v5, %v7278_v34 }
 0x60a   :  { %4852 = vmatpush.msra.mxu0 %v4828_v14  ;;  %4872 = vmatpush.msra.mxu1 %v4829_v36 }
 0x60b   :  { %5278 = vmatmul.msk.f32.vlgmr.msra.gmra.mxu0 %vm104_vm2, %v5277_v50  ;;  %5279 = vmatmul.msk.f32.vlgmr.msra.gmra.mxu1 %vm104_vm2, %v5277_v50 }
 0x60c   :  { %5280 = vmatmul.msk.f32.vlgmr.msra.gmra.mxu2 %vm104_vm2, %v5277_v50  ;;  %5281 = vmatmul.msk.f32.vlgmr.msra.gmra.mxu3 %vm104_vm2, %v5277_v50 }
 0x60d   :  { %v4924_v44 = vpop.permute.xlu1 %4923 }
 0x60e   :  { %v4930_v35 = vsel %vm953_vm8, %v4924_v44, %v4926_v43  ;;  %v4931_v46 = vsel %vm953_vm8, %v4922_v27, %v4924_v44  ;;  %v4928_v2 = vpop.permute.xlu0 %4927 }
 0x60f   :  { %v4933_v1 = vmul.f32 %v4931_v46, %v7279_v33  ;;  %v4934_v51 = vmul.f32 %v4930_v35, %v7280_v0  ;;  %v4929_v49 = vsel %vm953_vm8, %v4926_v43, %v4928_v2  ;;  %v4932_v63 = vsel %vm953_vm8, %v4928_v2, %v4922_v27 }
 0x610   :  { %v4935_v28 = vmul.f32 %v4929_v49, %v7281_v54  ;;  %v4936_v52 = vmul.f32 %v4932_v63, %v7282_v55  ;;  %v5029_v63 = vpop.permute.xlu2 %5028 }
 0x611   :  { %4957 = vmatpush.msrb.mxu0 %v4933_v1  ;;  %4977 = vmatpush.msrb.mxu1 %v4934_v51 }
 0x612   :  { %4997 = vmatpush.msrb.mxu2 %v4935_v28  ;;  %5017 = vmatpush.msrb.mxu3 %v4936_v52 }
 0x613   :  { %5283 = vmatmul.msk.f32.vlgmr.msrb.gmra.mxu0 %vm104_vm2, %v5282_v62  ;;  %5284 = vmatmul.msk.f32.vlgmr.msrb.gmra.mxu1 %vm104_vm2, %v5282_v62 }
 0x614   :  { %5285 = vmatmul.msk.f32.vlgmr.msrb.gmra.mxu2 %vm104_vm2, %v5282_v62  ;;  %5286 = vmatmul.msk.f32.vlgmr.msrb.gmra.mxu3 %vm104_vm2, %v5282_v62 }
 0x648   :  { %v4181_v10 = vpop.f32.mrf.mxu1 }
 0x649   :  { %v4161_v3 = vpop.f32.mrf.mxu0 }
 0x64f   :  { %v4201_v23 = vpop.f32.mrf.mxu2 }
 0x650   :  { %v4221_v20 = vpop.f32.mrf.mxu3 }
 0x651   :  { %v4264_v22 = vpop.f32.mrf.mxu1 }
 0x652   :  { %v4265_v16 = vadd.f32 %v4264_v22, %v4181_v10 }
 0x657   :  { %v4284_v38 = vpop.f32.mrf.mxu2 }
 0x658   :  { %v4244_v8 = vpop.f32.mrf.mxu0  ;;  %v4285_v39 = vadd.f32 %v4284_v38, %v4201_v23  ;;  %v7284_v23 = vld [vmem:[#allocation3_spill] sm:$0xff] }
 0x659   :  { %v4365_v30 = vpop.f32.mrf.mxu1  ;;  %v4245_v17 = vadd.f32 %v4244_v8, %v4161_v3  ;;  %v7283_v3 = vld [vmem:[#allocation4_spill] sm:$0xff] }
 0x65a   :  { %v4409_v18 = vadd.f32 %v4365_v30, %v4265_v16 }
 0x65e   :  { %v4304_v59 = vpop.f32.mrf.mxu3 }
 0x65f   :  { %v4305_v27 = vadd.f32 %v4304_v59, %v4221_v20 }
 0x660   :  { %v4345_v21 = vpop.f32.mrf.mxu0 }
 0x661   :  { %v4408_v45 = vadd.f32 %v4345_v21, %v4245_v17 }
 0x666   :  { %v4385_v11 = vpop.f32.mrf.mxu2 }
 0x667   :  { %v4405_v9 = vpop.f32.mrf.mxu3  ;;  %v4410_v58 = vadd.f32 %v4385_v11, %v4285_v39 }
 0x668   :  { %v4450_v32 = vpop.f32.mrf.mxu0  ;;  %v4470_v60 = vpop.f32.mrf.mxu1  ;;  %v4411_v37 = vadd.f32 %v4405_v9, %v4305_v27 }
 0x669   :  { %v4513_v40 = vadd.f32 %v4450_v32, %v4408_v45  ;;  %v4514_v31 = vadd.f32 %v4470_v60, %v4409_v18 }
 0x66f   :  { %v4490_v12 = vpop.f32.mrf.mxu2  ;;  %v4510_v57 = vpop.f32.mrf.mxu3 }
 0x670   :  { %v4539_v29 = vpop.f32.mrf.mxu0  ;;  %v4559_v25 = vpop.f32.mrf.mxu1  ;;  %v4515_v36 = vadd.f32 %v4490_v12, %v4410_v58  ;;  %v4516_v50 = vadd.f32 %v4510_v57, %v4411_v37  ;;  %v7285_v57 = vld [vmem:[#allocation2_spill] sm:$0xff] }
 0x671   :  { %v4602_v53 = vadd.f32 %v4539_v29, %v4513_v40  ;;  %v4603_v42 = vadd.f32 %v4559_v25, %v4514_v31  ;;  %v7286_v25 = vld [vmem:[#allocation5_spill] sm:$0xff] }
 0x677   :  { %v4579_v4 = vpop.f32.mrf.mxu2  ;;  %v4599_v15 = vpop.f32.mrf.mxu3 }
 0x678   :  { %v4644_v48 = vpop.f32.mrf.mxu0  ;;  %v4664_v7 = vpop.f32.mrf.mxu1  ;;  %v4604_v2 = vadd.f32 %v4579_v4, %v4515_v36  ;;  %v4605_v33 = vadd.f32 %v4599_v15, %v4516_v50 }
 0x679   :  { %v4707_v61 = vadd.f32 %v4644_v48, %v4602_v53  ;;  %v4708_v5 = vadd.f32 %v4664_v7, %v4603_v42 }
 0x67f   :  { %v4684_v26 = vpop.f32.mrf.mxu2  ;;  %v4704_v24 = vpop.f32.mrf.mxu3 }
 0x680   :  { %v4749_v56 = vpop.f32.mrf.mxu0  ;;  %v4769_v19 = vpop.f32.mrf.mxu1  ;;  %v4709_v54 = vadd.f32 %v4684_v26, %v4604_v2  ;;  %v4710_v28 = vadd.f32 %v4704_v24, %v4605_v33 }
 0x681   :  { %v4812_v14 = vadd.f32 %v4749_v56, %v4707_v61  ;;  %v4813_v34 = vadd.f32 %v4769_v19, %v4708_v5 }
 0x687   :  { %v4789_v13 = vpop.f32.mrf.mxu2  ;;  %v4809_v41 = vpop.f32.mrf.mxu3 }
 0x688   :  { %v4854_v47 = vpop.f32.mrf.mxu0  ;;  %v4874_v6 = vpop.f32.mrf.mxu1  ;;  %v4814_v62 = vadd.f32 %v4789_v13, %v4709_v54  ;;  %v4815_v10 = vadd.f32 %v4809_v41, %v4710_v28 }
 0x689   :  { %v4917_v43 = vadd.f32 %v4854_v47, %v4812_v14  ;;  %v4918_v44 = vadd.f32 %v4874_v6, %v4813_v34 }
 0x68f   :  { %v4894_v35 = vpop.f32.mrf.mxu2  ;;  %v4914_v46 = vpop.f32.mrf.mxu3 }
 0x690   :  { %v4959_v1 = vpop.f32.mrf.mxu0  ;;  %v4979_v0 = vpop.f32.mrf.mxu1  ;;  %v4919_v8 = vadd.f32 %v4894_v35, %v4814_v62  ;;  %v4920_v59 = vadd.f32 %v4914_v46, %v4815_v10 }
 0x691   :  { %v5022_v51 = vadd.f32 %v4959_v1, %v4917_v43  ;;  %v5023_v49 = vadd.f32 %v4979_v0, %v4918_v44 }
 0x693   :  { %v5031_v55 = vadd.f32 %v5029_v63, %v5022_v51  ;;  %v5032_v52 = vadd.f32 %v5029_v63, %v5023_v49 }
 0x695   :  { %v5035_v20 = vadd.f32 %v5031_v55, %v7283_v3  ;;  %v5036_v22 = vadd.f32 %v5032_v52, %v7284_v23 }
 0x697   :  { %v5039_v38 = vmax.f32 %v5035_v20, 0.0  ;;  %v5040_v30 = vmax.f32 %v5036_v22, 0.0  ;;  %v4999_v21 = vpop.f32.mrf.mxu2  ;;  %v5019_v11 = vpop.f32.mrf.mxu3 }
 0x698   :  { %v5024_v9 = vadd.f32 %v4999_v21, %v4919_v8  ;;  %v5025_v32 = vadd.f32 %v5019_v11, %v4920_v59 }
 0x699   :  { %5043 = vst [vmem:[%s7119_s10] sm:$0xff] %v5039_v38 }
 0x69a   :  { %5044 = vst [vmem:[%s7119_s10 + $0x8] sm:$0xff] %v5040_v30  ;;  %v5033_v60 = vadd.f32 %v5029_v63, %v5024_v9  ;;  %v5034_v12 = vadd.f32 %v5029_v63, %v5025_v32 }
 0x69c   :  { %v5037_v29 = vadd.f32 %v5033_v60, %v7285_v57  ;;  %v5038_v4 = vadd.f32 %v5034_v12, %v7286_v25 }
 0x69e   :  { %v5041_v15 = vmax.f32 %v5037_v29, 0.0  ;;  %v5042_v48 = vmax.f32 %v5038_v4, 0.0 }
 0x6a0   :  { %5045 = vst [vmem:[%s7119_s10 + $0x10] sm:$0xff] %v5041_v15 }
 0x6a1   :  { %5046 = vst [vmem:[%s7119_s10 + $0x18] sm:$0xff] %v5042_v48 }

</bundles_post_ra>
